<compile_context>
chip_gen: v6e
topology: v6e:2x2x1
jax: 0.10.0
libtpu: 0.0.40
codegen_flags: <defaults>
</compile_context>

<pallas_src>
import functools
import jax
import jax.numpy as jnp
from jax.experimental import pallas as pl
from jax.experimental.pallas import tpu as pltpu

EPS = 1e-5
NEG_INF = -1e30                    # f32 mask fill (never cast to bf16)
VMEM_LIMIT = 48 * 1024 * 1024      # < 64 MiB physical on v7x, > scoped defaults
TILE_TARGET = 256                  # sequence tile (multiple of 256 for v6e/v7x MXU)


def _round_up(a, m):
    return (a + m - 1) // m * m


def _layer_norm(x, g, b):
    mu = jnp.mean(x, axis=-1, keepdims=True)
    var = jnp.mean(jnp.square(x - mu), axis=-1, keepdims=True)
    return (x - mu) * jax.lax.rsqrt(var + EPS) * g + b


# ----------------------------------------------------------------------------
# Pallas kernels
# ----------------------------------------------------------------------------
def qkv_kernel(x_ref, g_ref, b_ref, wqkv_ref, bqkv_ref,
               q_ref, k_ref, v_ref, *, heads):
    """LayerNorm + fused QKV projection for one (batch, seq-tile).

    Writes q/k/v in head-major layout (1, heads, tile, dh) so the attention
    kernel needs no in-kernel reshape/transpose.
    """
    x = x_ref[0].astype(jnp.float32)                       # (tq, D)
    d = x.shape[-1]
    dh = d // heads
    xn = _layer_norm(x, g_ref[0], b_ref[0])
    qkv = jnp.dot(xn.astype(wqkv_ref.dtype), wqkv_ref[...],
                  preferred_element_type=jnp.float32) + bqkv_ref[0]   # (tq, 3D)
    for h in range(heads):                                 # static lane-slice split
        q_ref[0, h] = qkv[:, h * dh:(h + 1) * dh].astype(q_ref.dtype)
        k_ref[0, h] = qkv[:, d + h * dh:d + (h + 1) * dh].astype(k_ref.dtype)
        v_ref[0, h] = qkv[:, 2 * d + h * dh:2 * d + (h + 1) * dh].astype(v_ref.dtype)


def flash_attn_kernel(x_ref, q_ref, k_ref, v_ref, wo_ref, bo_ref, o_ref,
                      m_sc, l_sc, acc_sc, *, heads, tq, tk):
    """Online-softmax causal attention + fused output projection + residual."""
    qi = pl.program_id(1)
    ki = pl.program_id(2)
    dh = q_ref.shape[-1]
    scale = 1.0 / (dh ** 0.5)

    @pl.when(ki == 0)
    def _():
        m_sc[...] = jnp.full(m_sc.shape, -jnp.inf, m_sc.dtype)
        l_sc[...] = jnp.zeros(l_sc.shape, l_sc.dtype)
        acc_sc[...] = jnp.zeros(acc_sc.shape, acc_sc.dtype)

    # Skip kv tiles that lie entirely in the causal future of this query tile.
    @pl.when(ki * tk <= qi * tq + (tq - 1))
    def _():
        q = q_ref[0]                                       # (heads, tq, dh) bf16
        k = k_ref[0]                                       # (heads, tk, dh) bf16
        v = v_ref[0]                                       # (heads, tk, dh) bf16
        s = jnp.einsum('hqd,hkd->hqk', q, k,
                       preferred_element_type=jnp.float32) * scale    # f32
        row = qi * tq + jax.lax.broadcasted_iota(jnp.int32, (tq, tk), 0)
        col = ki * tk + jax.lax.broadcasted_iota(jnp.int32, (tq, tk), 1)
        s = jnp.where((row >= col)[None, :, :], s, NEG_INF)
        m_new = jnp.maximum(m_sc[...], jnp.max(s, axis=-1, keepdims=True))
        alpha = jnp.exp(m_sc[...] - m_new)
        p = jnp.exp(s - m_new)
        l_sc[...] = alpha * l_sc[...] + jnp.sum(p, axis=-1, keepdims=True)
        acc_sc[...] = alpha * acc_sc[...] + jnp.einsum(
            'hqk,hkd->hqd', p.astype(v.dtype), v,
            preferred_element_type=jnp.float32)
        m_sc[...] = m_new

    @pl.when(ki == pl.num_programs(2) - 1)
    def _():
        ctx = acc_sc[...] * pl.reciprocal(l_sc[...], approx=True)     # (h, tq, dh)
        ctx2d = jnp.concatenate([ctx[h] for h in range(heads)], axis=-1)  # (tq, D)
        out = jnp.dot(ctx2d.astype(wo_ref.dtype), wo_ref[...],
                      preferred_element_type=jnp.float32) + bo_ref[0]
        o_ref[0] = (x_ref[0].astype(jnp.float32) + out).astype(o_ref.dtype)


def ff_kernel(h_ref, g_ref, b_ref, w1_ref, b1_ref, w2_ref, b2_ref, o_ref):
    """Pre-norm ReLU feed-forward + residual on one (batch, seq-tile)."""
    h = h_ref[0].astype(jnp.float32)                       # (tq, D)
    hn = _layer_norm(h, g_ref[0], b_ref[0])
    f = jnp.dot(hn.astype(w1_ref.dtype), w1_ref[...],
                preferred_element_type=jnp.float32) + b1_ref[0]
    f = jnp.maximum(f, 0.0)
    f = jnp.dot(f.astype(w2_ref.dtype), w2_ref[...],
                preferred_element_type=jnp.float32) + b2_ref[0]
    o_ref[0] = (h + f).astype(o_ref.dtype)


# ----------------------------------------------------------------------------
# pallas_call plumbing
# ----------------------------------------------------------------------------
def transformer_layer(x, p, heads, tile):
    B, N, D = x.shape
    assert N % tile == 0 and D % heads == 0
    nq = N // tile
    dh = D // heads

    def const_spec(arr):
        zeros = (0,) * arr.ndim
        return pl.BlockSpec(arr.shape, lambda *_: zeros)

    seq_spec2 = pl.BlockSpec((1, tile, D), lambda b, i: (b, i, 0))
    qkv_out_spec = pl.BlockSpec((1, heads, tile, dh), lambda b, i: (b, 0, i, 0))
    xq_spec = pl.BlockSpec((1, tile, D), lambda b, i, j: (b, i, 0))
    qh_spec = pl.BlockSpec((1, heads, tile, dh), lambda b, i, j: (b, 0, i, 0))
    kvh_spec = pl.BlockSpec((1, heads, tile, dh), lambda b, i, j: (b, 0, j, 0))

    cp2 = pltpu.CompilerParams(dimension_semantics=("parallel", "parallel"),
                               vmem_limit_bytes=VMEM_LIMIT)
    cp3 = pltpu.CompilerParams(
        dimension_semantics=("parallel", "parallel", "arbitrary"),
        vmem_limit_bytes=VMEM_LIMIT)

    # 1) LayerNorm + fused QKV projection (bf16 MXU inputs, f32 accumulate)
    q, k, v = pl.pallas_call(
        functools.partial(qkv_kernel, heads=heads),
        grid=(B, nq),
        in_specs=[seq_spec2, const_spec(p['ln1_g']), const_spec(p['ln1_b']),
                  const_spec(p['wqkv']), const_spec(p['bqkv'])],
        out_specs=[qkv_out_spec, qkv_out_spec, qkv_out_spec],
        out_shape=[jax.ShapeDtypeStruct((B, heads, N, dh), jnp.bfloat16)] * 3,
        compiler_params=cp2,
    )(x, p['ln1_g'], p['ln1_b'], p['wqkv'], p['bqkv'])

    # 2) Flash-style causal attention + output projection + residual
    h1 = pl.pallas_call(
        functools.partial(flash_attn_kernel, heads=heads, tq=tile, tk=tile),
        grid=(B, nq, nq),
        in_specs=[xq_spec, qh_spec, kvh_spec, kvh_spec,
                  const_spec(p['wo']), const_spec(p['bo'])],
        out_specs=xq_spec,
        out_shape=jax.ShapeDtypeStruct((B, N, D), x.dtype),
        scratch_shapes=[pltpu.VMEM((heads, tile, 1), jnp.float32),
                        pltpu.VMEM((heads, tile, 1), jnp.float32),
                        pltpu.VMEM((heads, tile, dh), jnp.float32)],
        compiler_params=cp3,
    )(x, q, k, v, p['wo'], p['bo'])

    # 3) Feed-forward + residual on row tiles (ff intermediate is (tile, ff))
    out = pl.pallas_call(
        ff_kernel,
        grid=(B, nq),
        in_specs=[seq_spec2, const_spec(p['ln2_g']), const_spec(p['ln2_b']),
                  const_spec(p['w1']), const_spec(p['b1']),
                  const_spec(p['w2']), const_spec(p['b2'])],
        out_specs=seq_spec2,
        out_shape=jax.ShapeDtypeStruct((B, N, D), x.dtype),
        compiler_params=cp2,
    )(h1, p['ln2_g'], p['ln2_b'], p['w1'], p['b1'], p['w2'], p['b2'])
    return out


def transformer_stack(x, layer_params, heads, *, tile_target=TILE_TARGET):
    """Pads the sequence to a tile multiple once, runs the layers, crops back.

    Padded rows never leak into valid rows: the causal mask excludes padded key
    positions (col >= n > row), and LN / FF are row-wise.
    """
    if not layer_params:
        return x
    B, n, D = x.shape
    tile = min(tile_target, _round_up(n, 8))
    n_pad = _round_up(n, tile)
    if n_pad != n:
        x = jnp.pad(x, ((0, 0), (0, n_pad - n), (0, 0)))
    for p in layer_params:
        x = transformer_layer(x, p, heads, tile)
    if n_pad != n:
        x = x[:, :n]
    return x


# ----------------------------------------------------------------------------
# HourglassTransformer forward (naive up/down sample, causal=True, norm_out=False)
# ----------------------------------------------------------------------------
def hourglass_forward(x, params, *, shorten_factor, heads):
    s = shorten_factor
    B, n, D = x.shape

    # pre transformer
    x = transformer_stack(x, params['pre'], heads)

    # pad_to_multiple along the sequence dim (pad at the end)
    rem = (-n) % s
    if rem:
        x = jnp.pad(x, ((0, 0), (0, rem), (0, 0)))
    N = x.shape[1]
    x_residual = x

    # causal shift: F.pad(x, (0, 0, shift, -shift))
    shift = s - 1
    if shift:
        x = jnp.concatenate(
            [jnp.zeros((B, shift, D), x.dtype), x[:, :N - shift]], axis=1)

    # naive downsample (mean over groups of s) -- plain XLA (memory bound, fuses)
    down = jnp.mean(x.reshape(B, N // s, s, D), axis=2)

    # valley transformer
    v = transformer_stack(down, params['valley'], heads)

    # naive upsample (repeat) + residual -- plain XLA
    out = jnp.repeat(v, s, axis=1) + x_residual

    # crop back to original length
    out = out[:, :n]

    # post transformer
    out = transformer_stack(out, params['post'], heads)

    # norm_out=False -> nn.Identity()
    return out


# ----------------------------------------------------------------------------
# Deterministic parameter init (fused QKV / output projection, bf16 MXU weights)
# ----------------------------------------------------------------------------
def init_layer_params(key, D, heads, ff):
    assert D % heads == 0
    ks = jax.random.split(key, 4)
    sc = 0.05
    bf = jnp.bfloat16
    return {
        'ln1_g': jnp.ones((1, D), jnp.float32),
        'ln1_b': jnp.zeros((1, D), jnp.float32),
        'wqkv': (sc * jax.random.normal(ks[0], (D, 3 * D), jnp.float32)).astype(bf),
        'bqkv': jnp.zeros((1, 3 * D), jnp.float32),
        'wo': (sc * jax.random.normal(ks[1], (D, D), jnp.float32)).astype(bf),
        'bo': jnp.zeros((1, D), jnp.float32),
        'ln2_g': jnp.ones((1, D), jnp.float32),
        'ln2_b': jnp.zeros((1, D), jnp.float32),
        'w1': (sc * jax.random.normal(ks[2], (D, ff), jnp.float32)).astype(bf),
        'b1': jnp.zeros((1, ff), jnp.float32),
        'w2': (sc * jax.random.normal(ks[3], (ff, D), jnp.float32)).astype(bf),
        'b2': jnp.zeros((1, D), jnp.float32),
    }


def init_params(key, D, heads, ff, depth):
    pre_d, valley_d, post_d = depth
    keys = jax.random.split(key, pre_d + valley_d + post_d)
    it = iter(keys)
    return {
        'pre': [init_layer_params(next(it), D, heads, ff) for _ in range(pre_d)],
        'valley': [init_layer_params(next(it), D, heads, ff) for _ in range(valley_d)],
        'post': [init_layer_params(next(it), D, heads, ff) for _ in range(post_d)],
    }


# ----------------------------------------------------------------------------
if __name__ == "__main__":
    key = jax.random.PRNGKey(0)
    B, n, D = 2, 13, 128         # n not a multiple of s to exercise padding; D lane-dense
    HEADS = 4
    FF = 4 * D
    SHORTEN_FACTOR = 2
    DEPTH = (1, 1, 1)            # (pre, valley, post)

    kx, kp = jax.random.split(key)
    x = jax.random.normal(kx, (B, n, D), jnp.float32)
    params = init_params(kp, D, HEADS, FF, DEPTH)

    fwd = jax.jit(functools.partial(hourglass_forward,
                                    shorten_factor=SHORTEN_FACTOR, heads=HEADS))
    out = fwd(x, params)
    jax.block_until_ready(out)
    assert out.shape == (B, n, D), out.shape
    assert bool(jnp.all(jnp.isfinite(out)))
    print("KERNEL_OK")
</pallas_src>

<mosaic_0001>
module attributes {stable_mosaic.version = 11 : i64} {
  func.func @qkv_kernel(%arg0: i32, %arg1: i32, %arg2: memref<1x16x128xf32, #tpu.memory_space<vmem>>, %arg3: memref<1x128xf32, #tpu.memory_space<vmem>>, %arg4: memref<1x128xf32, #tpu.memory_space<vmem>>, %arg5: memref<128x384xbf16, #tpu.memory_space<vmem>>, %arg6: memref<1x384xf32, #tpu.memory_space<vmem>>, %arg7: memref<1x4x16x32xbf16, #tpu.memory_space<vmem>>, %arg8: memref<1x4x16x32xbf16, #tpu.memory_space<vmem>>, %arg9: memref<1x4x16x32xbf16, #tpu.memory_space<vmem>>) attributes {dimension_semantics = [#tpu.dimension_semantics<parallel>, #tpu.dimension_semantics<parallel>], iteration_bounds = array<i64: 2, 1>, scalar_prefetch = 0 : i64, scratch_operands = 0 : i64, tpu.core_type = #tpu.core_type<tc>, window_params = [{transform_indices = @transform_0, window_bounds = array<i64: 1, 16, 128>}, {pipeline_mode = #tpu.pipeline_mode<synchronous>, transform_indices = @transform_1, window_bounds = array<i64: 1, 128>}, {pipeline_mode = #tpu.pipeline_mode<synchronous>, transform_indices = @transform_2, window_bounds = array<i64: 1, 128>}, {pipeline_mode = #tpu.pipeline_mode<synchronous>, transform_indices = @transform_3, window_bounds = array<i64: 128, 384>}, {pipeline_mode = #tpu.pipeline_mode<synchronous>, transform_indices = @transform_4, window_bounds = array<i64: 1, 384>}, {transform_indices = @transform_5, window_bounds = array<i64: 1, 4, 16, 32>}, {transform_indices = @transform_6, window_bounds = array<i64: 1, 4, 16, 32>}, {transform_indices = @transform_7, window_bounds = array<i64: 1, 4, 16, 32>}]} {
    %c0 = arith.constant 0 : index
    %c0_0 = arith.constant 0 : index
    %c0_1 = arith.constant 0 : index
    %0 = vector.load %arg2[%c0, %c0_0, %c0_1] : memref<1x16x128xf32, #tpu.memory_space<vmem>>, vector<1x16x128xf32>
    %1 = vector.shape_cast %0 : vector<1x16x128xf32> to vector<16x128xf32>
    %c0_2 = arith.constant 0 : index
    %c0_3 = arith.constant 0 : index
    %2 = vector.load %arg3[%c0_2, %c0_3] : memref<1x128xf32, #tpu.memory_space<vmem>>, vector<1x128xf32>
    %3 = vector.shape_cast %2 : vector<1x128xf32> to vector<128xf32>
    %c0_4 = arith.constant 0 : index
    %c0_5 = arith.constant 0 : index
    %4 = vector.load %arg4[%c0_4, %c0_5] : memref<1x128xf32, #tpu.memory_space<vmem>>, vector<1x128xf32>
    %5 = vector.shape_cast %4 : vector<1x128xf32> to vector<128xf32>
    %cst = arith.constant dense<0.000000e+00> : vector<16xf32>
    %6 = vector.multi_reduction <add>, %1, %cst [1] : vector<16x128xf32> to vector<16xf32>
    %7 = vector.shape_cast %6 : vector<16xf32> to vector<16x1xf32>
    %cst_6 = arith.constant 1.280000e+02 : f32
    %8 = vector.broadcast %cst_6 : f32 to vector<16x1xf32>
    %9 = arith.divf %7, %8 : vector<16x1xf32>
    %10 = vector.broadcast %9 : vector<16x1xf32> to vector<16x128xf32>
    %11 = arith.subf %1, %10 : vector<16x128xf32>
    %12 = arith.mulf %11, %11 : vector<16x128xf32>
    %cst_7 = arith.constant dense<0.000000e+00> : vector<16xf32>
    %13 = vector.multi_reduction <add>, %12, %cst_7 [1] : vector<16x128xf32> to vector<16xf32>
    %14 = vector.shape_cast %13 : vector<16xf32> to vector<16x1xf32>
    %cst_8 = arith.constant 1.280000e+02 : f32
    %15 = vector.broadcast %cst_8 : f32 to vector<16x1xf32>
    %16 = arith.divf %14, %15 : vector<16x1xf32>
    %17 = vector.broadcast %9 : vector<16x1xf32> to vector<16x128xf32>
    %18 = arith.subf %1, %17 : vector<16x128xf32>
    %cst_9 = arith.constant 9.99999974E-6 : f32
    %19 = vector.broadcast %cst_9 : f32 to vector<16x1xf32>
    %20 = arith.addf %16, %19 : vector<16x1xf32>
    %21 = math.rsqrt %20 : vector<16x1xf32>
    %22 = vector.broadcast %21 : vector<16x1xf32> to vector<16x128xf32>
    %23 = arith.mulf %18, %22 : vector<16x128xf32>
    %24 = vector.shape_cast %3 : vector<128xf32> to vector<1x128xf32>
    %25 = vector.broadcast %24 : vector<1x128xf32> to vector<16x128xf32>
    %26 = arith.mulf %23, %25 : vector<16x128xf32>
    %27 = vector.shape_cast %5 : vector<128xf32> to vector<1x128xf32>
    %28 = vector.broadcast %27 : vector<1x128xf32> to vector<16x128xf32>
    %29 = arith.addf %26, %28 : vector<16x128xf32>
    %30 = arith.truncf %29 : vector<16x128xf32> to vector<16x128xbf16>
    %c0_10 = arith.constant 0 : index
    %c0_11 = arith.constant 0 : index
    %31 = vector.load %arg5[%c0_10, %c0_11] : memref<128x384xbf16, #tpu.memory_space<vmem>>, vector<128x384xbf16>
    %cst_12 = arith.constant dense<0.000000e+00> : vector<16x384xf32>
    %32 = tpu.matmul %30, %31, %cst_12 {dimension_numbers = #tpu.dot_dimension_numbers<[1], [0], [0], [1], [0, 0, 1, 1], [], []>} : vector<16x128xbf16>, vector<128x384xbf16>, vector<16x384xf32> -> vector<16x384xf32>
    %c0_13 = arith.constant 0 : index
    %c0_14 = arith.constant 0 : index
    %33 = vector.load %arg6[%c0_13, %c0_14] : memref<1x384xf32, #tpu.memory_space<vmem>>, vector<1x384xf32>
    %34 = vector.shape_cast %33 : vector<1x384xf32> to vector<384xf32>
    %35 = vector.shape_cast %34 : vector<384xf32> to vector<1x384xf32>
    %36 = vector.broadcast %35 : vector<1x384xf32> to vector<16x384xf32>
    %37 = arith.addf %32, %36 : vector<16x384xf32>
    %38 = vector.extract_strided_slice %37 {offsets = [0, 0], sizes = [16, 32], strides = [1, 1]} : vector<16x384xf32> to vector<16x32xf32>
    %39 = arith.truncf %38 : vector<16x32xf32> to vector<16x32xbf16>
    %c0_15 = arith.constant 0 : index
    %c0_16 = arith.constant 0 : index
    %c0_17 = arith.constant 0 : index
    %c0_18 = arith.constant 0 : index
    %40 = vector.load %arg7[%c0_15, %c0_16, %c0_17, %c0_18] : memref<1x4x16x32xbf16, #tpu.memory_space<vmem>>, vector<1x1x16x32xbf16>
    %41 = vector.shape_cast %40 : vector<1x1x16x32xbf16> to vector<16x32xbf16>
    %42 = vector.shape_cast %39 : vector<16x32xbf16> to vector<1x1x16x32xbf16>
    tpu.vector_store %arg7[%c0_15, %c0_16, %c0_17, %c0_18], %42 {strides = array<i32>} : memref<1x4x16x32xbf16, #tpu.memory_space<vmem>>, vector<1x1x16x32xbf16>,
    %43 = vector.extract_strided_slice %37 {offsets = [0, 128], sizes = [16, 32], strides = [1, 1]} : vector<16x384xf32> to vector<16x32xf32>
    %44 = arith.truncf %43 : vector<16x32xf32> to vector<16x32xbf16>
    %c0_19 = arith.constant 0 : index
    %c0_20 = arith.constant 0 : index
    %c0_21 = arith.constant 0 : index
    %c0_22 = arith.constant 0 : index
    %45 = vector.load %arg8[%c0_19, %c0_20, %c0_21, %c0_22] : memref<1x4x16x32xbf16, #tpu.memory_space<vmem>>, vector<1x1x16x32xbf16>
    %46 = vector.shape_cast %45 : vector<1x1x16x32xbf16> to vector<16x32xbf16>
    %47 = vector.shape_cast %44 : vector<16x32xbf16> to vector<1x1x16x32xbf16>
    tpu.vector_store %arg8[%c0_19, %c0_20, %c0_21, %c0_22], %47 {strides = array<i32>} : memref<1x4x16x32xbf16, #tpu.memory_space<vmem>>, vector<1x1x16x32xbf16>,
    %48 = vector.extract_strided_slice %37 {offsets = [0, 256], sizes = [16, 32], strides = [1, 1]} : vector<16x384xf32> to vector<16x32xf32>
    %49 = arith.truncf %48 : vector<16x32xf32> to vector<16x32xbf16>
    %c0_23 = arith.constant 0 : index
    %c0_24 = arith.constant 0 : index
    %c0_25 = arith.constant 0 : index
    %c0_26 = arith.constant 0 : index
    %50 = vector.load %arg9[%c0_23, %c0_24, %c0_25, %c0_26] : memref<1x4x16x32xbf16, #tpu.memory_space<vmem>>, vector<1x1x16x32xbf16>
    %51 = vector.shape_cast %50 : vector<1x1x16x32xbf16> to vector<16x32xbf16>
    %52 = vector.shape_cast %49 : vector<16x32xbf16> to vector<1x1x16x32xbf16>
    tpu.vector_store %arg9[%c0_23, %c0_24, %c0_25, %c0_26], %52 {strides = array<i32>} : memref<1x4x16x32xbf16, #tpu.memory_space<vmem>>, vector<1x1x16x32xbf16>,
    %53 = vector.extract_strided_slice %37 {offsets = [0, 32], sizes = [16, 32], strides = [1, 1]} : vector<16x384xf32> to vector<16x32xf32>
    %54 = arith.truncf %53 : vector<16x32xf32> to vector<16x32xbf16>
    %c0_27 = arith.constant 0 : index
    %c1 = arith.constant 1 : index
    %c0_28 = arith.constant 0 : index
    %c0_29 = arith.constant 0 : index
    %55 = vector.load %arg7[%c0_27, %c1, %c0_28, %c0_29] : memref<1x4x16x32xbf16, #tpu.memory_space<vmem>>, vector<1x1x16x32xbf16>
    %56 = vector.shape_cast %55 : vector<1x1x16x32xbf16> to vector<16x32xbf16>
    %57 = vector.shape_cast %54 : vector<16x32xbf16> to vector<1x1x16x32xbf16>
    tpu.vector_store %arg7[%c0_27, %c1, %c0_28, %c0_29], %57 {strides = array<i32>} : memref<1x4x16x32xbf16, #tpu.memory_space<vmem>>, vector<1x1x16x32xbf16>,
    %58 = vector.extract_strided_slice %37 {offsets = [0, 160], sizes = [16, 32], strides = [1, 1]} : vector<16x384xf32> to vector<16x32xf32>
    %59 = arith.truncf %58 : vector<16x32xf32> to vector<16x32xbf16>
    %c0_30 = arith.constant 0 : index
    %c1_31 = arith.constant 1 : index
    %c0_32 = arith.constant 0 : index
    %c0_33 = arith.constant 0 : index
    %60 = vector.load %arg8[%c0_30, %c1_31, %c0_32, %c0_33] : memref<1x4x16x32xbf16, #tpu.memory_space<vmem>>, vector<1x1x16x32xbf16>
    %61 = vector.shape_cast %60 : vector<1x1x16x32xbf16> to vector<16x32xbf16>
    %62 = vector.shape_cast %59 : vector<16x32xbf16> to vector<1x1x16x32xbf16>
    tpu.vector_store %arg8[%c0_30, %c1_31, %c0_32, %c0_33], %62 {strides = array<i32>} : memref<1x4x16x32xbf16, #tpu.memory_space<vmem>>, vector<1x1x16x32xbf16>,
    %63 = vector.extract_strided_slice %37 {offsets = [0, 288], sizes = [16, 32], strides = [1, 1]} : vector<16x384xf32> to vector<16x32xf32>
    %64 = arith.truncf %63 : vector<16x32xf32> to vector<16x32xbf16>
    %c0_34 = arith.constant 0 : index
    %c1_35 = arith.constant 1 : index
    %c0_36 = arith.constant 0 : index
    %c0_37 = arith.constant 0 : index
    %65 = vector.load %arg9[%c0_34, %c1_35, %c0_36, %c0_37] : memref<1x4x16x32xbf16, #tpu.memory_space<vmem>>, vector<1x1x16x32xbf16>
    %66 = vector.shape_cast %65 : vector<1x1x16x32xbf16> to vector<16x32xbf16>
    %67 = vector.shape_cast %64 : vector<16x32xbf16> to vector<1x1x16x32xbf16>
    tpu.vector_store %arg9[%c0_34, %c1_35, %c0_36, %c0_37], %67 {strides = array<i32>} : memref<1x4x16x32xbf16, #tpu.memory_space<vmem>>, vector<1x1x16x32xbf16>,
    %68 = vector.extract_strided_slice %37 {offsets = [0, 64], sizes = [16, 32], strides = [1, 1]} : vector<16x384xf32> to vector<16x32xf32>
    %69 = arith.truncf %68 : vector<16x32xf32> to vector<16x32xbf16>
    %c0_38 = arith.constant 0 : index
    %c2 = arith.constant 2 : index
    %c0_39 = arith.constant 0 : index
    %c0_40 = arith.constant 0 : index
    %70 = vector.load %arg7[%c0_38, %c2, %c0_39, %c0_40] : memref<1x4x16x32xbf16, #tpu.memory_space<vmem>>, vector<1x1x16x32xbf16>
    %71 = vector.shape_cast %70 : vector<1x1x16x32xbf16> to vector<16x32xbf16>
    %72 = vector.shape_cast %69 : vector<16x32xbf16> to vector<1x1x16x32xbf16>
    tpu.vector_store %arg7[%c0_38, %c2, %c0_39, %c0_40], %72 {strides = array<i32>} : memref<1x4x16x32xbf16, #tpu.memory_space<vmem>>, vector<1x1x16x32xbf16>,
    %73 = vector.extract_strided_slice %37 {offsets = [0, 192], sizes = [16, 32], strides = [1, 1]} : vector<16x384xf32> to vector<16x32xf32>
    %74 = arith.truncf %73 : vector<16x32xf32> to vector<16x32xbf16>
    %c0_41 = arith.constant 0 : index
    %c2_42 = arith.constant 2 : index
    %c0_43 = arith.constant 0 : index
    %c0_44 = arith.constant 0 : index
    %75 = vector.load %arg8[%c0_41, %c2_42, %c0_43, %c0_44] : memref<1x4x16x32xbf16, #tpu.memory_space<vmem>>, vector<1x1x16x32xbf16>
    %76 = vector.shape_cast %75 : vector<1x1x16x32xbf16> to vector<16x32xbf16>
    %77 = vector.shape_cast %74 : vector<16x32xbf16> to vector<1x1x16x32xbf16>
    tpu.vector_store %arg8[%c0_41, %c2_42, %c0_43, %c0_44], %77 {strides = array<i32>} : memref<1x4x16x32xbf16, #tpu.memory_space<vmem>>, vector<1x1x16x32xbf16>,
    %78 = vector.extract_strided_slice %37 {offsets = [0, 320], sizes = [16, 32], strides = [1, 1]} : vector<16x384xf32> to vector<16x32xf32>
    %79 = arith.truncf %78 : vector<16x32xf32> to vector<16x32xbf16>
    %c0_45 = arith.constant 0 : index
    %c2_46 = arith.constant 2 : index
    %c0_47 = arith.constant 0 : index
    %c0_48 = arith.constant 0 : index
    %80 = vector.load %arg9[%c0_45, %c2_46, %c0_47, %c0_48] : memref<1x4x16x32xbf16, #tpu.memory_space<vmem>>, vector<1x1x16x32xbf16>
    %81 = vector.shape_cast %80 : vector<1x1x16x32xbf16> to vector<16x32xbf16>
    %82 = vector.shape_cast %79 : vector<16x32xbf16> to vector<1x1x16x32xbf16>
    tpu.vector_store %arg9[%c0_45, %c2_46, %c0_47, %c0_48], %82 {strides = array<i32>} : memref<1x4x16x32xbf16, #tpu.memory_space<vmem>>, vector<1x1x16x32xbf16>,
    %83 = vector.extract_strided_slice %37 {offsets = [0, 96], sizes = [16, 32], strides = [1, 1]} : vector<16x384xf32> to vector<16x32xf32>
    %84 = arith.truncf %83 : vector<16x32xf32> to vector<16x32xbf16>
    %c0_49 = arith.constant 0 : index
    %c3 = arith.constant 3 : index
    %c0_50 = arith.constant 0 : index
    %c0_51 = arith.constant 0 : index
    %85 = vector.load %arg7[%c0_49, %c3, %c0_50, %c0_51] : memref<1x4x16x32xbf16, #tpu.memory_space<vmem>>, vector<1x1x16x32xbf16>
    %86 = vector.shape_cast %85 : vector<1x1x16x32xbf16> to vector<16x32xbf16>
    %87 = vector.shape_cast %84 : vector<16x32xbf16> to vector<1x1x16x32xbf16>
    tpu.vector_store %arg7[%c0_49, %c3, %c0_50, %c0_51], %87 {strides = array<i32>} : memref<1x4x16x32xbf16, #tpu.memory_space<vmem>>, vector<1x1x16x32xbf16>,
    %88 = vector.extract_strided_slice %37 {offsets = [0, 224], sizes = [16, 32], strides = [1, 1]} : vector<16x384xf32> to vector<16x32xf32>
    %89 = arith.truncf %88 : vector<16x32xf32> to vector<16x32xbf16>
    %c0_52 = arith.constant 0 : index
    %c3_53 = arith.constant 3 : index
    %c0_54 = arith.constant 0 : index
    %c0_55 = arith.constant 0 : index
    %90 = vector.load %arg8[%c0_52, %c3_53, %c0_54, %c0_55] : memref<1x4x16x32xbf16, #tpu.memory_space<vmem>>, vector<1x1x16x32xbf16>
    %91 = vector.shape_cast %90 : vector<1x1x16x32xbf16> to vector<16x32xbf16>
    %92 = vector.shape_cast %89 : vector<16x32xbf16> to vector<1x1x16x32xbf16>
    tpu.vector_store %arg8[%c0_52, %c3_53, %c0_54, %c0_55], %92 {strides = array<i32>} : memref<1x4x16x32xbf16, #tpu.memory_space<vmem>>, vector<1x1x16x32xbf16>,
    %93 = vector.extract_strided_slice %37 {offsets = [0, 352], sizes = [16, 32], strides = [1, 1]} : vector<16x384xf32> to vector<16x32xf32>
    %94 = arith.truncf %93 : vector<16x32xf32> to vector<16x32xbf16>
    %c0_56 = arith.constant 0 : index
    %c3_57 = arith.constant 3 : index
    %c0_58 = arith.constant 0 : index
    %c0_59 = arith.constant 0 : index
    %95 = vector.load %arg9[%c0_56, %c3_57, %c0_58, %c0_59] : memref<1x4x16x32xbf16, #tpu.memory_space<vmem>>, vector<1x1x16x32xbf16>
    %96 = vector.shape_cast %95 : vector<1x1x16x32xbf16> to vector<16x32xbf16>
    %97 = vector.shape_cast %94 : vector<16x32xbf16> to vector<1x1x16x32xbf16>
    tpu.vector_store %arg9[%c0_56, %c3_57, %c0_58, %c0_59], %97 {strides = array<i32>} : memref<1x4x16x32xbf16, #tpu.memory_space<vmem>>, vector<1x1x16x32xbf16>,
    return
  }
  func.func @transform_0(%arg0: i32, %arg1: i32) -> (i32, i32, i32) {
    %c0_i32 = arith.constant 0 : i32
    %c0_i32_0 = arith.constant 0 : i32
    return %arg0, %arg1, %c0_i32 : i32, i32, i32
  }
  func.func @transform_1(%arg0: i32, %arg1: i32) -> (i32, i32) {
    %c0_i32 = arith.constant 0 : i32
    %c0_i32_0 = arith.constant 0 : i32
    %c0_i32_1 = arith.constant 0 : i32
    return %c0_i32, %c0_i32_0 : i32, i32
  }
  func.func @transform_2(%arg0: i32, %arg1: i32) -> (i32, i32) {
    %c0_i32 = arith.constant 0 : i32
    %c0_i32_0 = arith.constant 0 : i32
    %c0_i32_1 = arith.constant 0 : i32
    return %c0_i32, %c0_i32_0 : i32, i32
  }
  func.func @transform_3(%arg0: i32, %arg1: i32) -> (i32, i32) {
    %c0_i32 = arith.constant 0 : i32
    %c0_i32_0 = arith.constant 0 : i32
    %c0_i32_1 = arith.constant 0 : i32
    return %c0_i32, %c0_i32_0 : i32, i32
  }
  func.func @transform_4(%arg0: i32, %arg1: i32) -> (i32, i32) {
    %c0_i32 = arith.constant 0 : i32
    %c0_i32_0 = arith.constant 0 : i32
    %c0_i32_1 = arith.constant 0 : i32
    return %c0_i32, %c0_i32_0 : i32, i32
  }
  func.func @transform_5(%arg0: i32, %arg1: i32) -> (i32, i32, i32, i32) {
    %c0_i32 = arith.constant 0 : i32
    %c0_i32_0 = arith.constant 0 : i32
    %c0_i32_1 = arith.constant 0 : i32
    return %arg0, %c0_i32, %arg1, %c0_i32_0 : i32, i32, i32, i32
  }
  func.func @transform_6(%arg0: i32, %arg1: i32) -> (i32, i32, i32, i32) {
    %c0_i32 = arith.constant 0 : i32
    %c0_i32_0 = arith.constant 0 : i32
    %c0_i32_1 = arith.constant 0 : i32
    return %arg0, %c0_i32, %arg1, %c0_i32_0 : i32, i32, i32, i32
  }
  func.func @transform_7(%arg0: i32, %arg1: i32) -> (i32, i32, i32, i32) {
    %c0_i32 = arith.constant 0 : i32
    %c0_i32_0 = arith.constant 0 : i32
    %c0_i32_1 = arith.constant 0 : i32
    return %arg0, %c0_i32, %arg1, %c0_i32_0 : i32, i32, i32, i32
  }
}

module attributes {stable_mosaic.version = 11 : i64} {
  func.func @flash_attn_kernel(%arg0: i32, %arg1: i32, %arg2: i32, %arg3: memref<1x16x128xf32, #tpu.memory_space<vmem>>, %arg4: memref<1x4x16x32xbf16, #tpu.memory_space<vmem>>, %arg5: memref<1x4x16x32xbf16, #tpu.memory_space<vmem>>, %arg6: memref<1x4x16x32xbf16, #tpu.memory_space<vmem>>, %arg7: memref<128x128xbf16, #tpu.memory_space<vmem>>, %arg8: memref<1x128xf32, #tpu.memory_space<vmem>>, %arg9: memref<1x16x128xf32, #tpu.memory_space<vmem>>, %arg10: memref<4x16x1xf32, #tpu.memory_space<vmem>>, %arg11: memref<4x16x1xf32, #tpu.memory_space<vmem>>, %arg12: memref<4x16x32xf32, #tpu.memory_space<vmem>>) attributes {dimension_semantics = [#tpu.dimension_semantics<parallel>, #tpu.dimension_semantics<parallel>, #tpu.dimension_semantics<arbitrary>], iteration_bounds = array<i64: 2, 1, 1>, scalar_prefetch = 0 : i64, scratch_operands = 3 : i64, tpu.core_type = #tpu.core_type<tc>, window_params = [{transform_indices = @transform_0, window_bounds = array<i64: 1, 16, 128>}, {transform_indices = @transform_1, window_bounds = array<i64: 1, 4, 16, 32>}, {transform_indices = @transform_2, window_bounds = array<i64: 1, 4, 16, 32>}, {transform_indices = @transform_3, window_bounds = array<i64: 1, 4, 16, 32>}, {pipeline_mode = #tpu.pipeline_mode<synchronous>, transform_indices = @transform_4, window_bounds = array<i64: 128, 128>}, {pipeline_mode = #tpu.pipeline_mode<synchronous>, transform_indices = @transform_5, window_bounds = array<i64: 1, 128>}, {transform_indices = @transform_6, window_bounds = array<i64: 1, 16, 128>}]} {
    %c0_i32 = arith.constant 0 : i32
    %0 = arith.cmpi eq, %arg2, %c0_i32 : i32
    %1 = arith.extui %0 : i1 to i32
    %c0_i32_0 = arith.constant 0 : i32
    %2 = arith.cmpi ne, %1, %c0_i32_0 : i32
    scf.if %2 {
      %cst = arith.constant 0xFF800000 : f32
      %12 = vector.broadcast %cst : f32 to vector<4x16x1xf32>
      %c0 = arith.constant 0 : index
      %c0_5 = arith.constant 0 : index
      %c0_6 = arith.constant 0 : index
      %13 = vector.load %arg10[%c0, %c0_5, %c0_6] : memref<4x16x1xf32, #tpu.memory_space<vmem>>, vector<4x16x1xf32>
      tpu.vector_store %arg10[%c0, %c0_5, %c0_6], %12 {strides = array<i32>} : memref<4x16x1xf32, #tpu.memory_space<vmem>>, vector<4x16x1xf32>,
      %cst_7 = arith.constant 0.000000e+00 : f32
      %14 = vector.broadcast %cst_7 : f32 to vector<4x16x1xf32>
      %c0_8 = arith.constant 0 : index
      %c0_9 = arith.constant 0 : index
      %c0_10 = arith.constant 0 : index
      %15 = vector.load %arg11[%c0_8, %c0_9, %c0_10] : memref<4x16x1xf32, #tpu.memory_space<vmem>>, vector<4x16x1xf32>
      tpu.vector_store %arg11[%c0_8, %c0_9, %c0_10], %14 {strides = array<i32>} : memref<4x16x1xf32, #tpu.memory_space<vmem>>, vector<4x16x1xf32>,
      %cst_11 = arith.constant 0.000000e+00 : f32
      %16 = vector.broadcast %cst_11 : f32 to vector<4x16x32xf32>
      %c0_12 = arith.constant 0 : index
      %c0_13 = arith.constant 0 : index
      %c0_14 = arith.constant 0 : index
      %17 = vector.load %arg12[%c0_12, %c0_13, %c0_14] : memref<4x16x32xf32, #tpu.memory_space<vmem>>, vector<4x16x32xf32>
      tpu.vector_store %arg12[%c0_12, %c0_13, %c0_14], %16 {strides = array<i32>} : memref<4x16x32xf32, #tpu.memory_space<vmem>>, vector<4x16x32xf32>,
    } else {
    }
    %c16_i32 = arith.constant 16 : i32
    %3 = arith.muli %arg2, %c16_i32 : i32
    %c16_i32_1 = arith.constant 16 : i32
    %4 = arith.muli %arg1, %c16_i32_1 : i32
    %c15_i32 = arith.constant 15 : i32
    %5 = arith.addi %4, %c15_i32 : i32
    %6 = arith.cmpi sle, %3, %5 : i32
    %7 = arith.extui %6 : i1 to i32
    %c0_i32_2 = arith.constant 0 : i32
    %8 = arith.cmpi ne, %7, %c0_i32_2 : i32
    scf.if %8 {
      %c0 = arith.constant 0 : index
      %c0_5 = arith.constant 0 : index
      %c0_6 = arith.constant 0 : index
      %c0_7 = arith.constant 0 : index
      %12 = vector.load %arg4[%c0, %c0_5, %c0_6, %c0_7] : memref<1x4x16x32xbf16, #tpu.memory_space<vmem>>, vector<1x4x16x32xbf16>
      %13 = vector.shape_cast %12 : vector<1x4x16x32xbf16> to vector<4x16x32xbf16>
      %c0_8 = arith.constant 0 : index
      %c0_9 = arith.constant 0 : index
      %c0_10 = arith.constant 0 : index
      %c0_11 = arith.constant 0 : index
      %14 = vector.load %arg5[%c0_8, %c0_9, %c0_10, %c0_11] : memref<1x4x16x32xbf16, #tpu.memory_space<vmem>>, vector<1x4x16x32xbf16>
      %15 = vector.shape_cast %14 : vector<1x4x16x32xbf16> to vector<4x16x32xbf16>
      %c0_12 = arith.constant 0 : index
      %c0_13 = arith.constant 0 : index
      %c0_14 = arith.constant 0 : index
      %c0_15 = arith.constant 0 : index
      %16 = vector.load %arg6[%c0_12, %c0_13, %c0_14, %c0_15] : memref<1x4x16x32xbf16, #tpu.memory_space<vmem>>, vector<1x4x16x32xbf16>
      %17 = vector.shape_cast %16 : vector<1x4x16x32xbf16> to vector<4x16x32xbf16>
      "tpu.trace_start"() <{level = 10 : i32, message = "hqd,hkd->hqk"}> : () -> ()
      %cst = arith.constant dense<0.000000e+00> : vector<4x16x16xf32>
      %18 = tpu.matmul %13, %15, %cst {dimension_numbers = #tpu.dot_dimension_numbers<[2], [2], [1], [1], [0, 0, 0, 1, 1, 1], [0], [0]>} : vector<4x16x32xbf16>, vector<4x16x32xbf16>, vector<4x16x16xf32> -> vector<4x16x16xf32>
      "tpu.trace_stop"() : () -> ()
      %cst_16 = arith.constant 0.176776692 : f32
      %19 = vector.broadcast %cst_16 : f32 to vector<4x16x16xf32>
      %20 = arith.mulf %18, %19 : vector<4x16x16xf32>
      %c16_i32_17 = arith.constant 16 : i32
      %21 = arith.muli %arg1, %c16_i32_17 : i32
      %22 = tpu.iota {dimensions = array<i32: 0>} : vector<16x16xi32>
      %23 = vector.broadcast %21 : i32 to vector<16x16xi32>
      %24 = arith.addi %23, %22 : vector<16x16xi32>
      %c16_i32_18 = arith.constant 16 : i32
      %25 = arith.muli %arg2, %c16_i32_18 : i32
      %26 = tpu.iota {dimensions = array<i32: 1>} : vector<16x16xi32>
      %27 = vector.broadcast %25 : i32 to vector<16x16xi32>
      %28 = arith.addi %27, %26 : vector<16x16xi32>
      %29 = arith.cmpi sge, %24, %28 : vector<16x16xi32>
      %30 = vector.shape_cast %29 : vector<16x16xi1> to vector<1x16x16xi1>
      %cst_19 = arith.constant -1.000000e+30 : f32
      %31 = vector.shape_cast %30 : vector<1x16x16xi1> to vector<1x16x16xi1>
      %32 = vector.broadcast %31 : vector<1x16x16xi1> to vector<4x16x16xi1>
      %33 = vector.broadcast %cst_19 : f32 to vector<4x16x16xf32>
      %34 = arith.select %32, %20, %33 : vector<4x16x16xi1>, vector<4x16x16xf32>
      %c0_20 = arith.constant 0 : index
      %c0_21 = arith.constant 0 : index
      %c0_22 = arith.constant 0 : index
      %35 = vector.load %arg10[%c0_20, %c0_21, %c0_22] : memref<4x16x1xf32, #tpu.memory_space<vmem>>, vector<4x16x1xf32>
      %cst_23 = arith.constant dense<0xFF800000> : vector<4x16xf32>
      %36 = vector.multi_reduction <maximumf>, %34, %cst_23 [2] : vector<4x16x16xf32> to vector<4x16xf32>
      %37 = vector.shape_cast %36 : vector<4x16xf32> to vector<4x16x1xf32>
      %38 = arith.maximumf %35, %37 : vector<4x16x1xf32>
      %c0_24 = arith.constant 0 : index
      %c0_25 = arith.constant 0 : index
      %c0_26 = arith.constant 0 : index
      %39 = vector.load %arg10[%c0_24, %c0_25, %c0_26] : memref<4x16x1xf32, #tpu.memory_space<vmem>>, vector<4x16x1xf32>
      %40 = arith.subf %39, %38 : vector<4x16x1xf32>
      %41 = math.exp %40 : vector<4x16x1xf32>
      %42 = vector.broadcast %38 : vector<4x16x1xf32> to vector<4x16x16xf32>
      %43 = arith.subf %34, %42 : vector<4x16x16xf32>
      %44 = math.exp %43 : vector<4x16x16xf32>
      %c0_27 = arith.constant 0 : index
      %c0_28 = arith.constant 0 : index
      %c0_29 = arith.constant 0 : index
      %45 = vector.load %arg11[%c0_27, %c0_28, %c0_29] : memref<4x16x1xf32, #tpu.memory_space<vmem>>, vector<4x16x1xf32>
      %46 = arith.mulf %41, %45 : vector<4x16x1xf32>
      %cst_30 = arith.constant dense<0.000000e+00> : vector<4x16xf32>
      %47 = vector.multi_reduction <add>, %44, %cst_30 [2] : vector<4x16x16xf32> to vector<4x16xf32>
      %48 = vector.shape_cast %47 : vector<4x16xf32> to vector<4x16x1xf32>
      %49 = arith.addf %46, %48 : vector<4x16x1xf32>
      %c0_31 = arith.constant 0 : index
      %c0_32 = arith.constant 0 : index
      %c0_33 = arith.constant 0 : index
      %50 = vector.load %arg11[%c0_31, %c0_32, %c0_33] : memref<4x16x1xf32, #tpu.memory_space<vmem>>, vector<4x16x1xf32>
      tpu.vector_store %arg11[%c0_31, %c0_32, %c0_33], %49 {strides = array<i32>} : memref<4x16x1xf32, #tpu.memory_space<vmem>>, vector<4x16x1xf32>,
      %c0_34 = arith.constant 0 : index
      %c0_35 = arith.constant 0 : index
      %c0_36 = arith.constant 0 : index
      %51 = vector.load %arg12[%c0_34, %c0_35, %c0_36] : memref<4x16x32xf32, #tpu.memory_space<vmem>>, vector<4x16x32xf32>
      %52 = vector.broadcast %41 : vector<4x16x1xf32> to vector<4x16x32xf32>
      %53 = arith.mulf %52, %51 : vector<4x16x32xf32>
      %54 = arith.truncf %44 : vector<4x16x16xf32> to vector<4x16x16xbf16>
      "tpu.trace_start"() <{level = 10 : i32, message = "hqk,hkd->hqd"}> : () -> ()
      %cst_37 = arith.constant dense<0.000000e+00> : vector<4x16x32xf32>
      %55 = tpu.matmul %54, %17, %cst_37 {dimension_numbers = #tpu.dot_dimension_numbers<[2], [1], [1], [2], [0, 0, 0, 1, 1, 2], [0], [0]>} : vector<4x16x16xbf16>, vector<4x16x32xbf16>, vector<4x16x32xf32> -> vector<4x16x32xf32>
      "tpu.trace_stop"() : () -> ()
      %56 = arith.addf %53, %55 : vector<4x16x32xf32>
      %c0_38 = arith.constant 0 : index
      %c0_39 = arith.constant 0 : index
      %c0_40 = arith.constant 0 : index
      %57 = vector.load %arg12[%c0_38, %c0_39, %c0_40] : memref<4x16x32xf32, #tpu.memory_space<vmem>>, vector<4x16x32xf32>
      tpu.vector_store %arg12[%c0_38, %c0_39, %c0_40], %56 {strides = array<i32>} : memref<4x16x32xf32, #tpu.memory_space<vmem>>, vector<4x16x32xf32>,
      %c0_41 = arith.constant 0 : index
      %c0_42 = arith.constant 0 : index
      %c0_43 = arith.constant 0 : index
      %58 = vector.load %arg10[%c0_41, %c0_42, %c0_43] : memref<4x16x1xf32, #tpu.memory_space<vmem>>, vector<4x16x1xf32>
      tpu.vector_store %arg10[%c0_41, %c0_42, %c0_43], %38 {strides = array<i32>} : memref<4x16x1xf32, #tpu.memory_space<vmem>>, vector<4x16x1xf32>,
    } else {
    }
    %c0_i32_3 = arith.constant 0 : i32
    %9 = arith.cmpi eq, %arg2, %c0_i32_3 : i32
    %10 = arith.extui %9 : i1 to i32
    %c0_i32_4 = arith.constant 0 : i32
    %11 = arith.cmpi ne, %10, %c0_i32_4 : i32
    scf.if %11 {
      %c0 = arith.constant 0 : index
      %c0_5 = arith.constant 0 : index
      %c0_6 = arith.constant 0 : index
      %12 = vector.load %arg12[%c0, %c0_5, %c0_6] : memref<4x16x32xf32, #tpu.memory_space<vmem>>, vector<4x16x32xf32>
      %c0_7 = arith.constant 0 : index
      %c0_8 = arith.constant 0 : index
      %c0_9 = arith.constant 0 : index
      %13 = vector.load %arg11[%c0_7, %c0_8, %c0_9] : memref<4x16x1xf32, #tpu.memory_space<vmem>>, vector<4x16x1xf32>
      %14 = tpu.reciprocal %13 {approx = true} : vector<4x16x1xf32> -> vector<4x16x1xf32>
      %15 = vector.broadcast %14 : vector<4x16x1xf32> to vector<4x16x32xf32>
      %16 = arith.mulf %12, %15 : vector<4x16x32xf32>
      %17 = vector.extract_strided_slice %16 {offsets = [0, 0, 0], sizes = [1, 16, 32], strides = [1, 1, 1]} : vector<4x16x32xf32> to vector<1x16x32xf32>
      %18 = vector.shape_cast %17 : vector<1x16x32xf32> to vector<16x32xf32>
      %19 = vector.extract_strided_slice %16 {offsets = [1, 0, 0], sizes = [1, 16, 32], strides = [1, 1, 1]} : vector<4x16x32xf32> to vector<1x16x32xf32>
      %20 = vector.shape_cast %19 : vector<1x16x32xf32> to vector<16x32xf32>
      %21 = vector.extract_strided_slice %16 {offsets = [2, 0, 0], sizes = [1, 16, 32], strides = [1, 1, 1]} : vector<4x16x32xf32> to vector<1x16x32xf32>
      %22 = vector.shape_cast %21 : vector<1x16x32xf32> to vector<16x32xf32>
      %23 = vector.extract_strided_slice %16 {offsets = [3, 0, 0], sizes = [1, 16, 32], strides = [1, 1, 1]} : vector<4x16x32xf32> to vector<1x16x32xf32>
      %24 = vector.shape_cast %23 : vector<1x16x32xf32> to vector<16x32xf32>
      %25 = tpu.concatenate %18, %20, %22, %24 in 1 : vector<16x32xf32>, vector<16x32xf32>, vector<16x32xf32>, vector<16x32xf32> -> vector<16x128xf32>
      %26 = arith.truncf %25 : vector<16x128xf32> to vector<16x128xbf16>
      %c0_10 = arith.constant 0 : index
      %c0_11 = arith.constant 0 : index
      %27 = vector.load %arg7[%c0_10, %c0_11] : memref<128x128xbf16, #tpu.memory_space<vmem>>, vector<128x128xbf16>
      %cst = arith.constant dense<0.000000e+00> : vector<16x128xf32>
      %28 = tpu.matmul %26, %27, %cst {dimension_numbers = #tpu.dot_dimension_numbers<[1], [0], [0], [1], [0, 0, 1, 1], [], []>} : vector<16x128xbf16>, vector<128x128xbf16>, vector<16x128xf32> -> vector<16x128xf32>
      %c0_12 = arith.constant 0 : index
      %c0_13 = arith.constant 0 : index
      %29 = vector.load %arg8[%c0_12, %c0_13] : memref<1x128xf32, #tpu.memory_space<vmem>>, vector<1x128xf32>
      %30 = vector.shape_cast %29 : vector<1x128xf32> to vector<128xf32>
      %31 = vector.shape_cast %30 : vector<128xf32> to vector<1x128xf32>
      %32 = vector.broadcast %31 : vector<1x128xf32> to vector<16x128xf32>
      %33 = arith.addf %28, %32 : vector<16x128xf32>
      %c0_14 = arith.constant 0 : index
      %c0_15 = arith.constant 0 : index
      %c0_16 = arith.constant 0 : index
      %34 = vector.load %arg3[%c0_14, %c0_15, %c0_16] : memref<1x16x128xf32, #tpu.memory_space<vmem>>, vector<1x16x128xf32>
      %35 = vector.shape_cast %34 : vector<1x16x128xf32> to vector<16x128xf32>
      %36 = arith.addf %35, %33 : vector<16x128xf32>
      %c0_17 = arith.constant 0 : index
      %c0_18 = arith.constant 0 : index
      %c0_19 = arith.constant 0 : index
      %37 = vector.load %arg9[%c0_17, %c0_18, %c0_19] : memref<1x16x128xf32, #tpu.memory_space<vmem>>, vector<1x16x128xf32>
      %38 = vector.shape_cast %37 : vector<1x16x128xf32> to vector<16x128xf32>
      %39 = vector.shape_cast %36 : vector<16x128xf32> to vector<1x16x128xf32>
      tpu.vector_store %arg9[%c0_17, %c0_18, %c0_19], %39 {strides = array<i32>} : memref<1x16x128xf32, #tpu.memory_space<vmem>>, vector<1x16x128xf32>,
    } else {
    }
    return
  }
  func.func @transform_0(%arg0: i32, %arg1: i32, %arg2: i32) -> (i32, i32, i32) {
    %c0_i32 = arith.constant 0 : i32
    %c0_i32_0 = arith.constant 0 : i32
    return %arg0, %arg1, %c0_i32 : i32, i32, i32
  }
  func.func @transform_1(%arg0: i32, %arg1: i32, %arg2: i32) -> (i32, i32, i32, i32) {
    %c0_i32 = arith.constant 0 : i32
    %c0_i32_0 = arith.constant 0 : i32
    %c0_i32_1 = arith.constant 0 : i32
    return %arg0, %c0_i32, %arg1, %c0_i32_0 : i32, i32, i32, i32
  }
  func.func @transform_2(%arg0: i32, %arg1: i32, %arg2: i32) -> (i32, i32, i32, i32) {
    %c0_i32 = arith.constant 0 : i32
    %c0_i32_0 = arith.constant 0 : i32
    %c0_i32_1 = arith.constant 0 : i32
    return %arg0, %c0_i32, %arg2, %c0_i32_0 : i32, i32, i32, i32
  }
  func.func @transform_3(%arg0: i32, %arg1: i32, %arg2: i32) -> (i32, i32, i32, i32) {
    %c0_i32 = arith.constant 0 : i32
    %c0_i32_0 = arith.constant 0 : i32
    %c0_i32_1 = arith.constant 0 : i32
    return %arg0, %c0_i32, %arg2, %c0_i32_0 : i32, i32, i32, i32
  }
  func.func @transform_4(%arg0: i32, %arg1: i32, %arg2: i32) -> (i32, i32) {
    %c0_i32 = arith.constant 0 : i32
    %c0_i32_0 = arith.constant 0 : i32
    %c0_i32_1 = arith.constant 0 : i32
    return %c0_i32, %c0_i32_0 : i32, i32
  }
  func.func @transform_5(%arg0: i32, %arg1: i32, %arg2: i32) -> (i32, i32) {
    %c0_i32 = arith.constant 0 : i32
    %c0_i32_0 = arith.constant 0 : i32
    %c0_i32_1 = arith.constant 0 : i32
    return %c0_i32, %c0_i32_0 : i32, i32
  }
  func.func @transform_6(%arg0: i32, %arg1: i32, %arg2: i32) -> (i32, i32, i32) {
    %c0_i32 = arith.constant 0 : i32
    %c0_i32_0 = arith.constant 0 : i32
    return %arg0, %arg1, %c0_i32 : i32, i32, i32
  }
}

module attributes {stable_mosaic.version = 11 : i64} {
  func.func @ff_kernel(%arg0: i32, %arg1: i32, %arg2: memref<1x16x128xf32, #tpu.memory_space<vmem>>, %arg3: memref<1x128xf32, #tpu.memory_space<vmem>>, %arg4: memref<1x128xf32, #tpu.memory_space<vmem>>, %arg5: memref<128x512xbf16, #tpu.memory_space<vmem>>, %arg6: memref<1x512xf32, #tpu.memory_space<vmem>>, %arg7: memref<512x128xbf16, #tpu.memory_space<vmem>>, %arg8: memref<1x128xf32, #tpu.memory_space<vmem>>, %arg9: memref<1x16x128xf32, #tpu.memory_space<vmem>>) attributes {dimension_semantics = [#tpu.dimension_semantics<parallel>, #tpu.dimension_semantics<parallel>], iteration_bounds = array<i64: 2, 1>, scalar_prefetch = 0 : i64, scratch_operands = 0 : i64, tpu.core_type = #tpu.core_type<tc>, window_params = [{transform_indices = @transform_0, window_bounds = array<i64: 1, 16, 128>}, {pipeline_mode = #tpu.pipeline_mode<synchronous>, transform_indices = @transform_1, window_bounds = array<i64: 1, 128>}, {pipeline_mode = #tpu.pipeline_mode<synchronous>, transform_indices = @transform_2, window_bounds = array<i64: 1, 128>}, {pipeline_mode = #tpu.pipeline_mode<synchronous>, transform_indices = @transform_3, window_bounds = array<i64: 128, 512>}, {pipeline_mode = #tpu.pipeline_mode<synchronous>, transform_indices = @transform_4, window_bounds = array<i64: 1, 512>}, {pipeline_mode = #tpu.pipeline_mode<synchronous>, transform_indices = @transform_5, window_bounds = array<i64: 512, 128>}, {pipeline_mode = #tpu.pipeline_mode<synchronous>, transform_indices = @transform_6, window_bounds = array<i64: 1, 128>}, {transform_indices = @transform_7, window_bounds = array<i64: 1, 16, 128>}]} {
    %c0 = arith.constant 0 : index
    %c0_0 = arith.constant 0 : index
    %c0_1 = arith.constant 0 : index
    %0 = vector.load %arg2[%c0, %c0_0, %c0_1] : memref<1x16x128xf32, #tpu.memory_space<vmem>>, vector<1x16x128xf32>
    %1 = vector.shape_cast %0 : vector<1x16x128xf32> to vector<16x128xf32>
    %c0_2 = arith.constant 0 : index
    %c0_3 = arith.constant 0 : index
    %2 = vector.load %arg3[%c0_2, %c0_3] : memref<1x128xf32, #tpu.memory_space<vmem>>, vector<1x128xf32>
    %3 = vector.shape_cast %2 : vector<1x128xf32> to vector<128xf32>
    %c0_4 = arith.constant 0 : index
    %c0_5 = arith.constant 0 : index
    %4 = vector.load %arg4[%c0_4, %c0_5] : memref<1x128xf32, #tpu.memory_space<vmem>>, vector<1x128xf32>
    %5 = vector.shape_cast %4 : vector<1x128xf32> to vector<128xf32>
    %cst = arith.constant dense<0.000000e+00> : vector<16xf32>
    %6 = vector.multi_reduction <add>, %1, %cst [1] : vector<16x128xf32> to vector<16xf32>
    %7 = vector.shape_cast %6 : vector<16xf32> to vector<16x1xf32>
    %cst_6 = arith.constant 1.280000e+02 : f32
    %8 = vector.broadcast %cst_6 : f32 to vector<16x1xf32>
    %9 = arith.divf %7, %8 : vector<16x1xf32>
    %10 = vector.broadcast %9 : vector<16x1xf32> to vector<16x128xf32>
    %11 = arith.subf %1, %10 : vector<16x128xf32>
    %12 = arith.mulf %11, %11 : vector<16x128xf32>
    %cst_7 = arith.constant dense<0.000000e+00> : vector<16xf32>
    %13 = vector.multi_reduction <add>, %12, %cst_7 [1] : vector<16x128xf32> to vector<16xf32>
    %14 = vector.shape_cast %13 : vector<16xf32> to vector<16x1xf32>
    %cst_8 = arith.constant 1.280000e+02 : f32
    %15 = vector.broadcast %cst_8 : f32 to vector<16x1xf32>
    %16 = arith.divf %14, %15 : vector<16x1xf32>
    %17 = vector.broadcast %9 : vector<16x1xf32> to vector<16x128xf32>
    %18 = arith.subf %1, %17 : vector<16x128xf32>
    %cst_9 = arith.constant 9.99999974E-6 : f32
    %19 = vector.broadcast %cst_9 : f32 to vector<16x1xf32>
    %20 = arith.addf %16, %19 : vector<16x1xf32>
    %21 = math.rsqrt %20 : vector<16x1xf32>
    %22 = vector.broadcast %21 : vector<16x1xf32> to vector<16x128xf32>
    %23 = arith.mulf %18, %22 : vector<16x128xf32>
    %24 = vector.shape_cast %3 : vector<128xf32> to vector<1x128xf32>
    %25 = vector.broadcast %24 : vector<1x128xf32> to vector<16x128xf32>
    %26 = arith.mulf %23, %25 : vector<16x128xf32>
    %27 = vector.shape_cast %5 : vector<128xf32> to vector<1x128xf32>
    %28 = vector.broadcast %27 : vector<1x128xf32> to vector<16x128xf32>
    %29 = arith.addf %26, %28 : vector<16x128xf32>
    %30 = arith.truncf %29 : vector<16x128xf32> to vector<16x128xbf16>
    %c0_10 = arith.constant 0 : index
    %c0_11 = arith.constant 0 : index
    %31 = vector.load %arg5[%c0_10, %c0_11] : memref<128x512xbf16, #tpu.memory_space<vmem>>, vector<128x512xbf16>
    %cst_12 = arith.constant dense<0.000000e+00> : vector<16x512xf32>
    %32 = tpu.matmul %30, %31, %cst_12 {dimension_numbers = #tpu.dot_dimension_numbers<[1], [0], [0], [1], [0, 0, 1, 1], [], []>} : vector<16x128xbf16>, vector<128x512xbf16>, vector<16x512xf32> -> vector<16x512xf32>
    %c0_13 = arith.constant 0 : index
    %c0_14 = arith.constant 0 : index
    %33 = vector.load %arg6[%c0_13, %c0_14] : memref<1x512xf32, #tpu.memory_space<vmem>>, vector<1x512xf32>
    %34 = vector.shape_cast %33 : vector<1x512xf32> to vector<512xf32>
    %35 = vector.shape_cast %34 : vector<512xf32> to vector<1x512xf32>
    %36 = vector.broadcast %35 : vector<1x512xf32> to vector<16x512xf32>
    %37 = arith.addf %32, %36 : vector<16x512xf32>
    %cst_15 = arith.constant 0.000000e+00 : f32
    %38 = vector.broadcast %cst_15 : f32 to vector<16x512xf32>
    %39 = arith.maximumf %37, %38 : vector<16x512xf32>
    %40 = arith.truncf %39 : vector<16x512xf32> to vector<16x512xbf16>
    %c0_16 = arith.constant 0 : index
    %c0_17 = arith.constant 0 : index
    %41 = vector.load %arg7[%c0_16, %c0_17] : memref<512x128xbf16, #tpu.memory_space<vmem>>, vector<512x128xbf16>
    %cst_18 = arith.constant dense<0.000000e+00> : vector<16x128xf32>
    %42 = tpu.matmul %40, %41, %cst_18 {dimension_numbers = #tpu.dot_dimension_numbers<[1], [0], [0], [1], [0, 0, 1, 1], [], []>} : vector<16x512xbf16>, vector<512x128xbf16>, vector<16x128xf32> -> vector<16x128xf32>
    %c0_19 = arith.constant 0 : index
    %c0_20 = arith.constant 0 : index
    %43 = vector.load %arg8[%c0_19, %c0_20] : memref<1x128xf32, #tpu.memory_space<vmem>>, vector<1x128xf32>
    %44 = vector.shape_cast %43 : vector<1x128xf32> to vector<128xf32>
    %45 = vector.shape_cast %44 : vector<128xf32> to vector<1x128xf32>
    %46 = vector.broadcast %45 : vector<1x128xf32> to vector<16x128xf32>
    %47 = arith.addf %42, %46 : vector<16x128xf32>
    %48 = arith.addf %1, %47 : vector<16x128xf32>
    %c0_21 = arith.constant 0 : index
    %c0_22 = arith.constant 0 : index
    %c0_23 = arith.constant 0 : index
    %49 = vector.load %arg9[%c0_21, %c0_22, %c0_23] : memref<1x16x128xf32, #tpu.memory_space<vmem>>, vector<1x16x128xf32>
    %50 = vector.shape_cast %49 : vector<1x16x128xf32> to vector<16x128xf32>
    %51 = vector.shape_cast %48 : vector<16x128xf32> to vector<1x16x128xf32>
    tpu.vector_store %arg9[%c0_21, %c0_22, %c0_23], %51 {strides = array<i32>} : memref<1x16x128xf32, #tpu.memory_space<vmem>>, vector<1x16x128xf32>,
    return
  }
  func.func @transform_0(%arg0: i32, %arg1: i32) -> (i32, i32, i32) {
    %c0_i32 = arith.constant 0 : i32
    %c0_i32_0 = arith.constant 0 : i32
    return %arg0, %arg1, %c0_i32 : i32, i32, i32
  }
  func.func @transform_1(%arg0: i32, %arg1: i32) -> (i32, i32) {
    %c0_i32 = arith.constant 0 : i32
    %c0_i32_0 = arith.constant 0 : i32
    %c0_i32_1 = arith.constant 0 : i32
    return %c0_i32, %c0_i32_0 : i32, i32
  }
  func.func @transform_2(%arg0: i32, %arg1: i32) -> (i32, i32) {
    %c0_i32 = arith.constant 0 : i32
    %c0_i32_0 = arith.constant 0 : i32
    %c0_i32_1 = arith.constant 0 : i32
    return %c0_i32, %c0_i32_0 : i32, i32
  }
  func.func @transform_3(%arg0: i32, %arg1: i32) -> (i32, i32) {
    %c0_i32 = arith.constant 0 : i32
    %c0_i32_0 = arith.constant 0 : i32
    %c0_i32_1 = arith.constant 0 : i32
    return %c0_i32, %c0_i32_0 : i32, i32
  }
  func.func @transform_4(%arg0: i32, %arg1: i32) -> (i32, i32) {
    %c0_i32 = arith.constant 0 : i32
    %c0_i32_0 = arith.constant 0 : i32
    %c0_i32_1 = arith.constant 0 : i32
    return %c0_i32, %c0_i32_0 : i32, i32
  }
  func.func @transform_5(%arg0: i32, %arg1: i32) -> (i32, i32) {
    %c0_i32 = arith.constant 0 : i32
    %c0_i32_0 = arith.constant 0 : i32
    %c0_i32_1 = arith.constant 0 : i32
    return %c0_i32, %c0_i32_0 : i32, i32
  }
  func.func @transform_6(%arg0: i32, %arg1: i32) -> (i32, i32) {
    %c0_i32 = arith.constant 0 : i32
    %c0_i32_0 = arith.constant 0 : i32
    %c0_i32_1 = arith.constant 0 : i32
    return %c0_i32, %c0_i32_0 : i32, i32
  }
  func.func @transform_7(%arg0: i32, %arg1: i32) -> (i32, i32, i32) {
    %c0_i32 = arith.constant 0 : i32
    %c0_i32_0 = arith.constant 0 : i32
    return %arg0, %arg1, %c0_i32 : i32, i32, i32
  }
}

module attributes {stable_mosaic.version = 11 : i64} {
  func.func @qkv_kernel(%arg0: i32, %arg1: i32, %arg2: memref<1x8x128xf32, #tpu.memory_space<vmem>>, %arg3: memref<1x128xf32, #tpu.memory_space<vmem>>, %arg4: memref<1x128xf32, #tpu.memory_space<vmem>>, %arg5: memref<128x384xbf16, #tpu.memory_space<vmem>>, %arg6: memref<1x384xf32, #tpu.memory_space<vmem>>, %arg7: memref<1x4x8x32xbf16, #tpu.memory_space<vmem>>, %arg8: memref<1x4x8x32xbf16, #tpu.memory_space<vmem>>, %arg9: memref<1x4x8x32xbf16, #tpu.memory_space<vmem>>) attributes {dimension_semantics = [#tpu.dimension_semantics<parallel>, #tpu.dimension_semantics<parallel>], iteration_bounds = array<i64: 2, 1>, scalar_prefetch = 0 : i64, scratch_operands = 0 : i64, tpu.core_type = #tpu.core_type<tc>, window_params = [{transform_indices = @transform_0, window_bounds = array<i64: 1, 8, 128>}, {pipeline_mode = #tpu.pipeline_mode<synchronous>, transform_indices = @transform_1, window_bounds = array<i64: 1, 128>}, {pipeline_mode = #tpu.pipeline_mode<synchronous>, transform_indices = @transform_2, window_bounds = array<i64: 1, 128>}, {pipeline_mode = #tpu.pipeline_mode<synchronous>, transform_indices = @transform_3, window_bounds = array<i64: 128, 384>}, {pipeline_mode = #tpu.pipeline_mode<synchronous>, transform_indices = @transform_4, window_bounds = array<i64: 1, 384>}, {transform_indices = @transform_5, window_bounds = array<i64: 1, 4, 8, 32>}, {transform_indices = @transform_6, window_bounds = array<i64: 1, 4, 8, 32>}, {transform_indices = @transform_7, window_bounds = array<i64: 1, 4, 8, 32>}]} {
    %c0 = arith.constant 0 : index
    %c0_0 = arith.constant 0 : index
    %c0_1 = arith.constant 0 : index
    %0 = vector.load %arg2[%c0, %c0_0, %c0_1] : memref<1x8x128xf32, #tpu.memory_space<vmem>>, vector<1x8x128xf32>
    %1 = vector.shape_cast %0 : vector<1x8x128xf32> to vector<8x128xf32>
    %c0_2 = arith.constant 0 : index
    %c0_3 = arith.constant 0 : index
    %2 = vector.load %arg3[%c0_2, %c0_3] : memref<1x128xf32, #tpu.memory_space<vmem>>, vector<1x128xf32>
    %3 = vector.shape_cast %2 : vector<1x128xf32> to vector<128xf32>
    %c0_4 = arith.constant 0 : index
    %c0_5 = arith.constant 0 : index
    %4 = vector.load %arg4[%c0_4, %c0_5] : memref<1x128xf32, #tpu.memory_space<vmem>>, vector<1x128xf32>
    %5 = vector.shape_cast %4 : vector<1x128xf32> to vector<128xf32>
    %cst = arith.constant dense<0.000000e+00> : vector<8xf32>
    %6 = vector.multi_reduction <add>, %1, %cst [1] : vector<8x128xf32> to vector<8xf32>
    %7 = vector.shape_cast %6 : vector<8xf32> to vector<8x1xf32>
    %cst_6 = arith.constant 1.280000e+02 : f32
    %8 = vector.broadcast %cst_6 : f32 to vector<8x1xf32>
    %9 = arith.divf %7, %8 : vector<8x1xf32>
    %10 = vector.broadcast %9 : vector<8x1xf32> to vector<8x128xf32>
    %11 = arith.subf %1, %10 : vector<8x128xf32>
    %12 = arith.mulf %11, %11 : vector<8x128xf32>
    %cst_7 = arith.constant dense<0.000000e+00> : vector<8xf32>
    %13 = vector.multi_reduction <add>, %12, %cst_7 [1] : vector<8x128xf32> to vector<8xf32>
    %14 = vector.shape_cast %13 : vector<8xf32> to vector<8x1xf32>
    %cst_8 = arith.constant 1.280000e+02 : f32
    %15 = vector.broadcast %cst_8 : f32 to vector<8x1xf32>
    %16 = arith.divf %14, %15 : vector<8x1xf32>
    %17 = vector.broadcast %9 : vector<8x1xf32> to vector<8x128xf32>
    %18 = arith.subf %1, %17 : vector<8x128xf32>
    %cst_9 = arith.constant 9.99999974E-6 : f32
    %19 = vector.broadcast %cst_9 : f32 to vector<8x1xf32>
    %20 = arith.addf %16, %19 : vector<8x1xf32>
    %21 = math.rsqrt %20 : vector<8x1xf32>
    %22 = vector.broadcast %21 : vector<8x1xf32> to vector<8x128xf32>
    %23 = arith.mulf %18, %22 : vector<8x128xf32>
    %24 = vector.shape_cast %3 : vector<128xf32> to vector<1x128xf32>
    %25 = vector.broadcast %24 : vector<1x128xf32> to vector<8x128xf32>
    %26 = arith.mulf %23, %25 : vector<8x128xf32>
    %27 = vector.shape_cast %5 : vector<128xf32> to vector<1x128xf32>
    %28 = vector.broadcast %27 : vector<1x128xf32> to vector<8x128xf32>
    %29 = arith.addf %26, %28 : vector<8x128xf32>
    %30 = arith.truncf %29 : vector<8x128xf32> to vector<8x128xbf16>
    %c0_10 = arith.constant 0 : index
    %c0_11 = arith.constant 0 : index
    %31 = vector.load %arg5[%c0_10, %c0_11] : memref<128x384xbf16, #tpu.memory_space<vmem>>, vector<128x384xbf16>
    %cst_12 = arith.constant dense<0.000000e+00> : vector<8x384xf32>
    %32 = tpu.matmul %30, %31, %cst_12 {dimension_numbers = #tpu.dot_dimension_numbers<[1], [0], [0], [1], [0, 0, 1, 1], [], []>} : vector<8x128xbf16>, vector<128x384xbf16>, vector<8x384xf32> -> vector<8x384xf32>
    %c0_13 = arith.constant 0 : index
    %c0_14 = arith.constant 0 : index
    %33 = vector.load %arg6[%c0_13, %c0_14] : memref<1x384xf32, #tpu.memory_space<vmem>>, vector<1x384xf32>
    %34 = vector.shape_cast %33 : vector<1x384xf32> to vector<384xf32>
    %35 = vector.shape_cast %34 : vector<384xf32> to vector<1x384xf32>
    %36 = vector.broadcast %35 : vector<1x384xf32> to vector<8x384xf32>
    %37 = arith.addf %32, %36 : vector<8x384xf32>
    %38 = vector.extract_strided_slice %37 {offsets = [0, 0], sizes = [8, 32], strides = [1, 1]} : vector<8x384xf32> to vector<8x32xf32>
    %39 = arith.truncf %38 : vector<8x32xf32> to vector<8x32xbf16>
    %c0_15 = arith.constant 0 : index
    %c0_16 = arith.constant 0 : index
    %c0_17 = arith.constant 0 : index
    %c0_18 = arith.constant 0 : index
    %40 = vector.load %arg7[%c0_15, %c0_16, %c0_17, %c0_18] : memref<1x4x8x32xbf16, #tpu.memory_space<vmem>>, vector<1x1x8x32xbf16>
    %41 = vector.shape_cast %40 : vector<1x1x8x32xbf16> to vector<8x32xbf16>
    %42 = vector.shape_cast %39 : vector<8x32xbf16> to vector<1x1x8x32xbf16>
    tpu.vector_store %arg7[%c0_15, %c0_16, %c0_17, %c0_18], %42 {strides = array<i32>} : memref<1x4x8x32xbf16, #tpu.memory_space<vmem>>, vector<1x1x8x32xbf16>,
    %43 = vector.extract_strided_slice %37 {offsets = [0, 128], sizes = [8, 32], strides = [1, 1]} : vector<8x384xf32> to vector<8x32xf32>
    %44 = arith.truncf %43 : vector<8x32xf32> to vector<8x32xbf16>
    %c0_19 = arith.constant 0 : index
    %c0_20 = arith.constant 0 : index
    %c0_21 = arith.constant 0 : index
    %c0_22 = arith.constant 0 : index
    %45 = vector.load %arg8[%c0_19, %c0_20, %c0_21, %c0_22] : memref<1x4x8x32xbf16, #tpu.memory_space<vmem>>, vector<1x1x8x32xbf16>
    %46 = vector.shape_cast %45 : vector<1x1x8x32xbf16> to vector<8x32xbf16>
    %47 = vector.shape_cast %44 : vector<8x32xbf16> to vector<1x1x8x32xbf16>
    tpu.vector_store %arg8[%c0_19, %c0_20, %c0_21, %c0_22], %47 {strides = array<i32>} : memref<1x4x8x32xbf16, #tpu.memory_space<vmem>>, vector<1x1x8x32xbf16>,
    %48 = vector.extract_strided_slice %37 {offsets = [0, 256], sizes = [8, 32], strides = [1, 1]} : vector<8x384xf32> to vector<8x32xf32>
    %49 = arith.truncf %48 : vector<8x32xf32> to vector<8x32xbf16>
    %c0_23 = arith.constant 0 : index
    %c0_24 = arith.constant 0 : index
    %c0_25 = arith.constant 0 : index
    %c0_26 = arith.constant 0 : index
    %50 = vector.load %arg9[%c0_23, %c0_24, %c0_25, %c0_26] : memref<1x4x8x32xbf16, #tpu.memory_space<vmem>>, vector<1x1x8x32xbf16>
    %51 = vector.shape_cast %50 : vector<1x1x8x32xbf16> to vector<8x32xbf16>
    %52 = vector.shape_cast %49 : vector<8x32xbf16> to vector<1x1x8x32xbf16>
    tpu.vector_store %arg9[%c0_23, %c0_24, %c0_25, %c0_26], %52 {strides = array<i32>} : memref<1x4x8x32xbf16, #tpu.memory_space<vmem>>, vector<1x1x8x32xbf16>,
    %53 = vector.extract_strided_slice %37 {offsets = [0, 32], sizes = [8, 32], strides = [1, 1]} : vector<8x384xf32> to vector<8x32xf32>
    %54 = arith.truncf %53 : vector<8x32xf32> to vector<8x32xbf16>
    %c0_27 = arith.constant 0 : index
    %c1 = arith.constant 1 : index
    %c0_28 = arith.constant 0 : index
    %c0_29 = arith.constant 0 : index
    %55 = vector.load %arg7[%c0_27, %c1, %c0_28, %c0_29] : memref<1x4x8x32xbf16, #tpu.memory_space<vmem>>, vector<1x1x8x32xbf16>
    %56 = vector.shape_cast %55 : vector<1x1x8x32xbf16> to vector<8x32xbf16>
    %57 = vector.shape_cast %54 : vector<8x32xbf16> to vector<1x1x8x32xbf16>
    tpu.vector_store %arg7[%c0_27, %c1, %c0_28, %c0_29], %57 {strides = array<i32>} : memref<1x4x8x32xbf16, #tpu.memory_space<vmem>>, vector<1x1x8x32xbf16>,
    %58 = vector.extract_strided_slice %37 {offsets = [0, 160], sizes = [8, 32], strides = [1, 1]} : vector<8x384xf32> to vector<8x32xf32>
    %59 = arith.truncf %58 : vector<8x32xf32> to vector<8x32xbf16>
    %c0_30 = arith.constant 0 : index
    %c1_31 = arith.constant 1 : index
    %c0_32 = arith.constant 0 : index
    %c0_33 = arith.constant 0 : index
    %60 = vector.load %arg8[%c0_30, %c1_31, %c0_32, %c0_33] : memref<1x4x8x32xbf16, #tpu.memory_space<vmem>>, vector<1x1x8x32xbf16>
    %61 = vector.shape_cast %60 : vector<1x1x8x32xbf16> to vector<8x32xbf16>
    %62 = vector.shape_cast %59 : vector<8x32xbf16> to vector<1x1x8x32xbf16>
    tpu.vector_store %arg8[%c0_30, %c1_31, %c0_32, %c0_33], %62 {strides = array<i32>} : memref<1x4x8x32xbf16, #tpu.memory_space<vmem>>, vector<1x1x8x32xbf16>,
    %63 = vector.extract_strided_slice %37 {offsets = [0, 288], sizes = [8, 32], strides = [1, 1]} : vector<8x384xf32> to vector<8x32xf32>
    %64 = arith.truncf %63 : vector<8x32xf32> to vector<8x32xbf16>
    %c0_34 = arith.constant 0 : index
    %c1_35 = arith.constant 1 : index
    %c0_36 = arith.constant 0 : index
    %c0_37 = arith.constant 0 : index
    %65 = vector.load %arg9[%c0_34, %c1_35, %c0_36, %c0_37] : memref<1x4x8x32xbf16, #tpu.memory_space<vmem>>, vector<1x1x8x32xbf16>
    %66 = vector.shape_cast %65 : vector<1x1x8x32xbf16> to vector<8x32xbf16>
    %67 = vector.shape_cast %64 : vector<8x32xbf16> to vector<1x1x8x32xbf16>
    tpu.vector_store %arg9[%c0_34, %c1_35, %c0_36, %c0_37], %67 {strides = array<i32>} : memref<1x4x8x32xbf16, #tpu.memory_space<vmem>>, vector<1x1x8x32xbf16>,
    %68 = vector.extract_strided_slice %37 {offsets = [0, 64], sizes = [8, 32], strides = [1, 1]} : vector<8x384xf32> to vector<8x32xf32>
    %69 = arith.truncf %68 : vector<8x32xf32> to vector<8x32xbf16>
    %c0_38 = arith.constant 0 : index
    %c2 = arith.constant 2 : index
    %c0_39 = arith.constant 0 : index
    %c0_40 = arith.constant 0 : index
    %70 = vector.load %arg7[%c0_38, %c2, %c0_39, %c0_40] : memref<1x4x8x32xbf16, #tpu.memory_space<vmem>>, vector<1x1x8x32xbf16>
    %71 = vector.shape_cast %70 : vector<1x1x8x32xbf16> to vector<8x32xbf16>
    %72 = vector.shape_cast %69 : vector<8x32xbf16> to vector<1x1x8x32xbf16>
    tpu.vector_store %arg7[%c0_38, %c2, %c0_39, %c0_40], %72 {strides = array<i32>} : memref<1x4x8x32xbf16, #tpu.memory_space<vmem>>, vector<1x1x8x32xbf16>,
    %73 = vector.extract_strided_slice %37 {offsets = [0, 192], sizes = [8, 32], strides = [1, 1]} : vector<8x384xf32> to vector<8x32xf32>
    %74 = arith.truncf %73 : vector<8x32xf32> to vector<8x32xbf16>
    %c0_41 = arith.constant 0 : index
    %c2_42 = arith.constant 2 : index
    %c0_43 = arith.constant 0 : index
    %c0_44 = arith.constant 0 : index
    %75 = vector.load %arg8[%c0_41, %c2_42, %c0_43, %c0_44] : memref<1x4x8x32xbf16, #tpu.memory_space<vmem>>, vector<1x1x8x32xbf16>
    %76 = vector.shape_cast %75 : vector<1x1x8x32xbf16> to vector<8x32xbf16>
    %77 = vector.shape_cast %74 : vector<8x32xbf16> to vector<1x1x8x32xbf16>
    tpu.vector_store %arg8[%c0_41, %c2_42, %c0_43, %c0_44], %77 {strides = array<i32>} : memref<1x4x8x32xbf16, #tpu.memory_space<vmem>>, vector<1x1x8x32xbf16>,
    %78 = vector.extract_strided_slice %37 {offsets = [0, 320], sizes = [8, 32], strides = [1, 1]} : vector<8x384xf32> to vector<8x32xf32>
    %79 = arith.truncf %78 : vector<8x32xf32> to vector<8x32xbf16>
    %c0_45 = arith.constant 0 : index
    %c2_46 = arith.constant 2 : index
    %c0_47 = arith.constant 0 : index
    %c0_48 = arith.constant 0 : index
    %80 = vector.load %arg9[%c0_45, %c2_46, %c0_47, %c0_48] : memref<1x4x8x32xbf16, #tpu.memory_space<vmem>>, vector<1x1x8x32xbf16>
    %81 = vector.shape_cast %80 : vector<1x1x8x32xbf16> to vector<8x32xbf16>
    %82 = vector.shape_cast %79 : vector<8x32xbf16> to vector<1x1x8x32xbf16>
    tpu.vector_store %arg9[%c0_45, %c2_46, %c0_47, %c0_48], %82 {strides = array<i32>} : memref<1x4x8x32xbf16, #tpu.memory_space<vmem>>, vector<1x1x8x32xbf16>,
    %83 = vector.extract_strided_slice %37 {offsets = [0, 96], sizes = [8, 32], strides = [1, 1]} : vector<8x384xf32> to vector<8x32xf32>
    %84 = arith.truncf %83 : vector<8x32xf32> to vector<8x32xbf16>
    %c0_49 = arith.constant 0 : index
    %c3 = arith.constant 3 : index
    %c0_50 = arith.constant 0 : index
    %c0_51 = arith.constant 0 : index
    %85 = vector.load %arg7[%c0_49, %c3, %c0_50, %c0_51] : memref<1x4x8x32xbf16, #tpu.memory_space<vmem>>, vector<1x1x8x32xbf16>
    %86 = vector.shape_cast %85 : vector<1x1x8x32xbf16> to vector<8x32xbf16>
    %87 = vector.shape_cast %84 : vector<8x32xbf16> to vector<1x1x8x32xbf16>
    tpu.vector_store %arg7[%c0_49, %c3, %c0_50, %c0_51], %87 {strides = array<i32>} : memref<1x4x8x32xbf16, #tpu.memory_space<vmem>>, vector<1x1x8x32xbf16>,
    %88 = vector.extract_strided_slice %37 {offsets = [0, 224], sizes = [8, 32], strides = [1, 1]} : vector<8x384xf32> to vector<8x32xf32>
    %89 = arith.truncf %88 : vector<8x32xf32> to vector<8x32xbf16>
    %c0_52 = arith.constant 0 : index
    %c3_53 = arith.constant 3 : index
    %c0_54 = arith.constant 0 : index
    %c0_55 = arith.constant 0 : index
    %90 = vector.load %arg8[%c0_52, %c3_53, %c0_54, %c0_55] : memref<1x4x8x32xbf16, #tpu.memory_space<vmem>>, vector<1x1x8x32xbf16>
    %91 = vector.shape_cast %90 : vector<1x1x8x32xbf16> to vector<8x32xbf16>
    %92 = vector.shape_cast %89 : vector<8x32xbf16> to vector<1x1x8x32xbf16>
    tpu.vector_store %arg8[%c0_52, %c3_53, %c0_54, %c0_55], %92 {strides = array<i32>} : memref<1x4x8x32xbf16, #tpu.memory_space<vmem>>, vector<1x1x8x32xbf16>,
    %93 = vector.extract_strided_slice %37 {offsets = [0, 352], sizes = [8, 32], strides = [1, 1]} : vector<8x384xf32> to vector<8x32xf32>
    %94 = arith.truncf %93 : vector<8x32xf32> to vector<8x32xbf16>
    %c0_56 = arith.constant 0 : index
    %c3_57 = arith.constant 3 : index
    %c0_58 = arith.constant 0 : index
    %c0_59 = arith.constant 0 : index
    %95 = vector.load %arg9[%c0_56, %c3_57, %c0_58, %c0_59] : memref<1x4x8x32xbf16, #tpu.memory_space<vmem>>, vector<1x1x8x32xbf16>
    %96 = vector.shape_cast %95 : vector<1x1x8x32xbf16> to vector<8x32xbf16>
    %97 = vector.shape_cast %94 : vector<8x32xbf16> to vector<1x1x8x32xbf16>
    tpu.vector_store %arg9[%c0_56, %c3_57, %c0_58, %c0_59], %97 {strides = array<i32>} : memref<1x4x8x32xbf16, #tpu.memory_space<vmem>>, vector<1x1x8x32xbf16>,
    return
  }
  func.func @transform_0(%arg0: i32, %arg1: i32) -> (i32, i32, i32) {
    %c0_i32 = arith.constant 0 : i32
    %c0_i32_0 = arith.constant 0 : i32
    return %arg0, %arg1, %c0_i32 : i32, i32, i32
  }
  func.func @transform_1(%arg0: i32, %arg1: i32) -> (i32, i32) {
    %c0_i32 = arith.constant 0 : i32
    %c0_i32_0 = arith.constant 0 : i32
    %c0_i32_1 = arith.constant 0 : i32
    return %c0_i32, %c0_i32_0 : i32, i32
  }
  func.func @transform_2(%arg0: i32, %arg1: i32) -> (i32, i32) {
    %c0_i32 = arith.constant 0 : i32
    %c0_i32_0 = arith.constant 0 : i32
    %c0_i32_1 = arith.constant 0 : i32
    return %c0_i32, %c0_i32_0 : i32, i32
  }
  func.func @transform_3(%arg0: i32, %arg1: i32) -> (i32, i32) {
    %c0_i32 = arith.constant 0 : i32
    %c0_i32_0 = arith.constant 0 : i32
    %c0_i32_1 = arith.constant 0 : i32
    return %c0_i32, %c0_i32_0 : i32, i32
  }
  func.func @transform_4(%arg0: i32, %arg1: i32) -> (i32, i32) {
    %c0_i32 = arith.constant 0 : i32
    %c0_i32_0 = arith.constant 0 : i32
    %c0_i32_1 = arith.constant 0 : i32
    return %c0_i32, %c0_i32_0 : i32, i32
  }
  func.func @transform_5(%arg0: i32, %arg1: i32) -> (i32, i32, i32, i32) {
    %c0_i32 = arith.constant 0 : i32
    %c0_i32_0 = arith.constant 0 : i32
    %c0_i32_1 = arith.constant 0 : i32
    return %arg0, %c0_i32, %arg1, %c0_i32_0 : i32, i32, i32, i32
  }
  func.func @transform_6(%arg0: i32, %arg1: i32) -> (i32, i32, i32, i32) {
    %c0_i32 = arith.constant 0 : i32
    %c0_i32_0 = arith.constant 0 : i32
    %c0_i32_1 = arith.constant 0 : i32
    return %arg0, %c0_i32, %arg1, %c0_i32_0 : i32, i32, i32, i32
  }
  func.func @transform_7(%arg0: i32, %arg1: i32) -> (i32, i32, i32, i32) {
    %c0_i32 = arith.constant 0 : i32
    %c0_i32_0 = arith.constant 0 : i32
    %c0_i32_1 = arith.constant 0 : i32
    return %arg0, %c0_i32, %arg1, %c0_i32_0 : i32, i32, i32, i32
  }
}

module attributes {stable_mosaic.version = 11 : i64} {
  func.func @ff_kernel(%arg0: i32, %arg1: i32, %arg2: memref<1x8x128xf32, #tpu.memory_space<vmem>>, %arg3: memref<1x128xf32, #tpu.memory_space<vmem>>, %arg4: memref<1x128xf32, #tpu.memory_space<vmem>>, %arg5: memref<128x512xbf16, #tpu.memory_space<vmem>>, %arg6: memref<1x512xf32, #tpu.memory_space<vmem>>, %arg7: memref<512x128xbf16, #tpu.memory_space<vmem>>, %arg8: memref<1x128xf32, #tpu.memory_space<vmem>>, %arg9: memref<1x8x128xf32, #tpu.memory_space<vmem>>) attributes {dimension_semantics = [#tpu.dimension_semantics<parallel>, #tpu.dimension_semantics<parallel>], iteration_bounds = array<i64: 2, 1>, scalar_prefetch = 0 : i64, scratch_operands = 0 : i64, tpu.core_type = #tpu.core_type<tc>, window_params = [{transform_indices = @transform_0, window_bounds = array<i64: 1, 8, 128>}, {pipeline_mode = #tpu.pipeline_mode<synchronous>, transform_indices = @transform_1, window_bounds = array<i64: 1, 128>}, {pipeline_mode = #tpu.pipeline_mode<synchronous>, transform_indices = @transform_2, window_bounds = array<i64: 1, 128>}, {pipeline_mode = #tpu.pipeline_mode<synchronous>, transform_indices = @transform_3, window_bounds = array<i64: 128, 512>}, {pipeline_mode = #tpu.pipeline_mode<synchronous>, transform_indices = @transform_4, window_bounds = array<i64: 1, 512>}, {pipeline_mode = #tpu.pipeline_mode<synchronous>, transform_indices = @transform_5, window_bounds = array<i64: 512, 128>}, {pipeline_mode = #tpu.pipeline_mode<synchronous>, transform_indices = @transform_6, window_bounds = array<i64: 1, 128>}, {transform_indices = @transform_7, window_bounds = array<i64: 1, 8, 128>}]} {
    %c0 = arith.constant 0 : index
    %c0_0 = arith.constant 0 : index
    %c0_1 = arith.constant 0 : index
    %0 = vector.load %arg2[%c0, %c0_0, %c0_1] : memref<1x8x128xf32, #tpu.memory_space<vmem>>, vector<1x8x128xf32>
    %1 = vector.shape_cast %0 : vector<1x8x128xf32> to vector<8x128xf32>
    %c0_2 = arith.constant 0 : index
    %c0_3 = arith.constant 0 : index
    %2 = vector.load %arg3[%c0_2, %c0_3] : memref<1x128xf32, #tpu.memory_space<vmem>>, vector<1x128xf32>
    %3 = vector.shape_cast %2 : vector<1x128xf32> to vector<128xf32>
    %c0_4 = arith.constant 0 : index
    %c0_5 = arith.constant 0 : index
    %4 = vector.load %arg4[%c0_4, %c0_5] : memref<1x128xf32, #tpu.memory_space<vmem>>, vector<1x128xf32>
    %5 = vector.shape_cast %4 : vector<1x128xf32> to vector<128xf32>
    %cst = arith.constant dense<0.000000e+00> : vector<8xf32>
    %6 = vector.multi_reduction <add>, %1, %cst [1] : vector<8x128xf32> to vector<8xf32>
    %7 = vector.shape_cast %6 : vector<8xf32> to vector<8x1xf32>
    %cst_6 = arith.constant 1.280000e+02 : f32
    %8 = vector.broadcast %cst_6 : f32 to vector<8x1xf32>
    %9 = arith.divf %7, %8 : vector<8x1xf32>
    %10 = vector.broadcast %9 : vector<8x1xf32> to vector<8x128xf32>
    %11 = arith.subf %1, %10 : vector<8x128xf32>
    %12 = arith.mulf %11, %11 : vector<8x128xf32>
    %cst_7 = arith.constant dense<0.000000e+00> : vector<8xf32>
    %13 = vector.multi_reduction <add>, %12, %cst_7 [1] : vector<8x128xf32> to vector<8xf32>
    %14 = vector.shape_cast %13 : vector<8xf32> to vector<8x1xf32>
    %cst_8 = arith.constant 1.280000e+02 : f32
    %15 = vector.broadcast %cst_8 : f32 to vector<8x1xf32>
    %16 = arith.divf %14, %15 : vector<8x1xf32>
    %17 = vector.broadcast %9 : vector<8x1xf32> to vector<8x128xf32>
    %18 = arith.subf %1, %17 : vector<8x128xf32>
    %cst_9 = arith.constant 9.99999974E-6 : f32
    %19 = vector.broadcast %cst_9 : f32 to vector<8x1xf32>
    %20 = arith.addf %16, %19 : vector<8x1xf32>
    %21 = math.rsqrt %20 : vector<8x1xf32>
    %22 = vector.broadcast %21 : vector<8x1xf32> to vector<8x128xf32>
    %23 = arith.mulf %18, %22 : vector<8x128xf32>
    %24 = vector.shape_cast %3 : vector<128xf32> to vector<1x128xf32>
    %25 = vector.broadcast %24 : vector<1x128xf32> to vector<8x128xf32>
    %26 = arith.mulf %23, %25 : vector<8x128xf32>
    %27 = vector.shape_cast %5 : vector<128xf32> to vector<1x128xf32>
    %28 = vector.broadcast %27 : vector<1x128xf32> to vector<8x128xf32>
    %29 = arith.addf %26, %28 : vector<8x128xf32>
    %30 = arith.truncf %29 : vector<8x128xf32> to vector<8x128xbf16>
    %c0_10 = arith.constant 0 : index
    %c0_11 = arith.constant 0 : index
    %31 = vector.load %arg5[%c0_10, %c0_11] : memref<128x512xbf16, #tpu.memory_space<vmem>>, vector<128x512xbf16>
    %cst_12 = arith.constant dense<0.000000e+00> : vector<8x512xf32>
    %32 = tpu.matmul %30, %31, %cst_12 {dimension_numbers = #tpu.dot_dimension_numbers<[1], [0], [0], [1], [0, 0, 1, 1], [], []>} : vector<8x128xbf16>, vector<128x512xbf16>, vector<8x512xf32> -> vector<8x512xf32>
    %c0_13 = arith.constant 0 : index
    %c0_14 = arith.constant 0 : index
    %33 = vector.load %arg6[%c0_13, %c0_14] : memref<1x512xf32, #tpu.memory_space<vmem>>, vector<1x512xf32>
    %34 = vector.shape_cast %33 : vector<1x512xf32> to vector<512xf32>
    %35 = vector.shape_cast %34 : vector<512xf32> to vector<1x512xf32>
    %36 = vector.broadcast %35 : vector<1x512xf32> to vector<8x512xf32>
    %37 = arith.addf %32, %36 : vector<8x512xf32>
    %cst_15 = arith.constant 0.000000e+00 : f32
    %38 = vector.broadcast %cst_15 : f32 to vector<8x512xf32>
    %39 = arith.maximumf %37, %38 : vector<8x512xf32>
    %40 = arith.truncf %39 : vector<8x512xf32> to vector<8x512xbf16>
    %c0_16 = arith.constant 0 : index
    %c0_17 = arith.constant 0 : index
    %41 = vector.load %arg7[%c0_16, %c0_17] : memref<512x128xbf16, #tpu.memory_space<vmem>>, vector<512x128xbf16>
    %cst_18 = arith.constant dense<0.000000e+00> : vector<8x128xf32>
    %42 = tpu.matmul %40, %41, %cst_18 {dimension_numbers = #tpu.dot_dimension_numbers<[1], [0], [0], [1], [0, 0, 1, 1], [], []>} : vector<8x512xbf16>, vector<512x128xbf16>, vector<8x128xf32> -> vector<8x128xf32>
    %c0_19 = arith.constant 0 : index
    %c0_20 = arith.constant 0 : index
    %43 = vector.load %arg8[%c0_19, %c0_20] : memref<1x128xf32, #tpu.memory_space<vmem>>, vector<1x128xf32>
    %44 = vector.shape_cast %43 : vector<1x128xf32> to vector<128xf32>
    %45 = vector.shape_cast %44 : vector<128xf32> to vector<1x128xf32>
    %46 = vector.broadcast %45 : vector<1x128xf32> to vector<8x128xf32>
    %47 = arith.addf %42, %46 : vector<8x128xf32>
    %48 = arith.addf %1, %47 : vector<8x128xf32>
    %c0_21 = arith.constant 0 : index
    %c0_22 = arith.constant 0 : index
    %c0_23 = arith.constant 0 : index
    %49 = vector.load %arg9[%c0_21, %c0_22, %c0_23] : memref<1x8x128xf32, #tpu.memory_space<vmem>>, vector<1x8x128xf32>
    %50 = vector.shape_cast %49 : vector<1x8x128xf32> to vector<8x128xf32>
    %51 = vector.shape_cast %48 : vector<8x128xf32> to vector<1x8x128xf32>
    tpu.vector_store %arg9[%c0_21, %c0_22, %c0_23], %51 {strides = array<i32>} : memref<1x8x128xf32, #tpu.memory_space<vmem>>, vector<1x8x128xf32>,
    return
  }
  func.func @transform_0(%arg0: i32, %arg1: i32) -> (i32, i32, i32) {
    %c0_i32 = arith.constant 0 : i32
    %c0_i32_0 = arith.constant 0 : i32
    return %arg0, %arg1, %c0_i32 : i32, i32, i32
  }
  func.func @transform_1(%arg0: i32, %arg1: i32) -> (i32, i32) {
    %c0_i32 = arith.constant 0 : i32
    %c0_i32_0 = arith.constant 0 : i32
    %c0_i32_1 = arith.constant 0 : i32
    return %c0_i32, %c0_i32_0 : i32, i32
  }
  func.func @transform_2(%arg0: i32, %arg1: i32) -> (i32, i32) {
    %c0_i32 = arith.constant 0 : i32
    %c0_i32_0 = arith.constant 0 : i32
    %c0_i32_1 = arith.constant 0 : i32
    return %c0_i32, %c0_i32_0 : i32, i32
  }
  func.func @transform_3(%arg0: i32, %arg1: i32) -> (i32, i32) {
    %c0_i32 = arith.constant 0 : i32
    %c0_i32_0 = arith.constant 0 : i32
    %c0_i32_1 = arith.constant 0 : i32
    return %c0_i32, %c0_i32_0 : i32, i32
  }
  func.func @transform_4(%arg0: i32, %arg1: i32) -> (i32, i32) {
    %c0_i32 = arith.constant 0 : i32
    %c0_i32_0 = arith.constant 0 : i32
    %c0_i32_1 = arith.constant 0 : i32
    return %c0_i32, %c0_i32_0 : i32, i32
  }
  func.func @transform_5(%arg0: i32, %arg1: i32) -> (i32, i32) {
    %c0_i32 = arith.constant 0 : i32
    %c0_i32_0 = arith.constant 0 : i32
    %c0_i32_1 = arith.constant 0 : i32
    return %c0_i32, %c0_i32_0 : i32, i32
  }
  func.func @transform_6(%arg0: i32, %arg1: i32) -> (i32, i32) {
    %c0_i32 = arith.constant 0 : i32
    %c0_i32_0 = arith.constant 0 : i32
    %c0_i32_1 = arith.constant 0 : i32
    return %c0_i32, %c0_i32_0 : i32, i32
  }
  func.func @transform_7(%arg0: i32, %arg1: i32) -> (i32, i32, i32) {
    %c0_i32 = arith.constant 0 : i32
    %c0_i32_0 = arith.constant 0 : i32
    return %arg0, %arg1, %c0_i32 : i32, i32, i32
  }
}

module attributes {stable_mosaic.version = 11 : i64} {
  func.func @flash_attn_kernel(%arg0: i32, %arg1: i32, %arg2: i32, %arg3: memref<1x8x128xf32, #tpu.memory_space<vmem>>, %arg4: memref<1x4x8x32xbf16, #tpu.memory_space<vmem>>, %arg5: memref<1x4x8x32xbf16, #tpu.memory_space<vmem>>, %arg6: memref<1x4x8x32xbf16, #tpu.memory_space<vmem>>, %arg7: memref<128x128xbf16, #tpu.memory_space<vmem>>, %arg8: memref<1x128xf32, #tpu.memory_space<vmem>>, %arg9: memref<1x8x128xf32, #tpu.memory_space<vmem>>, %arg10: memref<4x8x1xf32, #tpu.memory_space<vmem>>, %arg11: memref<4x8x1xf32, #tpu.memory_space<vmem>>, %arg12: memref<4x8x32xf32, #tpu.memory_space<vmem>>) attributes {dimension_semantics = [#tpu.dimension_semantics<parallel>, #tpu.dimension_semantics<parallel>, #tpu.dimension_semantics<arbitrary>], iteration_bounds = array<i64: 2, 1, 1>, scalar_prefetch = 0 : i64, scratch_operands = 3 : i64, tpu.core_type = #tpu.core_type<tc>, window_params = [{transform_indices = @transform_0, window_bounds = array<i64: 1, 8, 128>}, {transform_indices = @transform_1, window_bounds = array<i64: 1, 4, 8, 32>}, {transform_indices = @transform_2, window_bounds = array<i64: 1, 4, 8, 32>}, {transform_indices = @transform_3, window_bounds = array<i64: 1, 4, 8, 32>}, {pipeline_mode = #tpu.pipeline_mode<synchronous>, transform_indices = @transform_4, window_bounds = array<i64: 128, 128>}, {pipeline_mode = #tpu.pipeline_mode<synchronous>, transform_indices = @transform_5, window_bounds = array<i64: 1, 128>}, {transform_indices = @transform_6, window_bounds = array<i64: 1, 8, 128>}]} {
    %c0_i32 = arith.constant 0 : i32
    %0 = arith.cmpi eq, %arg2, %c0_i32 : i32
    %1 = arith.extui %0 : i1 to i32
    %c0_i32_0 = arith.constant 0 : i32
    %2 = arith.cmpi ne, %1, %c0_i32_0 : i32
    scf.if %2 {
      %cst = arith.constant 0xFF800000 : f32
      %12 = vector.broadcast %cst : f32 to vector<4x8x1xf32>
      %c0 = arith.constant 0 : index
      %c0_5 = arith.constant 0 : index
      %c0_6 = arith.constant 0 : index
      %13 = vector.load %arg10[%c0, %c0_5, %c0_6] : memref<4x8x1xf32, #tpu.memory_space<vmem>>, vector<4x8x1xf32>
      tpu.vector_store %arg10[%c0, %c0_5, %c0_6], %12 {strides = array<i32>} : memref<4x8x1xf32, #tpu.memory_space<vmem>>, vector<4x8x1xf32>,
      %cst_7 = arith.constant 0.000000e+00 : f32
      %14 = vector.broadcast %cst_7 : f32 to vector<4x8x1xf32>
      %c0_8 = arith.constant 0 : index
      %c0_9 = arith.constant 0 : index
      %c0_10 = arith.constant 0 : index
      %15 = vector.load %arg11[%c0_8, %c0_9, %c0_10] : memref<4x8x1xf32, #tpu.memory_space<vmem>>, vector<4x8x1xf32>
      tpu.vector_store %arg11[%c0_8, %c0_9, %c0_10], %14 {strides = array<i32>} : memref<4x8x1xf32, #tpu.memory_space<vmem>>, vector<4x8x1xf32>,
      %cst_11 = arith.constant 0.000000e+00 : f32
      %16 = vector.broadcast %cst_11 : f32 to vector<4x8x32xf32>
      %c0_12 = arith.constant 0 : index
      %c0_13 = arith.constant 0 : index
      %c0_14 = arith.constant 0 : index
      %17 = vector.load %arg12[%c0_12, %c0_13, %c0_14] : memref<4x8x32xf32, #tpu.memory_space<vmem>>, vector<4x8x32xf32>
      tpu.vector_store %arg12[%c0_12, %c0_13, %c0_14], %16 {strides = array<i32>} : memref<4x8x32xf32, #tpu.memory_space<vmem>>, vector<4x8x32xf32>,
    } else {
    }
    %c8_i32 = arith.constant 8 : i32
    %3 = arith.muli %arg2, %c8_i32 : i32
    %c8_i32_1 = arith.constant 8 : i32
    %4 = arith.muli %arg1, %c8_i32_1 : i32
    %c7_i32 = arith.constant 7 : i32
    %5 = arith.addi %4, %c7_i32 : i32
    %6 = arith.cmpi sle, %3, %5 : i32
    %7 = arith.extui %6 : i1 to i32
    %c0_i32_2 = arith.constant 0 : i32
    %8 = arith.cmpi ne, %7, %c0_i32_2 : i32
    scf.if %8 {
      %c0 = arith.constant 0 : index
      %c0_5 = arith.constant 0 : index
      %c0_6 = arith.constant 0 : index
      %c0_7 = arith.constant 0 : index
      %12 = vector.load %arg4[%c0, %c0_5, %c0_6, %c0_7] : memref<1x4x8x32xbf16, #tpu.memory_space<vmem>>, vector<1x4x8x32xbf16>
      %13 = vector.shape_cast %12 : vector<1x4x8x32xbf16> to vector<4x8x32xbf16>
      %c0_8 = arith.constant 0 : index
      %c0_9 = arith.constant 0 : index
      %c0_10 = arith.constant 0 : index
      %c0_11 = arith.constant 0 : index
      %14 = vector.load %arg5[%c0_8, %c0_9, %c0_10, %c0_11] : memref<1x4x8x32xbf16, #tpu.memory_space<vmem>>, vector<1x4x8x32xbf16>
      %15 = vector.shape_cast %14 : vector<1x4x8x32xbf16> to vector<4x8x32xbf16>
      %c0_12 = arith.constant 0 : index
      %c0_13 = arith.constant 0 : index
      %c0_14 = arith.constant 0 : index
      %c0_15 = arith.constant 0 : index
      %16 = vector.load %arg6[%c0_12, %c0_13, %c0_14, %c0_15] : memref<1x4x8x32xbf16, #tpu.memory_space<vmem>>, vector<1x4x8x32xbf16>
      %17 = vector.shape_cast %16 : vector<1x4x8x32xbf16> to vector<4x8x32xbf16>
      "tpu.trace_start"() <{level = 10 : i32, message = "hqd,hkd->hqk"}> : () -> ()
      %cst = arith.constant dense<0.000000e+00> : vector<4x8x8xf32>
      %18 = tpu.matmul %13, %15, %cst {dimension_numbers = #tpu.dot_dimension_numbers<[2], [2], [1], [1], [0, 0, 0, 1, 1, 1], [0], [0]>} : vector<4x8x32xbf16>, vector<4x8x32xbf16>, vector<4x8x8xf32> -> vector<4x8x8xf32>
      "tpu.trace_stop"() : () -> ()
      %cst_16 = arith.constant 0.176776692 : f32
      %19 = vector.broadcast %cst_16 : f32 to vector<4x8x8xf32>
      %20 = arith.mulf %18, %19 : vector<4x8x8xf32>
      %c8_i32_17 = arith.constant 8 : i32
      %21 = arith.muli %arg1, %c8_i32_17 : i32
      %22 = tpu.iota {dimensions = array<i32: 0>} : vector<8x8xi32>
      %23 = vector.broadcast %21 : i32 to vector<8x8xi32>
      %24 = arith.addi %23, %22 : vector<8x8xi32>
      %c8_i32_18 = arith.constant 8 : i32
      %25 = arith.muli %arg2, %c8_i32_18 : i32
      %26 = tpu.iota {dimensions = array<i32: 1>} : vector<8x8xi32>
      %27 = vector.broadcast %25 : i32 to vector<8x8xi32>
      %28 = arith.addi %27, %26 : vector<8x8xi32>
      %29 = arith.cmpi sge, %24, %28 : vector<8x8xi32>
      %30 = vector.shape_cast %29 : vector<8x8xi1> to vector<1x8x8xi1>
      %cst_19 = arith.constant -1.000000e+30 : f32
      %31 = vector.shape_cast %30 : vector<1x8x8xi1> to vector<1x8x8xi1>
      %32 = vector.broadcast %31 : vector<1x8x8xi1> to vector<4x8x8xi1>
      %33 = vector.broadcast %cst_19 : f32 to vector<4x8x8xf32>
      %34 = arith.select %32, %20, %33 : vector<4x8x8xi1>, vector<4x8x8xf32>
      %c0_20 = arith.constant 0 : index
      %c0_21 = arith.constant 0 : index
      %c0_22 = arith.constant 0 : index
      %35 = vector.load %arg10[%c0_20, %c0_21, %c0_22] : memref<4x8x1xf32, #tpu.memory_space<vmem>>, vector<4x8x1xf32>
      %cst_23 = arith.constant dense<0xFF800000> : vector<4x8xf32>
      %36 = vector.multi_reduction <maximumf>, %34, %cst_23 [2] : vector<4x8x8xf32> to vector<4x8xf32>
      %37 = vector.shape_cast %36 : vector<4x8xf32> to vector<4x8x1xf32>
      %38 = arith.maximumf %35, %37 : vector<4x8x1xf32>
      %c0_24 = arith.constant 0 : index
      %c0_25 = arith.constant 0 : index
      %c0_26 = arith.constant 0 : index
      %39 = vector.load %arg10[%c0_24, %c0_25, %c0_26] : memref<4x8x1xf32, #tpu.memory_space<vmem>>, vector<4x8x1xf32>
      %40 = arith.subf %39, %38 : vector<4x8x1xf32>
      %41 = math.exp %40 : vector<4x8x1xf32>
      %42 = vector.broadcast %38 : vector<4x8x1xf32> to vector<4x8x8xf32>
      %43 = arith.subf %34, %42 : vector<4x8x8xf32>
      %44 = math.exp %43 : vector<4x8x8xf32>
      %c0_27 = arith.constant 0 : index
      %c0_28 = arith.constant 0 : index
      %c0_29 = arith.constant 0 : index
      %45 = vector.load %arg11[%c0_27, %c0_28, %c0_29] : memref<4x8x1xf32, #tpu.memory_space<vmem>>, vector<4x8x1xf32>
      %46 = arith.mulf %41, %45 : vector<4x8x1xf32>
      %cst_30 = arith.constant dense<0.000000e+00> : vector<4x8xf32>
      %47 = vector.multi_reduction <add>, %44, %cst_30 [2] : vector<4x8x8xf32> to vector<4x8xf32>
      %48 = vector.shape_cast %47 : vector<4x8xf32> to vector<4x8x1xf32>
      %49 = arith.addf %46, %48 : vector<4x8x1xf32>
      %c0_31 = arith.constant 0 : index
      %c0_32 = arith.constant 0 : index
      %c0_33 = arith.constant 0 : index
      %50 = vector.load %arg11[%c0_31, %c0_32, %c0_33] : memref<4x8x1xf32, #tpu.memory_space<vmem>>, vector<4x8x1xf32>
      tpu.vector_store %arg11[%c0_31, %c0_32, %c0_33], %49 {strides = array<i32>} : memref<4x8x1xf32, #tpu.memory_space<vmem>>, vector<4x8x1xf32>,
      %c0_34 = arith.constant 0 : index
      %c0_35 = arith.constant 0 : index
      %c0_36 = arith.constant 0 : index
      %51 = vector.load %arg12[%c0_34, %c0_35, %c0_36] : memref<4x8x32xf32, #tpu.memory_space<vmem>>, vector<4x8x32xf32>
      %52 = vector.broadcast %41 : vector<4x8x1xf32> to vector<4x8x32xf32>
      %53 = arith.mulf %52, %51 : vector<4x8x32xf32>
      %54 = arith.truncf %44 : vector<4x8x8xf32> to vector<4x8x8xbf16>
      "tpu.trace_start"() <{level = 10 : i32, message = "hqk,hkd->hqd"}> : () -> ()
      %cst_37 = arith.constant dense<0.000000e+00> : vector<4x8x32xf32>
      %55 = tpu.matmul %54, %17, %cst_37 {dimension_numbers = #tpu.dot_dimension_numbers<[2], [1], [1], [2], [0, 0, 0, 1, 1, 2], [0], [0]>} : vector<4x8x8xbf16>, vector<4x8x32xbf16>, vector<4x8x32xf32> -> vector<4x8x32xf32>
      "tpu.trace_stop"() : () -> ()
      %56 = arith.addf %53, %55 : vector<4x8x32xf32>
      %c0_38 = arith.constant 0 : index
      %c0_39 = arith.constant 0 : index
      %c0_40 = arith.constant 0 : index
      %57 = vector.load %arg12[%c0_38, %c0_39, %c0_40] : memref<4x8x32xf32, #tpu.memory_space<vmem>>, vector<4x8x32xf32>
      tpu.vector_store %arg12[%c0_38, %c0_39, %c0_40], %56 {strides = array<i32>} : memref<4x8x32xf32, #tpu.memory_space<vmem>>, vector<4x8x32xf32>,
      %c0_41 = arith.constant 0 : index
      %c0_42 = arith.constant 0 : index
      %c0_43 = arith.constant 0 : index
      %58 = vector.load %arg10[%c0_41, %c0_42, %c0_43] : memref<4x8x1xf32, #tpu.memory_space<vmem>>, vector<4x8x1xf32>
      tpu.vector_store %arg10[%c0_41, %c0_42, %c0_43], %38 {strides = array<i32>} : memref<4x8x1xf32, #tpu.memory_space<vmem>>, vector<4x8x1xf32>,
    } else {
    }
    %c0_i32_3 = arith.constant 0 : i32
    %9 = arith.cmpi eq, %arg2, %c0_i32_3 : i32
    %10 = arith.extui %9 : i1 to i32
    %c0_i32_4 = arith.constant 0 : i32
    %11 = arith.cmpi ne, %10, %c0_i32_4 : i32
    scf.if %11 {
      %c0 = arith.constant 0 : index
      %c0_5 = arith.constant 0 : index
      %c0_6 = arith.constant 0 : index
      %12 = vector.load %arg12[%c0, %c0_5, %c0_6] : memref<4x8x32xf32, #tpu.memory_space<vmem>>, vector<4x8x32xf32>
      %c0_7 = arith.constant 0 : index
      %c0_8 = arith.constant 0 : index
      %c0_9 = arith.constant 0 : index
      %13 = vector.load %arg11[%c0_7, %c0_8, %c0_9] : memref<4x8x1xf32, #tpu.memory_space<vmem>>, vector<4x8x1xf32>
      %14 = tpu.reciprocal %13 {approx = true} : vector<4x8x1xf32> -> vector<4x8x1xf32>
      %15 = vector.broadcast %14 : vector<4x8x1xf32> to vector<4x8x32xf32>
      %16 = arith.mulf %12, %15 : vector<4x8x32xf32>
      %17 = vector.extract_strided_slice %16 {offsets = [0, 0, 0], sizes = [1, 8, 32], strides = [1, 1, 1]} : vector<4x8x32xf32> to vector<1x8x32xf32>
      %18 = vector.shape_cast %17 : vector<1x8x32xf32> to vector<8x32xf32>
      %19 = vector.extract_strided_slice %16 {offsets = [1, 0, 0], sizes = [1, 8, 32], strides = [1, 1, 1]} : vector<4x8x32xf32> to vector<1x8x32xf32>
      %20 = vector.shape_cast %19 : vector<1x8x32xf32> to vector<8x32xf32>
      %21 = vector.extract_strided_slice %16 {offsets = [2, 0, 0], sizes = [1, 8, 32], strides = [1, 1, 1]} : vector<4x8x32xf32> to vector<1x8x32xf32>
      %22 = vector.shape_cast %21 : vector<1x8x32xf32> to vector<8x32xf32>
      %23 = vector.extract_strided_slice %16 {offsets = [3, 0, 0], sizes = [1, 8, 32], strides = [1, 1, 1]} : vector<4x8x32xf32> to vector<1x8x32xf32>
      %24 = vector.shape_cast %23 : vector<1x8x32xf32> to vector<8x32xf32>
      %25 = tpu.concatenate %18, %20, %22, %24 in 1 : vector<8x32xf32>, vector<8x32xf32>, vector<8x32xf32>, vector<8x32xf32> -> vector<8x128xf32>
      %26 = arith.truncf %25 : vector<8x128xf32> to vector<8x128xbf16>
      %c0_10 = arith.constant 0 : index
      %c0_11 = arith.constant 0 : index
      %27 = vector.load %arg7[%c0_10, %c0_11] : memref<128x128xbf16, #tpu.memory_space<vmem>>, vector<128x128xbf16>
      %cst = arith.constant dense<0.000000e+00> : vector<8x128xf32>
      %28 = tpu.matmul %26, %27, %cst {dimension_numbers = #tpu.dot_dimension_numbers<[1], [0], [0], [1], [0, 0, 1, 1], [], []>} : vector<8x128xbf16>, vector<128x128xbf16>, vector<8x128xf32> -> vector<8x128xf32>
      %c0_12 = arith.constant 0 : index
      %c0_13 = arith.constant 0 : index
      %29 = vector.load %arg8[%c0_12, %c0_13] : memref<1x128xf32, #tpu.memory_space<vmem>>, vector<1x128xf32>
      %30 = vector.shape_cast %29 : vector<1x128xf32> to vector<128xf32>
      %31 = vector.shape_cast %30 : vector<128xf32> to vector<1x128xf32>
      %32 = vector.broadcast %31 : vector<1x128xf32> to vector<8x128xf32>
      %33 = arith.addf %28, %32 : vector<8x128xf32>
      %c0_14 = arith.constant 0 : index
      %c0_15 = arith.constant 0 : index
      %c0_16 = arith.constant 0 : index
      %34 = vector.load %arg3[%c0_14, %c0_15, %c0_16] : memref<1x8x128xf32, #tpu.memory_space<vmem>>, vector<1x8x128xf32>
      %35 = vector.shape_cast %34 : vector<1x8x128xf32> to vector<8x128xf32>
      %36 = arith.addf %35, %33 : vector<8x128xf32>
      %c0_17 = arith.constant 0 : index
      %c0_18 = arith.constant 0 : index
      %c0_19 = arith.constant 0 : index
      %37 = vector.load %arg9[%c0_17, %c0_18, %c0_19] : memref<1x8x128xf32, #tpu.memory_space<vmem>>, vector<1x8x128xf32>
      %38 = vector.shape_cast %37 : vector<1x8x128xf32> to vector<8x128xf32>
      %39 = vector.shape_cast %36 : vector<8x128xf32> to vector<1x8x128xf32>
      tpu.vector_store %arg9[%c0_17, %c0_18, %c0_19], %39 {strides = array<i32>} : memref<1x8x128xf32, #tpu.memory_space<vmem>>, vector<1x8x128xf32>,
    } else {
    }
    return
  }
  func.func @transform_0(%arg0: i32, %arg1: i32, %arg2: i32) -> (i32, i32, i32) {
    %c0_i32 = arith.constant 0 : i32
    %c0_i32_0 = arith.constant 0 : i32
    return %arg0, %arg1, %c0_i32 : i32, i32, i32
  }
  func.func @transform_1(%arg0: i32, %arg1: i32, %arg2: i32) -> (i32, i32, i32, i32) {
    %c0_i32 = arith.constant 0 : i32
    %c0_i32_0 = arith.constant 0 : i32
    %c0_i32_1 = arith.constant 0 : i32
    return %arg0, %c0_i32, %arg1, %c0_i32_0 : i32, i32, i32, i32
  }
  func.func @transform_2(%arg0: i32, %arg1: i32, %arg2: i32) -> (i32, i32, i32, i32) {
    %c0_i32 = arith.constant 0 : i32
    %c0_i32_0 = arith.constant 0 : i32
    %c0_i32_1 = arith.constant 0 : i32
    return %arg0, %c0_i32, %arg2, %c0_i32_0 : i32, i32, i32, i32
  }
  func.func @transform_3(%arg0: i32, %arg1: i32, %arg2: i32) -> (i32, i32, i32, i32) {
    %c0_i32 = arith.constant 0 : i32
    %c0_i32_0 = arith.constant 0 : i32
    %c0_i32_1 = arith.constant 0 : i32
    return %arg0, %c0_i32, %arg2, %c0_i32_0 : i32, i32, i32, i32
  }
  func.func @transform_4(%arg0: i32, %arg1: i32, %arg2: i32) -> (i32, i32) {
    %c0_i32 = arith.constant 0 : i32
    %c0_i32_0 = arith.constant 0 : i32
    %c0_i32_1 = arith.constant 0 : i32
    return %c0_i32, %c0_i32_0 : i32, i32
  }
  func.func @transform_5(%arg0: i32, %arg1: i32, %arg2: i32) -> (i32, i32) {
    %c0_i32 = arith.constant 0 : i32
    %c0_i32_0 = arith.constant 0 : i32
    %c0_i32_1 = arith.constant 0 : i32
    return %c0_i32, %c0_i32_0 : i32, i32
  }
  func.func @transform_6(%arg0: i32, %arg1: i32, %arg2: i32) -> (i32, i32, i32) {
    %c0_i32 = arith.constant 0 : i32
    %c0_i32_0 = arith.constant 0 : i32
    return %arg0, %arg1, %c0_i32 : i32, i32, i32
  }
}

module attributes {stable_mosaic.version = 11 : i64} {
  func.func @qkv_kernel(%arg0: i32, %arg1: i32, %arg2: memref<1x16x128xf32, #tpu.memory_space<vmem>>, %arg3: memref<1x128xf32, #tpu.memory_space<vmem>>, %arg4: memref<1x128xf32, #tpu.memory_space<vmem>>, %arg5: memref<128x384xbf16, #tpu.memory_space<vmem>>, %arg6: memref<1x384xf32, #tpu.memory_space<vmem>>, %arg7: memref<1x4x16x32xbf16, #tpu.memory_space<vmem>>, %arg8: memref<1x4x16x32xbf16, #tpu.memory_space<vmem>>, %arg9: memref<1x4x16x32xbf16, #tpu.memory_space<vmem>>) attributes {dimension_semantics = [#tpu.dimension_semantics<parallel>, #tpu.dimension_semantics<parallel>], iteration_bounds = array<i64: 2, 1>, scalar_prefetch = 0 : i64, scratch_operands = 0 : i64, tpu.core_type = #tpu.core_type<tc>, window_params = [{transform_indices = @transform_0, window_bounds = array<i64: 1, 16, 128>}, {pipeline_mode = #tpu.pipeline_mode<synchronous>, transform_indices = @transform_1, window_bounds = array<i64: 1, 128>}, {pipeline_mode = #tpu.pipeline_mode<synchronous>, transform_indices = @transform_2, window_bounds = array<i64: 1, 128>}, {pipeline_mode = #tpu.pipeline_mode<synchronous>, transform_indices = @transform_3, window_bounds = array<i64: 128, 384>}, {pipeline_mode = #tpu.pipeline_mode<synchronous>, transform_indices = @transform_4, window_bounds = array<i64: 1, 384>}, {transform_indices = @transform_5, window_bounds = array<i64: 1, 4, 16, 32>}, {transform_indices = @transform_6, window_bounds = array<i64: 1, 4, 16, 32>}, {transform_indices = @transform_7, window_bounds = array<i64: 1, 4, 16, 32>}]} {
    %c0 = arith.constant 0 : index
    %c0_0 = arith.constant 0 : index
    %c0_1 = arith.constant 0 : index
    %0 = vector.load %arg2[%c0, %c0_0, %c0_1] : memref<1x16x128xf32, #tpu.memory_space<vmem>>, vector<1x16x128xf32>
    %1 = vector.shape_cast %0 : vector<1x16x128xf32> to vector<16x128xf32>
    %c0_2 = arith.constant 0 : index
    %c0_3 = arith.constant 0 : index
    %2 = vector.load %arg3[%c0_2, %c0_3] : memref<1x128xf32, #tpu.memory_space<vmem>>, vector<1x128xf32>
    %3 = vector.shape_cast %2 : vector<1x128xf32> to vector<128xf32>
    %c0_4 = arith.constant 0 : index
    %c0_5 = arith.constant 0 : index
    %4 = vector.load %arg4[%c0_4, %c0_5] : memref<1x128xf32, #tpu.memory_space<vmem>>, vector<1x128xf32>
    %5 = vector.shape_cast %4 : vector<1x128xf32> to vector<128xf32>
    %cst = arith.constant dense<0.000000e+00> : vector<16xf32>
    %6 = vector.multi_reduction <add>, %1, %cst [1] : vector<16x128xf32> to vector<16xf32>
    %7 = vector.shape_cast %6 : vector<16xf32> to vector<16x1xf32>
    %cst_6 = arith.constant 1.280000e+02 : f32
    %8 = vector.broadcast %cst_6 : f32 to vector<16x1xf32>
    %9 = arith.divf %7, %8 : vector<16x1xf32>
    %10 = vector.broadcast %9 : vector<16x1xf32> to vector<16x128xf32>
    %11 = arith.subf %1, %10 : vector<16x128xf32>
    %12 = arith.mulf %11, %11 : vector<16x128xf32>
    %cst_7 = arith.constant dense<0.000000e+00> : vector<16xf32>
    %13 = vector.multi_reduction <add>, %12, %cst_7 [1] : vector<16x128xf32> to vector<16xf32>
    %14 = vector.shape_cast %13 : vector<16xf32> to vector<16x1xf32>
    %cst_8 = arith.constant 1.280000e+02 : f32
    %15 = vector.broadcast %cst_8 : f32 to vector<16x1xf32>
    %16 = arith.divf %14, %15 : vector<16x1xf32>
    %17 = vector.broadcast %9 : vector<16x1xf32> to vector<16x128xf32>
    %18 = arith.subf %1, %17 : vector<16x128xf32>
    %cst_9 = arith.constant 9.99999974E-6 : f32
    %19 = vector.broadcast %cst_9 : f32 to vector<16x1xf32>
    %20 = arith.addf %16, %19 : vector<16x1xf32>
    %21 = math.rsqrt %20 : vector<16x1xf32>
    %22 = vector.broadcast %21 : vector<16x1xf32> to vector<16x128xf32>
    %23 = arith.mulf %18, %22 : vector<16x128xf32>
    %24 = vector.shape_cast %3 : vector<128xf32> to vector<1x128xf32>
    %25 = vector.broadcast %24 : vector<1x128xf32> to vector<16x128xf32>
    %26 = arith.mulf %23, %25 : vector<16x128xf32>
    %27 = vector.shape_cast %5 : vector<128xf32> to vector<1x128xf32>
    %28 = vector.broadcast %27 : vector<1x128xf32> to vector<16x128xf32>
    %29 = arith.addf %26, %28 : vector<16x128xf32>
    %30 = arith.truncf %29 : vector<16x128xf32> to vector<16x128xbf16>
    %c0_10 = arith.constant 0 : index
    %c0_11 = arith.constant 0 : index
    %31 = vector.load %arg5[%c0_10, %c0_11] : memref<128x384xbf16, #tpu.memory_space<vmem>>, vector<128x384xbf16>
    %cst_12 = arith.constant dense<0.000000e+00> : vector<16x384xf32>
    %32 = tpu.matmul %30, %31, %cst_12 {dimension_numbers = #tpu.dot_dimension_numbers<[1], [0], [0], [1], [0, 0, 1, 1], [], []>} : vector<16x128xbf16>, vector<128x384xbf16>, vector<16x384xf32> -> vector<16x384xf32>
    %c0_13 = arith.constant 0 : index
    %c0_14 = arith.constant 0 : index
    %33 = vector.load %arg6[%c0_13, %c0_14] : memref<1x384xf32, #tpu.memory_space<vmem>>, vector<1x384xf32>
    %34 = vector.shape_cast %33 : vector<1x384xf32> to vector<384xf32>
    %35 = vector.shape_cast %34 : vector<384xf32> to vector<1x384xf32>
    %36 = vector.broadcast %35 : vector<1x384xf32> to vector<16x384xf32>
    %37 = arith.addf %32, %36 : vector<16x384xf32>
    %38 = vector.extract_strided_slice %37 {offsets = [0, 0], sizes = [16, 32], strides = [1, 1]} : vector<16x384xf32> to vector<16x32xf32>
    %39 = arith.truncf %38 : vector<16x32xf32> to vector<16x32xbf16>
    %c0_15 = arith.constant 0 : index
    %c0_16 = arith.constant 0 : index
    %c0_17 = arith.constant 0 : index
    %c0_18 = arith.constant 0 : index
    %40 = vector.load %arg7[%c0_15, %c0_16, %c0_17, %c0_18] : memref<1x4x16x32xbf16, #tpu.memory_space<vmem>>, vector<1x1x16x32xbf16>
    %41 = vector.shape_cast %40 : vector<1x1x16x32xbf16> to vector<16x32xbf16>
    %42 = vector.shape_cast %39 : vector<16x32xbf16> to vector<1x1x16x32xbf16>
    tpu.vector_store %arg7[%c0_15, %c0_16, %c0_17, %c0_18], %42 {strides = array<i32>} : memref<1x4x16x32xbf16, #tpu.memory_space<vmem>>, vector<1x1x16x32xbf16>,
    %43 = vector.extract_strided_slice %37 {offsets = [0, 128], sizes = [16, 32], strides = [1, 1]} : vector<16x384xf32> to vector<16x32xf32>
    %44 = arith.truncf %43 : vector<16x32xf32> to vector<16x32xbf16>
    %c0_19 = arith.constant 0 : index
    %c0_20 = arith.constant 0 : index
    %c0_21 = arith.constant 0 : index
    %c0_22 = arith.constant 0 : index
    %45 = vector.load %arg8[%c0_19, %c0_20, %c0_21, %c0_22] : memref<1x4x16x32xbf16, #tpu.memory_space<vmem>>, vector<1x1x16x32xbf16>
    %46 = vector.shape_cast %45 : vector<1x1x16x32xbf16> to vector<16x32xbf16>
    %47 = vector.shape_cast %44 : vector<16x32xbf16> to vector<1x1x16x32xbf16>
    tpu.vector_store %arg8[%c0_19, %c0_20, %c0_21, %c0_22], %47 {strides = array<i32>} : memref<1x4x16x32xbf16, #tpu.memory_space<vmem>>, vector<1x1x16x32xbf16>,
    %48 = vector.extract_strided_slice %37 {offsets = [0, 256], sizes = [16, 32], strides = [1, 1]} : vector<16x384xf32> to vector<16x32xf32>
    %49 = arith.truncf %48 : vector<16x32xf32> to vector<16x32xbf16>
    %c0_23 = arith.constant 0 : index
    %c0_24 = arith.constant 0 : index
    %c0_25 = arith.constant 0 : index
    %c0_26 = arith.constant 0 : index
    %50 = vector.load %arg9[%c0_23, %c0_24, %c0_25, %c0_26] : memref<1x4x16x32xbf16, #tpu.memory_space<vmem>>, vector<1x1x16x32xbf16>
    %51 = vector.shape_cast %50 : vector<1x1x16x32xbf16> to vector<16x32xbf16>
    %52 = vector.shape_cast %49 : vector<16x32xbf16> to vector<1x1x16x32xbf16>
    tpu.vector_store %arg9[%c0_23, %c0_24, %c0_25, %c0_26], %52 {strides = array<i32>} : memref<1x4x16x32xbf16, #tpu.memory_space<vmem>>, vector<1x1x16x32xbf16>,
    %53 = vector.extract_strided_slice %37 {offsets = [0, 32], sizes = [16, 32], strides = [1, 1]} : vector<16x384xf32> to vector<16x32xf32>
    %54 = arith.truncf %53 : vector<16x32xf32> to vector<16x32xbf16>
    %c0_27 = arith.constant 0 : index
    %c1 = arith.constant 1 : index
    %c0_28 = arith.constant 0 : index
    %c0_29 = arith.constant 0 : index
    %55 = vector.load %arg7[%c0_27, %c1, %c0_28, %c0_29] : memref<1x4x16x32xbf16, #tpu.memory_space<vmem>>, vector<1x1x16x32xbf16>
    %56 = vector.shape_cast %55 : vector<1x1x16x32xbf16> to vector<16x32xbf16>
    %57 = vector.shape_cast %54 : vector<16x32xbf16> to vector<1x1x16x32xbf16>
    tpu.vector_store %arg7[%c0_27, %c1, %c0_28, %c0_29], %57 {strides = array<i32>} : memref<1x4x16x32xbf16, #tpu.memory_space<vmem>>, vector<1x1x16x32xbf16>,
    %58 = vector.extract_strided_slice %37 {offsets = [0, 160], sizes = [16, 32], strides = [1, 1]} : vector<16x384xf32> to vector<16x32xf32>
    %59 = arith.truncf %58 : vector<16x32xf32> to vector<16x32xbf16>
    %c0_30 = arith.constant 0 : index
    %c1_31 = arith.constant 1 : index
    %c0_32 = arith.constant 0 : index
    %c0_33 = arith.constant 0 : index
    %60 = vector.load %arg8[%c0_30, %c1_31, %c0_32, %c0_33] : memref<1x4x16x32xbf16, #tpu.memory_space<vmem>>, vector<1x1x16x32xbf16>
    %61 = vector.shape_cast %60 : vector<1x1x16x32xbf16> to vector<16x32xbf16>
    %62 = vector.shape_cast %59 : vector<16x32xbf16> to vector<1x1x16x32xbf16>
    tpu.vector_store %arg8[%c0_30, %c1_31, %c0_32, %c0_33], %62 {strides = array<i32>} : memref<1x4x16x32xbf16, #tpu.memory_space<vmem>>, vector<1x1x16x32xbf16>,
    %63 = vector.extract_strided_slice %37 {offsets = [0, 288], sizes = [16, 32], strides = [1, 1]} : vector<16x384xf32> to vector<16x32xf32>
    %64 = arith.truncf %63 : vector<16x32xf32> to vector<16x32xbf16>
    %c0_34 = arith.constant 0 : index
    %c1_35 = arith.constant 1 : index
    %c0_36 = arith.constant 0 : index
    %c0_37 = arith.constant 0 : index
    %65 = vector.load %arg9[%c0_34, %c1_35, %c0_36, %c0_37] : memref<1x4x16x32xbf16, #tpu.memory_space<vmem>>, vector<1x1x16x32xbf16>
    %66 = vector.shape_cast %65 : vector<1x1x16x32xbf16> to vector<16x32xbf16>
    %67 = vector.shape_cast %64 : vector<16x32xbf16> to vector<1x1x16x32xbf16>
    tpu.vector_store %arg9[%c0_34, %c1_35, %c0_36, %c0_37], %67 {strides = array<i32>} : memref<1x4x16x32xbf16, #tpu.memory_space<vmem>>, vector<1x1x16x32xbf16>,
    %68 = vector.extract_strided_slice %37 {offsets = [0, 64], sizes = [16, 32], strides = [1, 1]} : vector<16x384xf32> to vector<16x32xf32>
    %69 = arith.truncf %68 : vector<16x32xf32> to vector<16x32xbf16>
    %c0_38 = arith.constant 0 : index
    %c2 = arith.constant 2 : index
    %c0_39 = arith.constant 0 : index
    %c0_40 = arith.constant 0 : index
    %70 = vector.load %arg7[%c0_38, %c2, %c0_39, %c0_40] : memref<1x4x16x32xbf16, #tpu.memory_space<vmem>>, vector<1x1x16x32xbf16>
    %71 = vector.shape_cast %70 : vector<1x1x16x32xbf16> to vector<16x32xbf16>
    %72 = vector.shape_cast %69 : vector<16x32xbf16> to vector<1x1x16x32xbf16>
    tpu.vector_store %arg7[%c0_38, %c2, %c0_39, %c0_40], %72 {strides = array<i32>} : memref<1x4x16x32xbf16, #tpu.memory_space<vmem>>, vector<1x1x16x32xbf16>,
    %73 = vector.extract_strided_slice %37 {offsets = [0, 192], sizes = [16, 32], strides = [1, 1]} : vector<16x384xf32> to vector<16x32xf32>
    %74 = arith.truncf %73 : vector<16x32xf32> to vector<16x32xbf16>
    %c0_41 = arith.constant 0 : index
    %c2_42 = arith.constant 2 : index
    %c0_43 = arith.constant 0 : index
    %c0_44 = arith.constant 0 : index
    %75 = vector.load %arg8[%c0_41, %c2_42, %c0_43, %c0_44] : memref<1x4x16x32xbf16, #tpu.memory_space<vmem>>, vector<1x1x16x32xbf16>
    %76 = vector.shape_cast %75 : vector<1x1x16x32xbf16> to vector<16x32xbf16>
    %77 = vector.shape_cast %74 : vector<16x32xbf16> to vector<1x1x16x32xbf16>
    tpu.vector_store %arg8[%c0_41, %c2_42, %c0_43, %c0_44], %77 {strides = array<i32>} : memref<1x4x16x32xbf16, #tpu.memory_space<vmem>>, vector<1x1x16x32xbf16>,
    %78 = vector.extract_strided_slice %37 {offsets = [0, 320], sizes = [16, 32], strides = [1, 1]} : vector<16x384xf32> to vector<16x32xf32>
    %79 = arith.truncf %78 : vector<16x32xf32> to vector<16x32xbf16>
    %c0_45 = arith.constant 0 : index
    %c2_46 = arith.constant 2 : index
    %c0_47 = arith.constant 0 : index
    %c0_48 = arith.constant 0 : index
    %80 = vector.load %arg9[%c0_45, %c2_46, %c0_47, %c0_48] : memref<1x4x16x32xbf16, #tpu.memory_space<vmem>>, vector<1x1x16x32xbf16>
    %81 = vector.shape_cast %80 : vector<1x1x16x32xbf16> to vector<16x32xbf16>
    %82 = vector.shape_cast %79 : vector<16x32xbf16> to vector<1x1x16x32xbf16>
    tpu.vector_store %arg9[%c0_45, %c2_46, %c0_47, %c0_48], %82 {strides = array<i32>} : memref<1x4x16x32xbf16, #tpu.memory_space<vmem>>, vector<1x1x16x32xbf16>,
    %83 = vector.extract_strided_slice %37 {offsets = [0, 96], sizes = [16, 32], strides = [1, 1]} : vector<16x384xf32> to vector<16x32xf32>
    %84 = arith.truncf %83 : vector<16x32xf32> to vector<16x32xbf16>
    %c0_49 = arith.constant 0 : index
    %c3 = arith.constant 3 : index
    %c0_50 = arith.constant 0 : index
    %c0_51 = arith.constant 0 : index
    %85 = vector.load %arg7[%c0_49, %c3, %c0_50, %c0_51] : memref<1x4x16x32xbf16, #tpu.memory_space<vmem>>, vector<1x1x16x32xbf16>
    %86 = vector.shape_cast %85 : vector<1x1x16x32xbf16> to vector<16x32xbf16>
    %87 = vector.shape_cast %84 : vector<16x32xbf16> to vector<1x1x16x32xbf16>
    tpu.vector_store %arg7[%c0_49, %c3, %c0_50, %c0_51], %87 {strides = array<i32>} : memref<1x4x16x32xbf16, #tpu.memory_space<vmem>>, vector<1x1x16x32xbf16>,
    %88 = vector.extract_strided_slice %37 {offsets = [0, 224], sizes = [16, 32], strides = [1, 1]} : vector<16x384xf32> to vector<16x32xf32>
    %89 = arith.truncf %88 : vector<16x32xf32> to vector<16x32xbf16>
    %c0_52 = arith.constant 0 : index
    %c3_53 = arith.constant 3 : index
    %c0_54 = arith.constant 0 : index
    %c0_55 = arith.constant 0 : index
    %90 = vector.load %arg8[%c0_52, %c3_53, %c0_54, %c0_55] : memref<1x4x16x32xbf16, #tpu.memory_space<vmem>>, vector<1x1x16x32xbf16>
    %91 = vector.shape_cast %90 : vector<1x1x16x32xbf16> to vector<16x32xbf16>
    %92 = vector.shape_cast %89 : vector<16x32xbf16> to vector<1x1x16x32xbf16>
    tpu.vector_store %arg8[%c0_52, %c3_53, %c0_54, %c0_55], %92 {strides = array<i32>} : memref<1x4x16x32xbf16, #tpu.memory_space<vmem>>, vector<1x1x16x32xbf16>,
    %93 = vector.extract_strided_slice %37 {offsets = [0, 352], sizes = [16, 32], strides = [1, 1]} : vector<16x384xf32> to vector<16x32xf32>
    %94 = arith.truncf %93 : vector<16x32xf32> to vector<16x32xbf16>
    %c0_56 = arith.constant 0 : index
    %c3_57 = arith.constant 3 : index
    %c0_58 = arith.constant 0 : index
    %c0_59 = arith.constant 0 : index
    %95 = vector.load %arg9[%c0_56, %c3_57, %c0_58, %c0_59] : memref<1x4x16x32xbf16, #tpu.memory_space<vmem>>, vector<1x1x16x32xbf16>
    %96 = vector.shape_cast %95 : vector<1x1x16x32xbf16> to vector<16x32xbf16>
    %97 = vector.shape_cast %94 : vector<16x32xbf16> to vector<1x1x16x32xbf16>
    tpu.vector_store %arg9[%c0_56, %c3_57, %c0_58, %c0_59], %97 {strides = array<i32>} : memref<1x4x16x32xbf16, #tpu.memory_space<vmem>>, vector<1x1x16x32xbf16>,
    return
  }
  func.func @transform_0(%arg0: i32, %arg1: i32) -> (i32, i32, i32) {
    %c0_i32 = arith.constant 0 : i32
    %c0_i32_0 = arith.constant 0 : i32
    return %arg0, %arg1, %c0_i32 : i32, i32, i32
  }
  func.func @transform_1(%arg0: i32, %arg1: i32) -> (i32, i32) {
    %c0_i32 = arith.constant 0 : i32
    %c0_i32_0 = arith.constant 0 : i32
    %c0_i32_1 = arith.constant 0 : i32
    return %c0_i32, %c0_i32_0 : i32, i32
  }
  func.func @transform_2(%arg0: i32, %arg1: i32) -> (i32, i32) {
    %c0_i32 = arith.constant 0 : i32
    %c0_i32_0 = arith.constant 0 : i32
    %c0_i32_1 = arith.constant 0 : i32
    return %c0_i32, %c0_i32_0 : i32, i32
  }
  func.func @transform_3(%arg0: i32, %arg1: i32) -> (i32, i32) {
    %c0_i32 = arith.constant 0 : i32
    %c0_i32_0 = arith.constant 0 : i32
    %c0_i32_1 = arith.constant 0 : i32
    return %c0_i32, %c0_i32_0 : i32, i32
  }
  func.func @transform_4(%arg0: i32, %arg1: i32) -> (i32, i32) {
    %c0_i32 = arith.constant 0 : i32
    %c0_i32_0 = arith.constant 0 : i32
    %c0_i32_1 = arith.constant 0 : i32
    return %c0_i32, %c0_i32_0 : i32, i32
  }
  func.func @transform_5(%arg0: i32, %arg1: i32) -> (i32, i32, i32, i32) {
    %c0_i32 = arith.constant 0 : i32
    %c0_i32_0 = arith.constant 0 : i32
    %c0_i32_1 = arith.constant 0 : i32
    return %arg0, %c0_i32, %arg1, %c0_i32_0 : i32, i32, i32, i32
  }
  func.func @transform_6(%arg0: i32, %arg1: i32) -> (i32, i32, i32, i32) {
    %c0_i32 = arith.constant 0 : i32
    %c0_i32_0 = arith.constant 0 : i32
    %c0_i32_1 = arith.constant 0 : i32
    return %arg0, %c0_i32, %arg1, %c0_i32_0 : i32, i32, i32, i32
  }
  func.func @transform_7(%arg0: i32, %arg1: i32) -> (i32, i32, i32, i32) {
    %c0_i32 = arith.constant 0 : i32
    %c0_i32_0 = arith.constant 0 : i32
    %c0_i32_1 = arith.constant 0 : i32
    return %arg0, %c0_i32, %arg1, %c0_i32_0 : i32, i32, i32, i32
  }
}

</mosaic_0001>

<bundles_post_ra>
// kernel: hourglass_forward.9
= control target key start
LH: loop header
LB: loop body
LE: loop exit
PB: predicated region body
PF: predicated region fallthrough
CT: control target
= control target key end

     0   :  { %13 = vsyncpa [#allocation3], 0  ;;  %s1285_s24 = smov 0   ;;  %s1287_s25 = smov 0   ;;  %s1436_s0 = inlined_call_operand.vmem [shape: f32[2,16,128], index: 0, kind: input, shape index: {}]   ;;  %s1437_s1 = inlined_call_operand.vmem [shape: f32[1,128], index: 1, kind: input, shape index: {}]   ;;  %s1438_s2 = inlined_call_operand.vmem [shape: f32[1,128], index: 2, kind: input, shape index: {}]   ;;  %s1439_s3 = inlined_call_operand.hbm [shape: bf16[128,384], index: 3, kind: input, shape index: {}]   ;;  %s1440_s4 = inlined_call_operand.vmem [shape: f32[1,384], index: 4, kind: input, shape index: {}]   ;;  %s1441_s5 = inlined_call_operand.vmem [shape: bf16[2,4,16,32], index: 5, kind: output, shape index: {0}]   ;;  %s1442_s6 = inlined_call_operand.vmem [shape: bf16[2,4,16,32], index: 6, kind: output, shape index: {1}]   ;;  %s1443_s7 = inlined_call_operand.vmem [shape: bf16[2,4,16,32], index: 7, kind: output, shape index: {2}]  }
   0x1   :  { %s1289_s26 = smov 0  }
   0x2 LB: > { %s997_s27 = sadd.s32 4294967295, %s1234_s26   ;;  %s31_s28 = sadd.s32 1, %s1230_s25  ;;  %s1234_s26 = sphi %s1289_s26, %s19_s26   ;;  %s1230_s25 = sphi %s1287_s25, %s1447_s25   ;;  %s1226_s24 = sphi %s1285_s24, %s1446_s24  }
   0x3   : > { %p33_p0 = scmp.ge.s32.totalorder %s31_s28, 2  ;;  %p999_p1 = scmp.ge.s32.totalorder %s1234_s26, 1 }
   0x4   : > { %p232_p2 = scmp.lt.s32.totalorder %s1234_s26, 3  ;;  %p1310_p4 = scmp.eq.s32.totalorder %s997_s27, 0 }
   0x5   : > { %s1449_s28 = smov (%p33_p0, %s31_s28), 0  ;;  %s1236_s8 = smov [#allocation2]  }
   0x6   : > { %p1306_p3 = pnand %p999_p1, %p232_p2  ;;  %s250_s9 = sshll.u32 %s1236_s8, 4  ;;  %s251_s9 = int_to_ptr.vmem [resolvable:$true] %s250_s9 }
   0x7   : > { %s1193_s10 = scalar_lea.vmem %s251_s9, 3072  ;;  %p1201_p11 = scmp.lt.s32.totalorder %s251_s9, %s251_s9 }
   0x8   : > { %p1107_p5 = pneg %p1306_p3  ;;  %p1194_p8 = scmp.ne.s32.totalorder %s251_s9, %s1193_s10 }
   0x9   : > { %p1202_p12 = scmp.lt.s32.totalorder %s1193_s10, %s1193_s10 }
   0xa   : > { %p1108_p6 = pnand %p1310_p4, %p1107_p5 }
   0xb   : > { %p1203_p13 = por %p1202_p12, %p1201_p11 }
   0xc   : > { %p1184_p7 = pneg %p1108_p6 }
   0xe   : > { %p1196_p9 = pnand %p1194_p8, %p1184_p7 }
  0x10   : > { %p1197_p10 = pneg %p1196_p9 }
  0x12   : > { %p1204_p0 = pnand %p1203_p13, %p1197_p10 }
  0x14   : > { %1207 = shalt.err (!%p1204_p0)
}
  0x15   : > { %s1237_s11 = smov 192   ;;  %s1238_s12 = smov 12  }
  0x16   : > { %1110 = dma.hbm_to_vmem [thread:$0]  (!%p1108_p6), %s1439_s3, 3072, %s251_s9, [#allocation3], %s1237_s11, %s1237_s11, %s1238_s12  }
  0x17   : > { %282 = sbr.rel (%p1306_p3) target bundleno = 698 (0x2ba), region = 40 }
  0x1c   : > { %1221 = dma.done.wait (%p1310_p4), [#allocation3], 3072  }
  0x1d   : > { %1223 = vsyncadd (%p1310_p4), [#allocation3], 4294964224  ;;  %p341_p1 = scmp.lt.s32.totalorder %s1226_s24, 1  ;;  %v1146_v2 = vld [vmem:[#allocation2 + $0xac] ss:$12 sps:$4 sm:$0xff]   ;;  %v1239_v4 = vmov 0.0   ;;  %v459_v53 = vlaneseq }
  0x1e   : > { %v1148_v3 = vld [vmem:[#allocation2 + $0xa8] ss:$12 sps:$4 sm:$0xff]   ;;  %1083 = vmatprep.subr.bf16.mxu1 %v1239_v4  ;;  %v1149_v5 = vld [vmem:[#allocation2 + $0xb0] ss:$12 sps:$4 sm:$0xff]   ;;  %602 = vmatprep.subr.bf16.mxu0 %v1146_v2  ;;  %v1153_v16 = vld [vmem:[#allocation2 + $0x98] ss:$12 sps:$4 sm:$0xff]  }
  0x1f   : > { %s1451_s24 = smov (!%p341_p1, %s1226_s24), 1  ;;  %603 = vmatpush1.bf16.msra.mxu0 %v1148_v3  ;;  %1084 = vmatpush3.bf16.msra.mxu1 %v1149_v5  ;;  %v1150_v14 = vld [vmem:[#allocation2 + $0x94] ss:$12 sps:$4 sm:$0xff]   ;;  %v1152_v15 = vld [vmem:[#allocation2 + $0x90] ss:$12 sps:$4 sm:$0xff]   ;;  %v1240_v27 = vmov 0  }
  0x20   : > { %s1064_s15 = sshll.u32 %s1451_s24, 4  ;;  %1085 = vmatprep.subr.bf16.mxu1 %v1239_v4  ;;  %604 = vmatprep.subr.bf16.mxu0 %v1150_v14  ;;  %v1154_v17 = vld [vmem:[#allocation2 + $0x7c] ss:$12 sps:$4 sm:$0xff]   ;;  %v1156_v18 = vld [vmem:[#allocation2 + $0x78] ss:$12 sps:$4 sm:$0xff]   ;;  %vm1241_vm0 = vmmov 0  }
  0x21   : > { %s348_s18 = scalar_lea.vmem %s1436_s0, %s1064_s15  ;;  %v1157_v19 = vld [vmem:[#allocation2 + $0x80] ss:$12 sps:$4 sm:$0xff]   ;;  %v1158_v20 = vld [vmem:[#allocation2 + $0x64] ss:$12 sps:$4 sm:$0xff]   ;;  %v1161_v22 = vld [vmem:[#allocation2 + $0x68] ss:$12 sps:$4 sm:$0xff]   ;;  %634 = vmatprep.mubr.bf16.mxu0 %v1240_v27  ;;  %1099 = vmatprep.mubr.msk.bf16.mxu1 %vm1241_vm0, %v1239_v4 }
  0x22   : > { %v381_v0 = vld [vmem:[%s348_s18] sm:$0xff]  ;;  %v382_v1 = vld [vmem:[%s348_s18 + $0x8] sm:$0xff]  ;;  %v1165_v25 = vld [vmem:[#allocation2 + $0x50] ss:$12 sps:$4 sm:$0xff]   ;;  %v460_v54 = vshrl.u32 %v459_v53, 7  ;;  %s1065_s29 = sshll.u32 %s1451_s24, 5 }
  0x23   : > { %385 = vadd.xlane.f32.xlu0 %v381_v0  ;;  %605 = vmatpush1.bf16.msra.mxu0 %v1152_v15  ;;  %v1160_v21 = vld [vmem:[#allocation2 + $0x60] ss:$12 sps:$4 sm:$0xff]   ;;  %v1164_v24 = vld [vmem:[#allocation2 + $0x48] ss:$12 sps:$4 sm:$0xff]   ;;  %v1168_v28 = vld [vmem:[#allocation2 + $0x30] ss:$12 sps:$4 sm:$0xff]   ;;  %s1367_s9 = scalar_lea.vmem %s1441_s5, %s1065_s29  ;;  %s1372_s12 = scalar_lea.vmem %s1443_s7, %s1065_s29 }
  0x24   : > { %1086 = vmatpush3.bf16.msra.mxu1 %v1153_v16  ;;  %606 = vmatprep.subr.bf16.mxu0 %v1154_v17  ;;  %v1162_v23 = vld [vmem:[#allocation2 + $0x4c] ss:$12 sps:$4 sm:$0xff]   ;;  %v1166_v26 = vld [vmem:[#allocation2 + $0x34] ss:$12 sps:$4 sm:$0xff]   ;;  %v1170_v30 = vld [vmem:[#allocation2 + $0x1c] ss:$12 sps:$4 sm:$0xff]   ;;  %s1377_s14 = scalar_lea.vmem %s1442_s6, %s1065_s29 }
  0x25   : > { %1087 = vmatprep.subr.bf16.mxu1 %v1239_v4  ;;  %v1169_v29 = vld [vmem:[#allocation2 + $0x38] ss:$12 sps:$4 sm:$0xff]   ;;  %v1173_v32 = vld [vmem:[#allocation2 + $0x20] ss:$12 sps:$4 sm:$0xff]   ;;  %v1177_v35 = vld [vmem:[#allocation2 + $0x8] ss:$12 sps:$4 sm:$0xff]  }
  0x26   : > { %v1172_v31 = vld [vmem:[#allocation2 + $0x18] ss:$12 sps:$4 sm:$0xff]   ;;  %v1176_v34 = vld [vmem:[#allocation2] ss:$12 sps:$4 sm:$0xff]   ;;  %v461_v55 = vsub.s32 0, %v460_v54  ;;  %v469_v56 = vsub.s32 2, %v460_v54 }
  0x27   : > { %387 = vadd.xlane.f32.xlu0 %v382_v1  ;;  %607 = vmatpush1.bf16.msra.mxu0 %v1156_v18  ;;  %v1174_v33 = vld [vmem:[#allocation2 + $0x4] ss:$12 sps:$4 sm:$0xff]   ;;  %v1012_v44 = vld [vmem:[%s1437_s1] ss:$0 sm:$0xff]  ;;  %v465_v58 = vsub.s32 1, %v460_v54  ;;  %vm694_vm1 = vcmask 257024  }
  0x28   : > { %1088 = vmatpush3.bf16.msra.mxu1 %v1157_v19  ;;  %608 = vmatprep.subr.bf16.mxu0 %v1158_v20  ;;  %v1013_v48 = vld [vmem:[%s1438_s2] ss:$0 sm:$0xff]  ;;  %s1242_s15 = smov 96   ;;  %s1243_s16 = smov 64  }
  0x29   : > { %1089 = vmatprep.subr.bf16.mxu1 %v1239_v4  ;;  %v457_v57 = vld [vmem:[%s1440_s4] sm:$0x7]  ;;  %s1244_s17 = smov 32  }
  0x2a   : > { %v462_v59 = vrot.slane %v457_v57, %v461_v55  ;;  %v470_v60 = vrot.slane %v457_v57, %v469_v56  ;;  %v466_v61 = vrot.slane %v457_v57, %v465_v58 }
  0x2b   : > { %609 = vmatpush1.bf16.msra.mxu0 %v1160_v21 }
  0x2c   : > { %1090 = vmatpush3.bf16.msra.mxu1 %v1161_v22  ;;  %610 = vmatprep.subr.bf16.mxu0 %v1162_v23 }
  0x2d   : > { %1091 = vmatprep.subr.bf16.mxu1 %v1239_v4 }
  0x2f   : > { %611 = vmatpush1.bf16.msra.mxu0 %v1164_v24 }
  0x30   : > { %1092 = vmatpush3.bf16.msra.mxu1 %v1165_v25  ;;  %612 = vmatprep.subr.bf16.mxu0 %v1166_v26 }
  0x31   : > { %1093 = vmatprep.subr.bf16.mxu1 %v1239_v4 }
  0x33   : > { %613 = vmatpush1.bf16.msra.mxu0 %v1168_v28 }
  0x34   : > { %1094 = vmatpush3.bf16.msra.mxu1 %v1169_v29  ;;  %614 = vmatprep.subr.bf16.mxu0 %v1170_v30 }
  0x35   : > { %1095 = vmatprep.subr.bf16.mxu1 %v1239_v4 }
  0x37   : > { %615 = vmatpush1.bf16.msra.mxu0 %v1172_v31 }
  0x38   : > { %1096 = vmatpush3.bf16.msra.mxu1 %v1173_v32  ;;  %616 = vmatprep.subr.bf16.mxu0 %v1174_v33 }
  0x39   : > { %1097 = vmatprep.subr.bf16.mxu1 %v1239_v4 }
  0x3b   : > { %617 = vmatpush1.bf16.msra.mxu0 %v1176_v34 }
  0x3c   : > { %1098 = vmatpush3.bf16.msra.mxu1 %v1177_v35 }
  0xac   : > { %v386_v6 = vpop.xlane.xlu0 %385 }
  0xad   : > { %v390_v7 = vmul.f32 0.0078125, %v386_v6 }
  0xaf   : > { %v1337_v8 = vsub.f32 %v381_v0, %v390_v7 }
  0xb0   : > { %v388_v9 = vpop.xlane.xlu0 %387 }
  0xb1   : > { %v391_v10 = vmul.f32 0.0078125, %v388_v9  ;;  %v394_v11 = vmul.f32 %v1337_v8, %v1337_v8 }
  0xb3   : > { %v1341_v12 = vsub.f32 %v382_v1, %v391_v10  ;;  %396 = vadd.xlane.f32.xlu1 %v394_v11 }
  0xb5   : > { %v395_v13 = vmul.f32 %v1341_v12, %v1341_v12 }
  0xb7   : > { %398 = vadd.xlane.f32.xlu1 %v395_v13 }
 0x13c   : > { %v397_v36 = vpop.xlane.xlu1 %396 }
 0x13d   : > { %v400_v37 = vmul.f32 0.0078125, %v397_v36 }
 0x13f   : > { %v402_v38 = vadd.f32 1e-05, %v400_v37 }
 0x140   : > { %v399_v39 = vpop.xlane.xlu1 %398 }
 0x141   : > { %1178 = vrsqrt.f32 %v402_v38  ;;  %v401_v40 = vmul.f32 0.0078125, %v399_v39 }
 0x143   : > { %v403_v41 = vadd.f32 1e-05, %v401_v40 }
 0x145   : > { %1180 = vrsqrt.f32 %v403_v41 }
 0x14e   : > { %v1179_v42 = vpop.eup %1178 }
 0x14f   : > { %v406_v43 = vmul.f32 %v1179_v42, %v1337_v8 }
 0x151   : > { %v414_v47 = vmul.f32 %v1012_v44, %v406_v43 }
 0x152   : > { %v1181_v45 = vpop.eup %1180 }
 0x153   : > { %v407_v46 = vmul.f32 %v1181_v45, %v1341_v12  ;;  %v422_v50 = vadd.f32 %v1013_v48, %v414_v47 }
 0x155   : > { %v415_v49 = vmul.f32 %v1012_v44, %v407_v46 }
 0x157   : > { %v423_v51 = vadd.f32 %v1013_v48, %v415_v49 }
 0x159   : > { %v424_v52 = vpack.c.bf16 %v423_v51, %v422_v50 }
 0x15b   : > { %635 = vmatmul.mubr.bf16.vlgmr.msra.gmra.mxu0 %v424_v52  ;;  %1100 = vmatmul.mubr.bf16.vlgmr.msra.gmra.mxu1 %v424_v52 }
 0x21b   : > { %v636_v62 = vpop.f32.mrf.mxu0  ;;  %v679_v63 = vpop.f32.mrf.mxu1 }
 0x21c   : > { %v637_v0 = vadd.f32 %v636_v62, %v462_v59  ;;  %v680_v1 = vadd.f32 %v679_v63, %v470_v60 }
 0x21d   : > { %v638_v2 = vpop.f32.mrf.mxu0  ;;  %v1101_v3 = vpop.f32.mrf.mxu1 }
 0x21e   : > { %v1068_v4 = vpack.c.bf16 %v637_v0, %v637_v0  ;;  %v1072_v5 = vpack.c.bf16 %v680_v1, %v680_v1  ;;  %v639_v6 = vadd.f32 %v638_v2, %v466_v61 }
 0x21f   : > { %v640_v7 = vpop.f32.mrf.mxu0  ;;  %v682_v8 = vpop.f32.mrf.mxu1 }
 0x220   : > { %695 = vst.msk [vmem:[%s1367_s9] sm:$0xf] %vm694_vm1, %v1068_v4  ;;  %715 = vst.msk [vmem:[%s1372_s12] sm:$0xf] %vm694_vm1, %v1072_v5  ;;  %v1070_v9 = vpack.c.bf16 %v639_v6, %v639_v6  ;;  %v641_v10 = vadd.f32 %v640_v7, %v462_v59  ;;  %v683_v11 = vadd.f32 %v682_v8, %v470_v60  ;;  %717 = vrot.lane.b32.xlu0 %v1068_v4, %s1242_s15 }
 0x221   : > { %v642_v12 = vpop.f32.mrf.mxu0  ;;  %v1102_v13 = vpop.f32.mrf.mxu1 }
 0x222   : > { %705 = vst.msk [vmem:[%s1377_s14] sm:$0xf] %vm694_vm1, %v1070_v9  ;;  %v1069_v14 = vpack.c.bf16 %v641_v10, %v641_v10  ;;  %v1073_v15 = vpack.c.bf16 %v683_v11, %v683_v11  ;;  %v643_v16 = vadd.f32 %v642_v12, %v466_v61  ;;  %726 = vrot.lane.b32.xlu1 %v1070_v9, %s1242_s15 }
 0x224   : > { %696 = vst.msk [vmem:[%s1367_s9 + $0x4] sm:$0xf] %vm694_vm1, %v1069_v14  ;;  %716 = vst.msk [vmem:[%s1372_s12 + $0x4] sm:$0xf] %vm694_vm1, %v1073_v15  ;;  %v1071_v17 = vpack.c.bf16 %v643_v16, %v643_v16  ;;  %735 = vrot.lane.b32.xlu0 %v1072_v5, %s1242_s15 }
 0x226   : > { %706 = vst.msk [vmem:[%s1377_s14 + $0x4] sm:$0xf] %vm694_vm1, %v1071_v17  ;;  %719 = vrot.lane.b32.xlu1 %v1069_v14, %s1242_s15 }
 0x228   : > { %744 = vrot.lane.b32.xlu0 %v1068_v4, %s1243_s16 }
 0x22a   : > { %737 = vrot.lane.b32.xlu1 %v1073_v15, %s1242_s15 }
 0x22c   : > { %762 = vrot.lane.b32.xlu0 %v1072_v5, %s1243_s16 }
 0x22e   : > { %746 = vrot.lane.b32.xlu1 %v1069_v14, %s1243_s16 }
 0x230   : > { %771 = vrot.lane.b32.xlu0 %v1068_v4, %s1244_s17 }
 0x232   : > { %764 = vrot.lane.b32.xlu1 %v1073_v15, %s1243_s16 }
 0x234   : > { %753 = vrot.lane.b32.xlu0 %v1070_v9, %s1243_s16 }
 0x236   : > { %773 = vrot.lane.b32.xlu1 %v1069_v14, %s1244_s17 }
 0x238   : > { %780 = vrot.lane.b32.xlu0 %v1070_v9, %s1244_s17 }
 0x23a   : > { %728 = vrot.lane.b32.xlu1 %v1071_v17, %s1242_s15 }
 0x23c   : > { %789 = vrot.lane.b32.xlu0 %v1072_v5, %s1244_s17 }
 0x23e   : > { %755 = vrot.lane.b32.xlu1 %v1071_v17, %s1243_s16 }
 0x242   : > { %782 = vrot.lane.b32.xlu1 %v1071_v17, %s1244_s17 }
 0x246   : > { %791 = vrot.lane.b32.xlu1 %v1073_v15, %s1244_s17 }
 0x292   : > { %v718_v18 = vpop.permute.xlu0 %717 }
 0x293   : > { %1044 = vst.msk [vmem:[%s1367_s9 + $0x8] sm:$0xf] %vm694_vm1, %v718_v18 }
 0x294   : > { %v727_v19 = vpop.permute.xlu1 %726 }
 0x295   : > { %1046 = vst.msk [vmem:[%s1377_s14 + $0x8] sm:$0xf] %vm694_vm1, %v727_v19 }
 0x296   : > { %v736_v20 = vpop.permute.xlu0 %735 }
 0x297   : > { %1048 = vst.msk [vmem:[%s1372_s12 + $0x8] sm:$0xf] %vm694_vm1, %v736_v20 }
 0x298   : > { %v720_v21 = vpop.permute.xlu1 %719 }
 0x299   : > { %1045 = vst.msk [vmem:[%s1367_s9 + $0xc] sm:$0xf] %vm694_vm1, %v720_v21 }
 0x29a   : > { %v745_v22 = vpop.permute.xlu0 %744 }
 0x29b   : > { %1050 = vst.msk [vmem:[%s1367_s9 + $0x10] sm:$0xf] %vm694_vm1, %v745_v22 }
 0x29c   : > { %v738_v23 = vpop.permute.xlu1 %737 }
 0x29d   : > { %1049 = vst.msk [vmem:[%s1372_s12 + $0xc] sm:$0xf] %vm694_vm1, %v738_v23 }
 0x29e   : > { %v763_v24 = vpop.permute.xlu0 %762 }
 0x29f   : > { %1054 = vst.msk [vmem:[%s1372_s12 + $0x10] sm:$0xf] %vm694_vm1, %v763_v24 }
 0x2a0   : > { %v747_v25 = vpop.permute.xlu1 %746 }
 0x2a1   : > { %1051 = vst.msk [vmem:[%s1367_s9 + $0x14] sm:$0xf] %vm694_vm1, %v747_v25 }
 0x2a2   : > { %v772_v26 = vpop.permute.xlu0 %771 }
 0x2a3   : > { %1056 = vst.msk [vmem:[%s1367_s9 + $0x18] sm:$0xf] %vm694_vm1, %v772_v26 }
 0x2a4   : > { %v765_v27 = vpop.permute.xlu1 %764 }
 0x2a5   : > { %1055 = vst.msk [vmem:[%s1372_s12 + $0x14] sm:$0xf] %vm694_vm1, %v765_v27 }
 0x2a6   : > { %v754_v28 = vpop.permute.xlu0 %753 }
 0x2a7   : > { %1052 = vst.msk [vmem:[%s1377_s14 + $0x10] sm:$0xf] %vm694_vm1, %v754_v28 }
 0x2a8   : > { %v774_v29 = vpop.permute.xlu1 %773 }
 0x2a9   : > { %1057 = vst.msk [vmem:[%s1367_s9 + $0x1c] sm:$0xf] %vm694_vm1, %v774_v29 }
 0x2aa   : > { %v781_v30 = vpop.permute.xlu0 %780 }
 0x2ab   : > { %1058 = vst.msk [vmem:[%s1377_s14 + $0x18] sm:$0xf] %vm694_vm1, %v781_v30 }
 0x2ac   : > { %v729_v31 = vpop.permute.xlu1 %728 }
 0x2ad   : > { %1047 = vst.msk [vmem:[%s1377_s14 + $0xc] sm:$0xf] %vm694_vm1, %v729_v31 }
 0x2ae   : > { %v790_v32 = vpop.permute.xlu0 %789 }
 0x2af   : > { %1060 = vst.msk [vmem:[%s1372_s12 + $0x18] sm:$0xf] %vm694_vm1, %v790_v32 }
 0x2b0   : > { %v756_v33 = vpop.permute.xlu1 %755 }
 0x2b1   : > { %1053 = vst.msk [vmem:[%s1377_s14 + $0x14] sm:$0xf] %vm694_vm1, %v756_v33 }
 0x2b4   : > { %v783_v34 = vpop.permute.xlu1 %782 }
 0x2b5   : > { %1059 = vst.msk [vmem:[%s1377_s14 + $0x1c] sm:$0xf] %vm694_vm1, %v783_v34 }
 0x2b8   : > { %v792_v35 = vpop.permute.xlu1 %791 }
 0x2b9   : > { %1061 = vst.msk [vmem:[%s1372_s12 + $0x1c] sm:$0xf] %vm694_vm1, %v792_v35 }
 0x2ba PF: > { %s19_s26 = sadd.s32 1, %s1234_s26   ;;  %s1446_s24 = smov %s1230_s25 }
 0x2bb   : > { %p16_p2 = scmp.ge.s32.totalorder %s19_s26, 4   ;;  %s1447_s25 = smov %s1449_s28 }
 0x2bd   :  { %18 = sbr.rel (!%p16_p2) target bundleno = 2 (0x2), region = 108 }
 0x2c2   :  { %878 = vsyncpa [#allocation3], 1 }
 0x2c3   :  { %880 = vsyncpa [#allocation3 + $0x1], 1 }

// kernel: hourglass_forward.10
= control target key start
LH: loop header
LB: loop body
LE: loop exit
PB: predicated region body
PF: predicated region fallthrough
CT: control target
= control target key end

     0   :  { %s1896_s21 = smov 0   ;;  %s1898_s22 = smov 0   ;;  %s2251_s0 = inlined_call_operand.vmem [shape: f32[2,16,128], index: 0, kind: input, shape index: {}]   ;;  %s2252_s1 = inlined_call_operand.vmem [shape: bf16[2,4,16,32], index: 1, kind: input, shape index: {}]   ;;  %s2253_s2 = inlined_call_operand.vmem [shape: bf16[2,4,16,32], index: 2, kind: input, shape index: {}]   ;;  %s2254_s3 = inlined_call_operand.vmem [shape: bf16[2,4,16,32], index: 3, kind: input, shape index: {}]   ;;  %s2255_s4 = inlined_call_operand.vmem [shape: bf16[128,128], index: 4, kind: input, shape index: {}]   ;;  %s2256_s5 = inlined_call_operand.vmem [shape: f32[1,128], index: 5, kind: input, shape index: {}]   ;;  %s2257_s6 = inlined_call_operand.vmem [shape: f32[2,16,128], index: 6, kind: output, shape index: {}]  }
   0x1   :  { %s1900_s23 = smov 0  }
   0x2 LB: > { %s35_s24 = sadd.s32 1, %s1848_s22  ;;  %p1574_p0 = scmp.ge.s32.totalorder %s1852_s23, 1  ;;  %s1852_s23 = sphi %s1900_s23, %s16_s23   ;;  %s1848_s22 = sphi %s1898_s22, %s2259_s22   ;;  %s1844_s21 = sphi %s1896_s21, %s2258_s21  }
   0x3   : > { %p37_p1 = scmp.ge.s32.totalorder %s35_s24, 2  ;;  %p291_p2 = scmp.lt.s32.totalorder %s1852_s23, 3 }
   0x5   : > { %s2261_s24 = smov (%p37_p1, %s35_s24), 0  ;;  %p292_p3 = pnand %p1574_p0, %p291_p2 }
   0x6   : > { %p357_p4 = scmp.lt.s32.totalorder (!%p292_p3), %s1844_s21, 1  ;;  %s1858_s29 = smov (!%p292_p3), 32  }
   0x7   : > { %295 = sbr.rel (%p292_p3) target bundleno = 1144 (0x478), region = 44  ;;  %s1859_s8 = smov (!%p292_p3), 64  }
   0x8   : > { %s1860_s9 = smov (!%p292_p3), 96  }
   0xc   : > { %vm428_vm0 = vcmask 261120   ;;  %v1854_v0 = vmov 0.0   ;;  %vm1855_vm1 = vmmov 0   ;;  %s2263_s21 = smov (!%p357_p4, %s1844_s21), 1  ;;  %vm411_vm2 = vcmask 7168  }
   0xd   : > { %1646 = vmatprep.subr.bf16.mxu1 %v1854_v0  ;;  %429 = vst.msk [vmem:[#allocation4] sm:$0xff] %vm428_vm0, %v1854_v0  ;;  %430 = vst.msk [vmem:[#allocation4 + $0x8] sm:$0xff] %vm428_vm0, %v1854_v0  ;;  %1648 = vmatprep.mubr.msk.bf16.mxu1 %vm1855_vm1, %v1854_v0  ;;  %s1940_s25 = sshll.u32 %s2263_s21, 5  ;;  %v1856_v13 = vmov -inf   ;;  %v705_v14 = vlaneseq  ;;  %vm737_vm4 = vcmask 130048   ;;  %v1857_v39 = vmov 0  }
   0xe   : > { %431 = vst.msk [vmem:[#allocation4 + $0x10] sm:$0xff] %vm428_vm0, %v1854_v0  ;;  %432 = vst.msk [vmem:[#allocation4 + $0x18] sm:$0xff] %vm428_vm0, %v1854_v0  ;;  %1670 = vmatprep.subr.bf16.mxu0 %v1854_v0  ;;  %1672 = vmatprep.mubr.msk.bf16.mxu0 %vm1855_vm1, %v1854_v0  ;;  %s384_s28 = scalar_lea.vmem %s2253_s2, %s1940_s25  ;;  %s374_s7 = scalar_lea.vmem %s2252_s1, %s1940_s25  ;;  %vm1301_vm6 = vcmask 523264   ;;  %vm1304_vm7 = vcmask 785408  }
   0xf   : > { %433 = vst.msk [vmem:[#allocation4 + $0x20] sm:$0xff] %vm428_vm0, %v1854_v0  ;;  %434 = vst.msk [vmem:[#allocation4 + $0x28] sm:$0xff] %vm428_vm0, %v1854_v0  ;;  %v1762_v1 = vld [vmem:[%s384_s28] sm:$0xff]   ;;  %v1764_v3 = vld [vmem:[%s384_s28 + $0x8] sm:$0xff]   ;;  %v706_v15 = vshrl.u32 %v705_v14, 7  ;;  %v712_v16 = vand.u32 127, %v705_v14  ;;  %1745 = vset.pattern.permute.xlu0 %v1857_v39  ;;  %1746 = vset.pattern.permute.xlu1 %v1857_v39  ;;  %s2085_s10 = scalar_lea.vmem %s2254_s3, %s1940_s25 }
  0x10   : > { %435 = vst.msk [vmem:[#allocation4 + $0x30] sm:$0xff] %vm428_vm0, %v1854_v0  ;;  %436 = vst.msk [vmem:[#allocation4 + $0x38] sm:$0xff] %vm428_vm0, %v1854_v0  ;;  %v483_v2 = vsel %vm428_vm0, %v1762_v1, 0  ;;  %v1763_v4 = vld [vmem:[%s374_s7] sm:$0xff]   ;;  %v540_v5 = vsel %vm428_vm0, %v1764_v3, 0  ;;  %v1766_v6 = vld [vmem:[%s384_s28 + $0x10] sm:$0xff]  }
  0x11   : > { %1647 = vmatpush3.bf16.xpose.msra.mxu1 %v483_v2  ;;  %v1765_v7 = vld [vmem:[%s374_s7 + $0x8] sm:$0xff]   ;;  %v597_v8 = vsel %vm428_vm0, %v1766_v6, 0  ;;  %v1768_v9 = vld [vmem:[%s384_s28 + $0x18] sm:$0xff]   ;;  %v1767_v10 = vld [vmem:[%s374_s7 + $0x10] sm:$0xff]   ;;  %412 = vst.msk [vmem:[#allocation2] sm:$0xff] %vm411_vm2, %v1856_v13  ;;  %vm715_vm3 = vcmp.ge.s32.totalorder %v706_v15, %v712_v16  ;;  %v707_v18 = vadd.s32 8, %v706_v15 }
  0x12   : > { %1652 = vmatprep.subr.bf16.mxu1 %v1854_v0  ;;  %v654_v11 = vsel %vm428_vm0, %v1768_v9, 0  ;;  %v1769_v12 = vld [vmem:[%s374_s7 + $0x18] sm:$0xff]   ;;  %413 = vst.msk [vmem:[#allocation2 + $0x8] sm:$0xff] %vm411_vm2, %v1856_v13  ;;  %414 = vst.msk [vmem:[#allocation2 + $0x10] sm:$0xff] %vm411_vm2, %v1856_v13 }
  0x13   : > { %415 = vst.msk [vmem:[#allocation2 + $0x18] sm:$0xff] %vm411_vm2, %v1856_v13  ;;  %416 = vst.msk [vmem:[#allocation2 + $0x20] sm:$0xff] %vm411_vm2, %v1856_v13  ;;  %vm716_vm5 = vcmp.ge.s32.totalorder %v707_v18, %v712_v16  ;;  %v1770_v16 = vld [vmem:[%s2085_s10] sm:$0xff]  }
  0x14   : > { %417 = vst.msk [vmem:[#allocation2 + $0x28] sm:$0xff] %vm411_vm2, %v1856_v13  ;;  %418 = vst.msk [vmem:[#allocation2 + $0x30] sm:$0xff] %vm411_vm2, %v1856_v13  ;;  %1671 = vmatpush3.bf16.msra.mxu0 %v1770_v16 }
  0x15   : > { %419 = vst.msk [vmem:[#allocation2 + $0x38] sm:$0xff] %vm411_vm2, %v1856_v13  ;;  %420 = vst.msk [vmem:[#allocation3] sm:$0xff] %vm411_vm2, %v1854_v0  ;;  %1682 = vmatprep.subr.bf16.mxu0 %v1854_v0 }
  0x16   : > { %421 = vst.msk [vmem:[#allocation3 + $0x8] sm:$0xff] %vm411_vm2, %v1854_v0  ;;  %422 = vst.msk [vmem:[#allocation3 + $0x10] sm:$0xff] %vm411_vm2, %v1854_v0 }
  0x17   : > { %423 = vst.msk [vmem:[#allocation3 + $0x18] sm:$0xff] %vm411_vm2, %v1854_v0  ;;  %424 = vst.msk [vmem:[#allocation3 + $0x20] sm:$0xff] %vm411_vm2, %v1854_v0 }
  0x18   : > { %1649 = vmatmul.mubr.msk.bf16.vlgmr.msra.gmra.mxu1 %vm428_vm0, %v1763_v4  ;;  %425 = vst.msk [vmem:[#allocation3 + $0x28] sm:$0xff] %vm411_vm2, %v1854_v0  ;;  %426 = vst.msk [vmem:[#allocation3 + $0x30] sm:$0xff] %vm411_vm2, %v1854_v0  ;;  %v2034_v59 = vld [vmem:[#allocation2] sm:$0xff] }
  0x19   : > { %1653 = vmatpush3.bf16.xpose.msra.mxu1 %v540_v5  ;;  %1654 = vmatprep.mubr.msk.bf16.mxu1 %vm1855_vm1, %v1854_v0  ;;  %427 = vst.msk [vmem:[#allocation3 + $0x38] sm:$0xff] %vm411_vm2, %v1854_v0  ;;  %v2039_v62 = vld [vmem:[#allocation2 + $0x8] sm:$0xff]  ;;  %v2049_v3 = vld [vmem:[#allocation2 + $0x10] sm:$0xff] }
  0x1a   : > { %1658 = vmatprep.subr.bf16.mxu1 %v1854_v0 }
  0x1b   : > { %v2079_v15 = vld [vmem:[#allocation2 + $0x28] sm:$0xff] }
  0x20   : > { %1655 = vmatmul.mubr.msk.bf16.vlgmr.msra.gmra.mxu1 %vm428_vm0, %v1765_v7  ;;  %v2059_v7 = vld [vmem:[#allocation2 + $0x18] sm:$0xff] }
  0x21   : > { %1659 = vmatpush3.bf16.xpose.msra.mxu1 %v597_v8  ;;  %1660 = vmatprep.mubr.msk.bf16.mxu1 %vm1855_vm1, %v1854_v0 }
  0x22   : > { %1664 = vmatprep.subr.bf16.mxu1 %v1854_v0 }
  0x28   : > { %1661 = vmatmul.mubr.msk.bf16.vlgmr.msra.gmra.mxu1 %vm428_vm0, %v1767_v10 }
  0x29   : > { %1665 = vmatpush3.bf16.xpose.msra.mxu1 %v654_v11  ;;  %1666 = vmatprep.mubr.msk.bf16.mxu1 %vm1855_vm1, %v1854_v0  ;;  %v2069_v11 = vld [vmem:[#allocation2 + $0x20] sm:$0xff] }
  0x2a   : > { %1676 = vmatprep.subr.bf16.mxu1 %v1854_v0 }
  0x30   : > { %1667 = vmatmul.mubr.msk.bf16.vlgmr.msra.gmra.mxu1 %vm428_vm0, %v1769_v12 }
  0x31   : > { %1678 = vmatprep.mubr.msk.bf16.mxu1 %vm1855_vm1, %v1854_v0 }
  0xd8   : > { %v519_v17 = vpop.f32.mrf.mxu1 }
  0xd9   : > { %v697_v19 = vmul.f32 0.17677669, %v519_v17 }
  0xda   : > { %v1650_v20 = vpop.f32.mrf.mxu1 }
  0xdb   : > { %v1995_v21 = vsel %vm715_vm3, %v697_v19, -1e+30  ;;  %v2097_v20 = vld [vmem:[#allocation2 + $0x30] sm:$0xff] }
  0xdc   : > { %v522_v22 = vpop.f32.mrf.mxu1  ;;  %v738_v23 = vsel %vm737_vm4, %v1995_v21, -inf }
  0xdd   : > { %v698_v24 = vmul.f32 0.17677669, %v522_v22  ;;  %739 = vmax.xlane.f32.xlu0 %v738_v23 }
  0xde   : > { %v1651_v25 = vpop.f32.mrf.mxu1 }
  0xdf   : > { %v2000_v26 = vsel %vm716_vm5, %v698_v24, -1e+30  ;;  %v2107_v25 = vld [vmem:[#allocation2 + $0x38] sm:$0xff] }
  0xe0   : > { %v576_v27 = vpop.f32.mrf.mxu1  ;;  %v741_v28 = vsel %vm737_vm4, %v2000_v26, -inf }
  0xe1   : > { %v699_v29 = vmul.f32 0.17677669, %v576_v27  ;;  %742 = vmax.xlane.f32.xlu0 %v741_v28  ;;  %v1771_v27 = vld [vmem:[%s2085_s10 + $0x8] sm:$0xff]  }
  0xe2   : > { %v1656_v30 = vpop.f32.mrf.mxu1  ;;  %1677 = vmatpush3.bf16.msra.mxu1 %v1771_v27 }
  0xe3   : > { %v2005_v31 = vsel %vm715_vm3, %v699_v29, -1e+30  ;;  %1688 = vmatprep.subr.bf16.mxu1 %v1854_v0 }
  0xe4   : > { %v579_v32 = vpop.f32.mrf.mxu1  ;;  %v744_v33 = vsel %vm737_vm4, %v2005_v31, -inf }
  0xe5   : > { %v700_v34 = vmul.f32 0.17677669, %v579_v32  ;;  %745 = vmax.xlane.f32.xlu1 %v744_v33 }
  0xe6   : > { %v1657_v35 = vpop.f32.mrf.mxu1 }
  0xe7   : > { %v2010_v36 = vsel %vm716_vm5, %v700_v34, -1e+30 }
  0xe8   : > { %v633_v37 = vpop.f32.mrf.mxu1  ;;  %v747_v38 = vsel %vm737_vm4, %v2010_v36, -inf }
  0xe9   : > { %v701_v40 = vmul.f32 0.17677669, %v633_v37  ;;  %748 = vmax.xlane.f32.xlu1 %v747_v38 }
  0xea   : > { %v1662_v41 = vpop.f32.mrf.mxu1 }
  0xeb   : > { %v2015_v42 = vsel %vm715_vm3, %v701_v40, -1e+30 }
  0xec   : > { %v636_v43 = vpop.f32.mrf.mxu1  ;;  %v750_v44 = vsel %vm737_vm4, %v2015_v42, -inf }
  0xed   : > { %v702_v45 = vmul.f32 0.17677669, %v636_v43  ;;  %751 = vmax.xlane.f32.xlu0 %v750_v44 }
  0xee   : > { %v1663_v46 = vpop.f32.mrf.mxu1 }
  0xef   : > { %v2020_v47 = vsel %vm716_vm5, %v702_v45, -1e+30 }
  0xf0   : > { %v690_v48 = vpop.f32.mrf.mxu1  ;;  %v753_v49 = vsel %vm737_vm4, %v2020_v47, -inf }
  0xf1   : > { %v703_v50 = vmul.f32 0.17677669, %v690_v48  ;;  %754 = vmax.xlane.f32.xlu1 %v753_v49 }
  0xf2   : > { %v1668_v51 = vpop.f32.mrf.mxu1 }
  0xf3   : > { %v2025_v52 = vsel %vm715_vm3, %v703_v50, -1e+30 }
  0xf4   : > { %v693_v53 = vpop.f32.mrf.mxu1  ;;  %v756_v54 = vsel %vm737_vm4, %v2025_v52, -inf }
  0xf5   : > { %v704_v55 = vmul.f32 0.17677669, %v693_v53  ;;  %757 = vmax.xlane.f32.xlu0 %v756_v54  ;;  %v1772_v54 = vld [vmem:[%s2085_s10 + $0x10] sm:$0xff]  }
  0xf6   : > { %v1669_v56 = vpop.f32.mrf.mxu1 }
  0xf7   : > { %v2030_v57 = vsel %vm716_vm5, %v704_v55, -1e+30 }
  0xf8   : > { %v759_v58 = vsel %vm737_vm4, %v2030_v57, -inf }
  0xf9   : > { %760 = vmax.xlane.f32.xlu1 %v759_v58 }
 0x166   : > { %v740_v60 = vpop.xlane.xlu0 %739 }
 0x167   : > { %v2037_v61 = vmax.f32 %v2034_v59, %v740_v60 }
 0x169   : > { %v770_v63 = vsub.f32 %v2034_v59, %v2037_v61  ;;  %1191 = vst.msk [vmem:[#allocation2] sm:$0xff] %vm411_vm2, %v2037_v61  ;;  %796 = vperm.xlu0 %1745, %v2037_v61  }
 0x16a   : > { %v743_v1 = vpop.xlane.xlu0 %742 }
 0x16b   : > { %v2047_v2 = vmax.f32 %v2039_v62, %v743_v1 }
 0x16d   : > { %v771_v4 = vsub.f32 %v2039_v62, %v2047_v2  ;;  %1192 = vst.msk [vmem:[#allocation2 + $0x8] sm:$0xff] %vm411_vm2, %v2047_v2  ;;  %801 = vperm.xlu1 %1746, %v2047_v2   ;;  %v864_v2 = vld [vmem:[#allocation3 + $0x30] sm:$0xff] }
 0x16e   : > { %v746_v5 = vpop.xlane.xlu1 %745 }
 0x16f   : > { %v2057_v6 = vmax.f32 %v2049_v3, %v746_v5 }
 0x171   : > { %v772_v8 = vsub.f32 %v2049_v3, %v2057_v6  ;;  %1193 = vst.msk [vmem:[#allocation2 + $0x10] sm:$0xff] %vm411_vm2, %v2057_v6  ;;  %806 = vperm.xlu1 %1746, %v2057_v6  }
 0x172   : > { %v749_v9 = vpop.xlane.xlu1 %748 }
 0x173   : > { %v2067_v10 = vmax.f32 %v2059_v7, %v749_v9  ;;  %v1773_v9 = vld [vmem:[%s2085_s10 + $0x18] sm:$0xff]   ;;  %s1616_s10 = sshll.u32 %s2263_s21, 4 }
 0x174   : > { %s364_s13 = scalar_lea.vmem %s2251_s0, %s1616_s10  ;;  %s404_s18 = scalar_lea.vmem %s2257_s6, %s1616_s10 }
 0x175   : > { %v773_v12 = vsub.f32 %v2059_v7, %v2067_v10  ;;  %1194 = vst.msk [vmem:[#allocation2 + $0x18] sm:$0xff] %vm411_vm2, %v2067_v10  ;;  %811 = vperm.xlu1 %1746, %v2067_v10  }
 0x176   : > { %v752_v13 = vpop.xlane.xlu0 %751 }
 0x177   : > { %v2077_v14 = vmax.f32 %v2069_v11, %v752_v13 }
 0x179   : > { %v774_v17 = vsub.f32 %v2069_v11, %v2077_v14  ;;  %1195 = vst.msk [vmem:[#allocation2 + $0x20] sm:$0xff] %vm411_vm2, %v2077_v14  ;;  %816 = vperm.xlu1 %1746, %v2077_v14  }
 0x17a   : > { %v755_v18 = vpop.xlane.xlu1 %754 }
 0x17b   : > { %v2094_v19 = vmax.f32 %v2079_v15, %v755_v18 }
 0x17d   : > { %v775_v22 = vsub.f32 %v2079_v15, %v2094_v19  ;;  %1196 = vst.msk [vmem:[#allocation2 + $0x28] sm:$0xff] %vm411_vm2, %v2094_v19  ;;  %821 = vperm.xlu1 %1746, %v2094_v19   ;;  %v860_v15 = vld [vmem:[#allocation3 + $0x10] sm:$0xff] }
 0x17e   : > { %v758_v23 = vpop.xlane.xlu0 %757 }
 0x17f   : > { %v2105_v24 = vmax.f32 %v2097_v20, %v758_v23 }
 0x181   : > { %v776_v28 = vsub.f32 %v2097_v20, %v2105_v24  ;;  %1197 = vst.msk [vmem:[#allocation2 + $0x30] sm:$0xff] %vm411_vm2, %v2105_v24  ;;  %826 = vperm.xlu1 %1746, %v2105_v24  }
 0x182   : > { %v761_v29 = vpop.xlane.xlu1 %760 }
 0x183   : > { %v2116_v30 = vmax.f32 %v2107_v25, %v761_v29  ;;  %v790_v7 = vmul.f32 1.442695, %v776_v28 }
 0x185   : > { %v777_v32 = vsub.f32 %v2107_v25, %v2116_v30  ;;  %1198 = vst.msk [vmem:[#allocation2 + $0x38] sm:$0xff] %vm411_vm2, %v2116_v30  ;;  %831 = vperm.xlu1 %1746, %v2116_v30   ;;  %v780_v25 = vmul.f32 1.442695, %v771_v4 }
 0x187   : > { %v792_v3 = vmul.f32 1.442695, %v777_v32  ;;  %v862_v32 = vld [vmem:[#allocation3 + $0x20] sm:$0xff] }
 0x1e4   : > { %v797_v33 = vpop.permute.xlu0 %796 }
 0x1e5   : > { %v834_v34 = vsub.f32 %v1995_v21, %v797_v33 }
 0x1e7   : > { %v842_v35 = vmul.f32 1.442695, %v834_v34 }
 0x1e8   : > { %v802_v37 = vpop.permute.xlu1 %801 }
 0x1e9   : > { %v835_v38 = vsub.f32 %v2000_v26, %v802_v37  ;;  %1782 = vpow2.f32 %v842_v35 }
 0x1eb   : > { %v844_v39 = vmul.f32 1.442695, %v835_v38 }
 0x1ec   : > { %v807_v40 = vpop.permute.xlu1 %806 }
 0x1ed   : > { %1784 = vpow2.f32 %v844_v39  ;;  %v836_v41 = vsub.f32 %v2005_v31, %v807_v40  ;;  %v784_v40 = vmul.f32 1.442695, %v773_v12 }
 0x1ef   : > { %v846_v43 = vmul.f32 1.442695, %v836_v41 }
 0x1f0   : > { %v812_v44 = vpop.permute.xlu1 %811 }
 0x1f1   : > { %1786 = vpow2.f32 %v846_v43  ;;  %v837_v45 = vsub.f32 %v2010_v36, %v812_v44  ;;  %v782_v43 = vmul.f32 1.442695, %v772_v8  ;;  %v786_v44 = vmul.f32 1.442695, %v774_v17 }
 0x1f2   : > { %v778_v17 = vmul.f32 1.442695, %v770_v63  ;;  %v863_v63 = vld [vmem:[#allocation3 + $0x28] sm:$0xff] }
 0x1f3   : > { %v848_v46 = vmul.f32 1.442695, %v837_v45  ;;  %v788_v45 = vmul.f32 1.442695, %v775_v22  ;;  %v861_v22 = vld [vmem:[#allocation3 + $0x18] sm:$0xff] }
 0x1f4   : > { %v817_v48 = vpop.permute.xlu1 %816 }
 0x1f5   : > { %1788 = vpow2.f32 %v848_v46  ;;  %v838_v21 = vsub.f32 %v2015_v42, %v817_v48 }
 0x1f6   : > { %v1783_v26 = vpop.eup %1782 }
 0x1f7   : > { %v850_v49 = vmul.f32 1.442695, %v838_v21  ;;  %v874_v37 = vsel %vm737_vm4, %v1783_v26, 0.0 }
 0x1f8   : > { %v822_v50 = vpop.permute.xlu1 %821 }
 0x1f9   : > { %1790 = vpow2.f32 %v850_v49  ;;  %v839_v51 = vsub.f32 %v2020_v47, %v822_v50 }
 0x1fa   : > { %v1785_v53 = vpop.eup %1784 }
 0x1fb   : > { %v852_v55 = vmul.f32 1.442695, %v839_v51  ;;  %v971_v31 = vpack.c.bf16 %v1785_v53, %v1783_v26  ;;  %v877_v41 = vsel %vm737_vm4, %v1785_v53, 0.0 }
 0x1fc   : > { %v827_v56 = vpop.permute.xlu1 %826 }
 0x1fd   : > { %1792 = vpow2.f32 %v852_v55  ;;  %v840_v36 = vsub.f32 %v2025_v52, %v827_v56  ;;  %1673 = vmatmul.mubr.msk.bf16.vlgmr.msra.gmra.mxu0 %vm737_vm4, %v971_v31  ;;  %v865_v55 = vld [vmem:[#allocation3 + $0x38] sm:$0xff] }
 0x1fe   : > { %v1787_v58 = vpop.eup %1786  ;;  %1683 = vmatpush3.bf16.msra.mxu0 %v1772_v54  ;;  %1684 = vmatprep.mubr.msk.bf16.mxu0 %vm1855_vm1, %v1854_v0  ;;  %v858_v54 = vld [vmem:[#allocation3] sm:$0xff] }
 0x1ff   : > { %v854_v42 = vmul.f32 1.442695, %v840_v36  ;;  %v880_v60 = vsel %vm737_vm4, %v1787_v58, 0.0  ;;  %1694 = vmatprep.subr.bf16.mxu0 %v1854_v0 }
 0x200   : > { %881 = vadd.xlane.f32.xlu1 %v880_v60  ;;  %v832_v47 = vpop.permute.xlu1 %831 }
 0x201   : > { %1794 = vpow2.f32 %v854_v42  ;;  %v841_v1 = vsub.f32 %v2030_v57, %v832_v47 }
 0x202   : > { %v1789_v5 = vpop.eup %1788 }
 0x203   : > { %v856_v52 = vmul.f32 1.442695, %v841_v1  ;;  %v883_v13 = vsel %vm737_vm4, %v1789_v5, 0.0  ;;  %v972_v16 = vpack.c.bf16 %v1789_v5, %v1787_v58  ;;  %v859_v1 = vld [vmem:[#allocation3 + $0x8] sm:$0xff] }
 0x204   : > { %884 = vadd.xlane.f32.xlu0 %v883_v13 }
 0x205   : > { %1796 = vpow2.f32 %v856_v52  ;;  %1679 = vmatmul.mubr.msk.bf16.vlgmr.msra.gmra.mxu1 %vm737_vm4, %v972_v16 }
 0x206   : > { %v1791_v18 = vpop.eup %1790  ;;  %1689 = vmatpush3.bf16.msra.mxu1 %v1773_v9  ;;  %1690 = vmatprep.mubr.msk.bf16.mxu1 %vm1855_vm1, %v1854_v0  ;;  %1798 = vpow2.f32 %v784_v40 }
 0x207   : > { %v886_v23 = vsel %vm737_vm4, %v1791_v18, 0.0  ;;  %1800 = vpow2.f32 %v782_v43 }
 0x208   : > { %887 = vadd.xlane.f32.xlu0 %v886_v23  ;;  %1802 = vpow2.f32 %v786_v44 }
 0x209   : > { %1804 = vpow2.f32 %v788_v45  ;;  %v917_v45 = vld [vmem:[#allocation4 + $0x10] sm:$0xff] }
 0x20a   : > { %v1793_v27 = vpop.eup %1792  ;;  %1806 = vpow2.f32 %v790_v7 }
 0x20b   : > { %v889_v57 = vsel %vm737_vm4, %v1793_v27, 0.0  ;;  %v973_v29 = vpack.c.bf16 %v1793_v27, %v1791_v18  ;;  %1808 = vpow2.f32 %v792_v3 }
 0x20c   : > { %890 = vadd.xlane.f32.xlu1 %v889_v57  ;;  %1810 = vpow2.f32 %v778_v17 }
 0x20d   : > { %1685 = vmatmul.mubr.msk.bf16.vlgmr.msra.gmra.mxu0 %vm737_vm4, %v973_v29  ;;  %1812 = vpow2.f32 %v780_v25 }
 0x20e   : > { %v1795_v33 = vpop.eup %1794  ;;  %1710 = vmatprep.mubr.msk.bf16.mxu0 %vm1855_vm1, %v1854_v0 }
 0x20f   : > { %v892_v34 = vsel %vm737_vm4, %v1795_v33, 0.0 }
 0x210   : > { %893 = vadd.xlane.f32.xlu0 %v892_v34 }
 0x212   : > { %v1797_v35 = vpop.eup %1796 }
 0x213   : > { %v895_v38 = vsel %vm737_vm4, %v1797_v35, 0.0  ;;  %v974_v39 = vpack.c.bf16 %v1797_v35, %v1795_v33  ;;  %v1799_v6 = vpop.eup %1798 }
 0x214   : > { %875 = vadd.xlane.f32.xlu0 %v874_v37  ;;  %896 = vadd.xlane.f32.xlu1 %v895_v38  ;;  %v1801_v8 = vpop.eup %1800  ;;  %v869_v28 = vmul.f32 %v1799_v6, %v861_v22  ;;  %v1776_v22 = vld [vmem:[%s2255_s4 + $0x28] sm:$0xff]  }
 0x215   : > { %1691 = vmatmul.mubr.msk.bf16.vlgmr.msra.gmra.mxu1 %vm737_vm4, %v974_v39  ;;  %v1803_v10 = vpop.eup %1802  ;;  %v868_v19 = vmul.f32 %v1801_v8, %v860_v15 }
 0x216   : > { %v1805_v11 = vpop.eup %1804  ;;  %v870_v59 = vmul.f32 %v1803_v10, %v862_v32 }
 0x217   : > { %v1807_v12 = vpop.eup %1806  ;;  %v871_v49 = vmul.f32 %v1805_v11, %v863_v63 }
 0x218   : > { %878 = vadd.xlane.f32.xlu1 %v877_v41  ;;  %v1809_v14 = vpop.eup %1808  ;;  %v872_v26 = vmul.f32 %v1807_v12, %v864_v2 }
 0x219   : > { %v1811_v51 = vpop.eup %1810  ;;  %v873_v58 = vmul.f32 %v1809_v14, %v865_v55 }
 0x21a   : > { %v866_v36 = vmul.f32 %v1811_v51, %v858_v54  ;;  %v1813_v42 = vpop.eup %1812 }
 0x21b   : > { %v867_v13 = vmul.f32 %v1813_v42, %v859_v1  ;;  %v1778_v1 = vld [vmem:[%s2255_s4 + $0x18] sm:$0xff]  }
 0x229   : > { %940 = vperm.xlu1 %1746, %v1799_v6   ;;  %v1774_v6 = vld [vmem:[%s2255_s4 + $0x38] sm:$0xff]  }
 0x22a   : > { %935 = vperm.xlu0 %1745, %v1801_v8   ;;  %1695 = vmatpush3.bf16.msra.mxu0 %v1774_v6 }
 0x22b   : > { %1696 = vmatprep.subr.bf16.mxu0 %v1854_v0 }
 0x22d   : > { %945 = vperm.xlu1 %1746, %v1803_v10  }
 0x22e   : > { %950 = vperm.xlu0 %1745, %v1805_v11  }
 0x231   : > { %955 = vperm.xlu1 %1746, %v1807_v12   ;;  %v1775_v12 = vld [vmem:[%s2255_s4 + $0x30] sm:$0xff]  }
 0x232   : > { %960 = vperm.xlu0 %1745, %v1809_v14   ;;  %v918_v14 = vld [vmem:[#allocation4 + $0x18] sm:$0xff]  ;;  %1697 = vmatpush3.bf16.msra.mxu0 %v1775_v12 }
 0x233   : > { %1698 = vmatprep.subr.bf16.mxu0 %v1854_v0 }
 0x236   : > { %1699 = vmatpush3.bf16.msra.mxu0 %v1776_v22 }
 0x237   : > { %1700 = vmatprep.subr.bf16.mxu0 %v1854_v0 }
 0x289   : > { %v882_v20 = vpop.xlane.xlu1 %881 }
 0x28a   : > { %v900_v24 = vadd.f32 %v882_v20, %v868_v19 }
 0x28c   : > { %909 = vst.msk [vmem:[#allocation3 + $0x10] sm:$0xff] %vm411_vm2, %v900_v24  ;;  %v919_v24 = vld [vmem:[#allocation4 + $0x20] sm:$0xff] }
 0x28d   : > { %v885_v30 = vpop.xlane.xlu0 %884 }
 0x28e   : > { %v901_v46 = vadd.f32 %v885_v30, %v869_v28 }
 0x290   : > { %910 = vst.msk [vmem:[#allocation3 + $0x18] sm:$0xff] %vm411_vm2, %v901_v46 }
 0x291   : > { %v888_v61 = vpop.xlane.xlu0 %887 }
 0x292   : > { %v902_v48 = vadd.f32 %v888_v61, %v870_v59  ;;  %v920_v59 = vld [vmem:[#allocation4 + $0x28] sm:$0xff] }
 0x293   : > { %v1212_v21 = vld [vmem:[#allocation3 + $0x10] sm:$0xff] }
 0x294   : > { %911 = vst.msk [vmem:[#allocation3 + $0x20] sm:$0xff] %vm411_vm2, %v902_v48  ;;  %1814 = vrcp.f32 %v1212_v21 }
 0x295   : > { %v891_v62 = vpop.xlane.xlu1 %890 }
 0x296   : > { %v903_v4 = vadd.f32 %v891_v62, %v871_v49  ;;  %v921_v62 = vld [vmem:[#allocation4 + $0x30] sm:$0xff] }
 0x297   : > { %v1213_v50 = vld [vmem:[#allocation3 + $0x18] sm:$0xff] }
 0x298   : > { %912 = vst.msk [vmem:[#allocation3 + $0x28] sm:$0xff] %vm411_vm2, %v903_v4  ;;  %1816 = vrcp.f32 %v1213_v50 }
 0x299   : > { %v894_v53 = vpop.xlane.xlu0 %893 }
 0x29a   : > { %v904_v31 = vadd.f32 %v894_v53, %v872_v26  ;;  %v922_v53 = vld [vmem:[#allocation4 + $0x38] sm:$0xff] }
 0x29b   : > { %v1214_v56 = vld [vmem:[#allocation3 + $0x20] sm:$0xff] }
 0x29c   : > { %913 = vst.msk [vmem:[#allocation3 + $0x30] sm:$0xff] %vm411_vm2, %v904_v31  ;;  %1818 = vrcp.f32 %v1214_v56 }
 0x29d   : > { %v876_v60 = vpop.xlane.xlu0 %875  ;;  %v897_v47 = vpop.xlane.xlu1 %896 }
 0x29e   : > { %v898_v5 = vadd.f32 %v876_v60, %v866_v36  ;;  %v905_v9 = vadd.f32 %v897_v47, %v873_v58  ;;  %v1777_v47 = vld [vmem:[%s2255_s4 + $0x20] sm:$0xff]  }
 0x29f   : > { %v1215_v52 = vld [vmem:[#allocation3 + $0x28] sm:$0xff]  ;;  %1701 = vmatpush3.bf16.msra.mxu0 %v1777_v47 }
 0x2a0   : > { %907 = vst.msk [vmem:[#allocation3] sm:$0xff] %vm411_vm2, %v898_v5  ;;  %914 = vst.msk [vmem:[#allocation3 + $0x38] sm:$0xff] %vm411_vm2, %v905_v9  ;;  %1820 = vrcp.f32 %v1215_v52  ;;  %1702 = vmatprep.subr.bf16.mxu0 %v1854_v0 }
 0x2a1   : > { %v1815_v16 = vpop.eup %1814  ;;  %v879_v18 = vpop.xlane.xlu1 %878 }
 0x2a2   : > { %v899_v23 = vadd.f32 %v879_v18, %v867_v13  ;;  %1238 = vperm.xlu1 %1746, %v1815_v16  }
 0x2a3   : > { %v1216_v27 = vld [vmem:[#allocation3 + $0x30] sm:$0xff]  ;;  %1703 = vmatpush3.bf16.msra.mxu0 %v1778_v1 }
 0x2a4   : > { %908 = vst.msk [vmem:[#allocation3 + $0x8] sm:$0xff] %vm411_vm2, %v899_v23  ;;  %1822 = vrcp.f32 %v1216_v27  ;;  %1704 = vmatprep.subr.bf16.mxu0 %v1854_v0  ;;  %v1779_v23 = vld [vmem:[%s2255_s4 + $0x10] sm:$0xff]  }
 0x2a5   : > { %v1817_v57 = vpop.eup %1816  ;;  %v936_v7 = vpop.permute.xlu0 %935 }
 0x2a6   : > { %1243 = vperm.xlu0 %1745, %v1817_v57   ;;  %v941_v8 = vpop.permute.xlu1 %940  ;;  %v965_v11 = vmul.f32 %v936_v7, %v917_v45  ;;  %v1780_v57 = vld [vmem:[%s2255_s4 + $0x8] sm:$0xff]  }
 0x2a7   : > { %v1217_v29 = vld [vmem:[#allocation3 + $0x38] sm:$0xff]  ;;  %v1210_v34 = vld [vmem:[#allocation3] sm:$0xff]  ;;  %v966_v20 = vmul.f32 %v941_v8, %v918_v14  ;;  %1705 = vmatpush3.bf16.msra.mxu0 %v1779_v23 }
 0x2a8   : > { %1824 = vrcp.f32 %v1217_v29  ;;  %1706 = vmatprep.subr.bf16.mxu0 %v1854_v0 }
 0x2a9   : > { %v1819_v33 = vpop.eup %1818  ;;  %1826 = vrcp.f32 %v1210_v34  ;;  %v951_v61 = vpop.permute.xlu0 %950 }
 0x2aa   : > { %1248 = vperm.xlu1 %1746, %v1819_v33   ;;  %v946_v25 = vpop.permute.xlu1 %945  ;;  %v968_v49 = vmul.f32 %v951_v61, %v920_v59 }
 0x2ab   : > { %v1211_v37 = vld [vmem:[#allocation3 + $0x8] sm:$0xff]  ;;  %v967_v46 = vmul.f32 %v946_v25, %v919_v24  ;;  %1707 = vmatpush3.bf16.msra.mxu0 %v1780_v57 }
 0x2ac   : > { %1828 = vrcp.f32 %v1211_v37  ;;  %1708 = vmatprep.subr.bf16.mxu0 %v1854_v0  ;;  %v916_v0 = vld [vmem:[#allocation4 + $0x8] sm:$0xff] }
 0x2ad   : > { %v1821_v35 = vpop.eup %1820  ;;  %v961_v54 = vpop.permute.xlu0 %960 }
 0x2ae   : > { %1253 = vperm.xlu0 %1745, %v1821_v35   ;;  %v956_v2 = vpop.permute.xlu1 %955  ;;  %v970_v36 = vmul.f32 %v961_v54, %v922_v53  ;;  %v1605_v54 = vld [vmem:[%s2256_s5] ss:$0 sm:$0xff] }
 0x2b1   : > { %v1823_v38 = vpop.eup %1822 }
 0x2b2   : > { %1258 = vperm.xlu1 %1746, %v1823_v38  }
 0x2b5   : > { %v1825_v39 = vpop.eup %1824 }
 0x2b6   : > { %925 = vperm.xlu1 %1746, %v1811_v51   ;;  %1263 = vperm.xlu0 %1745, %v1825_v39   ;;  %v1827_v40 = vpop.eup %1826  ;;  %v969_v51 = vmul.f32 %v956_v2, %v921_v62  ;;  %v1781_v39 = vld [vmem:[%s2255_s4] sm:$0xff]  }
 0x2b7   : > { %1709 = vmatpush3.bf16.msra.mxu0 %v1781_v39 }
 0x2b9   : > { %v1829_v41 = vpop.eup %1828 }
 0x2ba   : > { %1228 = vperm.xlu1 %1746, %v1827_v40   ;;  %930 = vperm.xlu0 %1745, %v1813_v42  }
 0x2bd   : > { %v2185_v43 = vpop.f32.mrf.mxu0 }
 0x2be   : > { %1233 = vperm.xlu0 %1745, %v1829_v41  }
 0x2bf   : > { %v1674_v44 = vpop.f32.mrf.mxu0 }
 0x2c0   : > { %v915_v44 = vld [vmem:[#allocation4] sm:$0xff] }
 0x2c1   : > { %v2187_v3 = vpop.f32.mrf.mxu0 }
 0x2c3   : > { %v1675_v10 = vpop.f32.mrf.mxu0 }
 0x2c5   : > { %v1068_v15 = vpop.f32.mrf.mxu1 }
 0x2c6   : > { %v1177_v17 = vadd.f32 %v1068_v15, %v965_v11 }
 0x2c7   : > { %v1680_v19 = vpop.f32.mrf.mxu1 }
 0x2c8   : > { %1185 = vst.msk [vmem:[#allocation4 + $0x10] sm:$0xff] %vm428_vm0, %v1177_v17 }
 0x2c9   : > { %v1071_v28 = vpop.f32.mrf.mxu1 }
 0x2ca   : > { %v1178_v30 = vadd.f32 %v1071_v28, %v966_v20 }
 0x2cb   : > { %v1681_v32 = vpop.f32.mrf.mxu1 }
 0x2cc   : > { %1186 = vst.msk [vmem:[#allocation4 + $0x18] sm:$0xff] %vm428_vm0, %v1178_v30 }
 0x2cd   : > { %v1118_v63 = vpop.f32.mrf.mxu0 }
 0x2ce   : > { %v1179_v48 = vadd.f32 %v1118_v63, %v967_v46 }
 0x2cf   : > { %v1686_v21 = vpop.f32.mrf.mxu0  ;;  %v1204_v9 = vld [vmem:[#allocation4 + $0x10] sm:$0xff] }
 0x2d0   : > { %1187 = vst.msk [vmem:[#allocation4 + $0x20] sm:$0xff] %vm428_vm0, %v1179_v48 }
 0x2d1   : > { %v1121_v4 = vpop.f32.mrf.mxu0 }
 0x2d2   : > { %v1180_v50 = vadd.f32 %v1121_v4, %v968_v49 }
 0x2d3   : > { %v1687_v26 = vpop.f32.mrf.mxu0  ;;  %v1205_v13 = vld [vmem:[#allocation4 + $0x18] sm:$0xff] }
 0x2d4   : > { %1188 = vst.msk [vmem:[#allocation4 + $0x28] sm:$0xff] %vm428_vm0, %v1180_v50 }
 0x2d5   : > { %v1168_v55 = vpop.f32.mrf.mxu1 }
 0x2d6   : > { %v1181_v31 = vadd.f32 %v1168_v55, %v969_v51 }
 0x2d7   : > { %v1692_v56 = vpop.f32.mrf.mxu1  ;;  %v1206_v33 = vld [vmem:[#allocation4 + $0x20] sm:$0xff] }
 0x2d8   : > { %1189 = vst.msk [vmem:[#allocation4 + $0x30] sm:$0xff] %vm428_vm0, %v1181_v31  ;;  %v1420_v31 = vld [vmem:[%s364_s13] sm:$0xff] }
 0x2d9   : > { %v1171_v58 = vpop.f32.mrf.mxu1 }
 0x2da   : > { %v1182_v42 = vadd.f32 %v1171_v58, %v970_v36 }
 0x2db   : > { %v1693_v60 = vpop.f32.mrf.mxu1  ;;  %v1207_v34 = vld [vmem:[#allocation4 + $0x28] sm:$0xff] }
 0x2dc   : > { %1190 = vst.msk [vmem:[#allocation4 + $0x38] sm:$0xff] %vm428_vm0, %v1182_v42  ;;  %v1421_v60 = vld [vmem:[%s364_s13 + $0x8] sm:$0xff] }
 0x2df   : > { %v1208_v45 = vld [vmem:[#allocation4 + $0x30] sm:$0xff] }
 0x2e3   : > { %v1209_v6 = vld [vmem:[#allocation4 + $0x38] sm:$0xff] }
 0x31d   : > { %v1239_v5 = vpop.permute.xlu1 %1238 }
 0x31e   : > { %v1268_v16 = vmul.f32 %v1239_v5, %v1204_v9 }
 0x321   : > { %v1244_v52 = vpop.permute.xlu0 %1243 }
 0x322   : > { %v1269_v18 = vmul.f32 %v1244_v52, %v1205_v13 }
 0x324   : > { %v1747_v27 = vpack.i.bf16 %v1269_v18, %v1268_v16 }
 0x325   : > { %v1249_v29 = vpop.permute.xlu1 %1248 }
 0x326   : > { %1748 = vrot.lane.b32.xlu1 %v1747_v27, %s1858_s29  ;;  %v1270_v37 = vmul.f32 %v1249_v29, %v1206_v33 }
 0x329   : > { %v1254_v35 = vpop.permute.xlu0 %1253 }
 0x32a   : > { %v1271_v38 = vmul.f32 %v1254_v35, %v1207_v34 }
 0x32c   : > { %v1752_v40 = vpack.i.bf16 %v1271_v38, %v1270_v37 }
 0x32d   : > { %v1259_v41 = vpop.permute.xlu1 %1258 }
 0x32e   : > { %1753 = vrot.lane.b32.xlu0 %v1752_v40, %s1859_s8  ;;  %v1272_v10 = vmul.f32 %v1259_v41, %v1208_v45 }
 0x331   : > { %v1264_v7 = vpop.permute.xlu0 %1263  ;;  %v926_v8 = vpop.permute.xlu1 %925 }
 0x332   : > { %v1273_v11 = vmul.f32 %v1264_v7, %v1209_v6  ;;  %v963_v12 = vmul.f32 %v926_v8, %v915_v44 }
 0x334   : > { %v1757_v14 = vpack.i.bf16 %v1273_v11, %v1272_v10  ;;  %v1175_v15 = vadd.f32 %v2185_v43, %v963_v12 }
 0x335   : > { %v931_v17 = vpop.permute.xlu0 %930  ;;  %v1229_v22 = vpop.permute.xlu1 %1228 }
 0x336   : > { %1183 = vst.msk [vmem:[#allocation4] sm:$0xff] %vm428_vm0, %v1175_v15  ;;  %v964_v19 = vmul.f32 %v931_v17, %v916_v0  ;;  %1758 = vrot.lane.b32.xlu1 %v1757_v14, %s1860_s9 }
 0x338   : > { %v1176_v20 = vadd.f32 %v2187_v3, %v964_v19 }
 0x339   : > { %v1234_v24 = vpop.permute.xlu0 %1233 }
 0x33a   : > { %1184 = vst.msk [vmem:[#allocation4 + $0x8] sm:$0xff] %vm428_vm0, %v1176_v20 }
 0x33d   : > { %v1202_v30 = vld [vmem:[#allocation4] sm:$0xff] }
 0x33e   : > { %v1266_v63 = vmul.f32 %v1229_v22, %v1202_v30 }
 0x341   : > { %v1203_v32 = vld [vmem:[#allocation4 + $0x8] sm:$0xff] }
 0x342   : > { %v1267_v48 = vmul.f32 %v1234_v24, %v1203_v32 }
 0x398   : > { %v1749_v25 = vpop.permute.xlu1 %1748 }
 0x399   : > { %v1751_v46 = vunpack.i.h.bf16 %v1749_v25  ;;  %v1750_v59 = vunpack.i.l.bf16 %v1749_v25 }
 0x39b   : > { %v1300_v3 = vsel %vm428_vm0, %v1267_v48, %v1751_v46  ;;  %v1299_v49 = vsel %vm428_vm0, %v1266_v63, %v1750_v59 }
 0x3a0   : > { %v1754_v28 = vpop.permute.xlu0 %1753 }
 0x3a1   : > { %v1756_v61 = vunpack.i.h.bf16 %v1754_v28  ;;  %v1755_v43 = vunpack.i.l.bf16 %v1754_v28 }
 0x3a3   : > { %v1302_v4 = vsel %vm1301_vm6, %v1299_v49, %v1755_v43  ;;  %v1303_v50 = vsel %vm1301_vm6, %v1300_v3, %v1756_v61 }
 0x3a8   : > { %v1759_v21 = vpop.permute.xlu1 %1758 }
 0x3a9   : > { %v1761_v62 = vunpack.i.h.bf16 %v1759_v21  ;;  %v1760_v2 = vunpack.i.l.bf16 %v1759_v21 }
 0x3ab   : > { %v1306_v26 = vsel %vm1304_vm7, %v1303_v50, %v1761_v62  ;;  %v1305_v51 = vsel %vm1304_vm7, %v1302_v4, %v1760_v2 }
 0x3ac   : > { %v1307_v53 = vpack.c.bf16 %v1306_v26, %v1305_v51 }
 0x3ae   : > { %1711 = vmatmul.mubr.bf16.vlgmr.msra.gmra.mxu0 %v1307_v53 }
 0x46e   : > { %v1413_v55 = vpop.f32.mrf.mxu0 }
 0x46f   : > { %v1414_v56 = vadd.f32 %v1605_v54, %v1413_v55 }
 0x470   : > { %v1712_v36 = vpop.f32.mrf.mxu0 }
 0x471   : > { %v1422_v58 = vadd.f32 %v1420_v31, %v1414_v56 }
 0x472   : > { %v1416_v42 = vpop.f32.mrf.mxu0 }
 0x473   : > { %1424 = vst [vmem:[%s404_s18] sm:$0xff] %v1422_v58  ;;  %v1417_v47 = vadd.f32 %v1605_v54, %v1416_v42 }
 0x474   : > { %v1713_v1 = vpop.f32.mrf.mxu0 }
 0x475   : > { %v1423_v5 = vadd.f32 %v1421_v60, %v1417_v47 }
 0x477   : > { %1425 = vst [vmem:[%s404_s18 + $0x8] sm:$0xff] %v1423_v5 }
 0x478 PF: > { %s16_s23 = sadd.s32 1, %s1852_s23   ;;  %s2258_s21 = smov %s1848_s22 }
 0x479   : > { %p13_p5 = scmp.ge.s32.totalorder %s16_s23, 4   ;;  %s2259_s22 = smov %s2261_s24 }
 0x47b   :  { %15 = sbr.rel (!%p13_p5) target bundleno = 2 (0x2), region = 95 }

// kernel: hourglass_forward.11
= control target key start
LH: loop header
LB: loop body
LE: loop exit
PB: predicated region body
PF: predicated region fallthrough
CT: control target
= control target key end

     0   :  { %s1409_s24 = smov 0   ;;  %s1411_s25 = smov 0   ;;  %s1673_s0 = inlined_call_operand.vmem [shape: f32[2,16,128], index: 0, kind: input, shape index: {}]   ;;  %s1674_s1 = inlined_call_operand.vmem [shape: f32[1,128], index: 1, kind: input, shape index: {}]   ;;  %s1675_s2 = inlined_call_operand.vmem [shape: f32[1,128], index: 2, kind: input, shape index: {}]   ;;  %s1676_s3 = inlined_call_operand.vmem [shape: bf16[128,512], index: 3, kind: input, shape index: {}]   ;;  %s1677_s4 = inlined_call_operand.vmem [shape: f32[1,512], index: 4, kind: input, shape index: {}]   ;;  %s1678_s5 = inlined_call_operand.vmem [shape: bf16[512,128], index: 5, kind: input, shape index: {}]   ;;  %s1679_s6 = inlined_call_operand.vmem [shape: f32[1,128], index: 6, kind: input, shape index: {}]   ;;  %s1680_s7 = inlined_call_operand.vmem [shape: f32[2,16,128], index: 7, kind: output, shape index: {}]  }
   0x1   :  { %s1413_s26 = smov 0  }
   0x2 LB: > { %s29_s27 = sadd.s32 1, %s1362_s25  ;;  %p1115_p0 = scmp.ge.s32.totalorder %s1366_s26, 1  ;;  %s1366_s26 = sphi %s1413_s26, %s17_s26   ;;  %s1362_s25 = sphi %s1411_s25, %s1682_s25   ;;  %s1358_s24 = sphi %s1409_s24, %s1681_s24  }
   0x3   : > { %p31_p1 = scmp.ge.s32.totalorder %s29_s27, 2  ;;  %p258_p2 = scmp.lt.s32.totalorder %s1366_s26, 3 }
   0x5   : > { %s1684_s27 = smov (%p31_p1, %s29_s27), 0  ;;  %p259_p3 = pnand %p1115_p0, %p258_p2 }
   0x6   : > { %p299_p4 = scmp.lt.s32.totalorder (!%p259_p3), %s1358_s24, 1 }
   0x7   : > { %262 = sbr.rel (%p259_p3) target bundleno = 742 (0x2e6), region = 48 }
   0xc   : > { %s1686_s24 = smov (!%p299_p4, %s1358_s24), 1  ;;  %v1260_v2 = vld [vmem:[%s1676_s3 + $0xe4] ss:$16 sps:$4 sm:$0xff]   ;;  %v1262_v3 = vld [vmem:[%s1676_s3 + $0xec] ss:$16 sps:$4 sm:$0xff]   ;;  %v1368_v36 = vmov 0  }
   0xd   : > { %s1189_s28 = sshll.u32 %s1686_s24, 4  ;;  %v1264_v4 = vld [vmem:[%s1676_s3 + $0xe0] ss:$16 sps:$4 sm:$0xff]   ;;  %v1265_v5 = vld [vmem:[%s1676_s3 + $0xe8] ss:$16 sps:$4 sm:$0xff]   ;;  %577 = vmatprep.subr.bf16.mxu0 %v1260_v2  ;;  %620 = vmatprep.subr.bf16.mxu1 %v1262_v3 }
   0xe   : > { %s306_s8 = scalar_lea.vmem %s1673_s0, %s1189_s28  ;;  %578 = vmatpush1.bf16.msra.mxu0 %v1264_v4  ;;  %621 = vmatpush1.bf16.msra.mxu1 %v1265_v5  ;;  %v1266_v14 = vld [vmem:[%s1676_s3 + $0xc4] ss:$16 sps:$4 sm:$0xff]   ;;  %v1268_v15 = vld [vmem:[%s1676_s3 + $0xcc] ss:$16 sps:$4 sm:$0xff]   ;;  %v1270_v16 = vld [vmem:[%s1676_s3 + $0xc0] ss:$16 sps:$4 sm:$0xff]   ;;  %s316_s21 = scalar_lea.vmem %s1680_s7, %s1189_s28 }
   0xf   : > { %v1435_v0 = vld [vmem:[%s306_s8] sm:$0xff]  ;;  %v1437_v1 = vld [vmem:[%s306_s8 + $0x8] sm:$0xff]  ;;  %579 = vmatprep.subr.bf16.mxu0 %v1266_v14  ;;  %622 = vmatprep.subr.bf16.mxu1 %v1268_v15  ;;  %v1308_v43 = vld [vmem:[%s1678_s5 + $0x78] sm:$0xff]  }
  0x10   : > { %323 = vadd.xlane.f32.xlu0 %v1435_v0  ;;  %v1271_v17 = vld [vmem:[%s1676_s3 + $0xc8] ss:$16 sps:$4 sm:$0xff]   ;;  %v1272_v18 = vld [vmem:[%s1676_s3 + $0xa4] ss:$16 sps:$4 sm:$0xff]   ;;  %v1274_v19 = vld [vmem:[%s1676_s3 + $0xac] ss:$16 sps:$4 sm:$0xff]   ;;  %609 = vmatprep.mubr.bf16.mxu0 %v1368_v36 }
  0x11   : > { %v1276_v20 = vld [vmem:[%s1676_s3 + $0xa0] ss:$16 sps:$4 sm:$0xff]   ;;  %v1277_v21 = vld [vmem:[%s1676_s3 + $0xa8] ss:$16 sps:$4 sm:$0xff]   ;;  %v1278_v22 = vld [vmem:[%s1676_s3 + $0x84] ss:$16 sps:$4 sm:$0xff]   ;;  %652 = vmatprep.mubr.bf16.mxu1 %v1368_v36 }
  0x12   : > { %580 = vmatpush1.bf16.msra.mxu0 %v1270_v16  ;;  %623 = vmatpush1.bf16.msra.mxu1 %v1271_v17  ;;  %v1280_v23 = vld [vmem:[%s1676_s3 + $0x8c] ss:$16 sps:$4 sm:$0xff]   ;;  %v1282_v24 = vld [vmem:[%s1676_s3 + $0x80] ss:$16 sps:$4 sm:$0xff]   ;;  %v1283_v25 = vld [vmem:[%s1676_s3 + $0x88] ss:$16 sps:$4 sm:$0xff]  }
  0x13   : > { %581 = vmatprep.subr.bf16.mxu0 %v1272_v18  ;;  %624 = vmatprep.subr.bf16.mxu1 %v1274_v19  ;;  %v1284_v26 = vld [vmem:[%s1676_s3 + $0x64] ss:$16 sps:$4 sm:$0xff]   ;;  %v1286_v27 = vld [vmem:[%s1676_s3 + $0x6c] ss:$16 sps:$4 sm:$0xff]   ;;  %v1288_v28 = vld [vmem:[%s1676_s3 + $0x60] ss:$16 sps:$4 sm:$0xff]  }
  0x14   : > { %325 = vadd.xlane.f32.xlu0 %v1437_v1  ;;  %v1289_v29 = vld [vmem:[%s1676_s3 + $0x68] ss:$16 sps:$4 sm:$0xff]   ;;  %v1290_v30 = vld [vmem:[%s1676_s3 + $0x44] ss:$16 sps:$4 sm:$0xff]   ;;  %v1292_v31 = vld [vmem:[%s1676_s3 + $0x4c] ss:$16 sps:$4 sm:$0xff]  }
  0x15   : > { %v1294_v32 = vld [vmem:[%s1676_s3 + $0x40] ss:$16 sps:$4 sm:$0xff]   ;;  %v1295_v33 = vld [vmem:[%s1676_s3 + $0x48] ss:$16 sps:$4 sm:$0xff]   ;;  %v1296_v34 = vld [vmem:[%s1676_s3 + $0x24] ss:$16 sps:$4 sm:$0xff]  }
  0x16   : > { %582 = vmatpush1.bf16.msra.mxu0 %v1276_v20  ;;  %625 = vmatpush1.bf16.msra.mxu1 %v1277_v21  ;;  %v1298_v35 = vld [vmem:[%s1676_s3 + $0x2c] ss:$16 sps:$4 sm:$0xff]   ;;  %v1300_v37 = vld [vmem:[%s1676_s3 + $0x20] ss:$16 sps:$4 sm:$0xff]   ;;  %v1301_v38 = vld [vmem:[%s1676_s3 + $0x28] ss:$16 sps:$4 sm:$0xff]  }
  0x17   : > { %583 = vmatprep.subr.bf16.mxu0 %v1278_v22  ;;  %626 = vmatprep.subr.bf16.mxu1 %v1280_v23  ;;  %v1302_v39 = vld [vmem:[%s1676_s3 + $0x4] ss:$16 sps:$4 sm:$0xff]   ;;  %v1304_v40 = vld [vmem:[%s1676_s3 + $0xc] ss:$16 sps:$4 sm:$0xff]   ;;  %v1306_v41 = vld [vmem:[%s1676_s3] ss:$16 sps:$4 sm:$0xff]  }
  0x18   : > { %v1307_v42 = vld [vmem:[%s1676_s3 + $0x8] ss:$16 sps:$4 sm:$0xff]   ;;  %v1120_v53 = vld [vmem:[%s1674_s1] ss:$0 sm:$0xff]  ;;  %v1312_v2 = vld [vmem:[%s1678_s5 + $0x70] sm:$0xff]  }
  0x19   : > { %v1309_v44 = vld [vmem:[%s1678_s5 + $0xf8] sm:$0xff]   ;;  %v1121_v57 = vld [vmem:[%s1675_s2] ss:$0 sm:$0xff]  ;;  %v1313_v3 = vld [vmem:[%s1678_s5 + $0xf0] sm:$0xff]  }
  0x1a   : > { %584 = vmatpush1.bf16.msra.mxu0 %v1282_v24  ;;  %627 = vmatpush1.bf16.msra.mxu1 %v1283_v25  ;;  %v1310_v61 = vld [vmem:[%s1678_s5 + $0x38] sm:$0xff]   ;;  %v1314_v4 = vld [vmem:[%s1678_s5 + $0x30] sm:$0xff]   ;;  %v1332_v22 = vld [vmem:[%s1678_s5 + $0x48] sm:$0xff]  }
  0x1b   : > { %585 = vmatprep.subr.bf16.mxu0 %v1284_v26  ;;  %628 = vmatprep.subr.bf16.mxu1 %v1286_v27  ;;  %v1311_v62 = vld [vmem:[%s1678_s5 + $0xb8] sm:$0xff]   ;;  %v1315_v5 = vld [vmem:[%s1678_s5 + $0xb0] sm:$0xff]   ;;  %v1333_v23 = vld [vmem:[%s1678_s5 + $0xc8] sm:$0xff]  }
  0x1c   : > { %v1324_v14 = vld [vmem:[%s1678_s5 + $0x58] sm:$0xff]   ;;  %v1328_v18 = vld [vmem:[%s1678_s5 + $0x50] sm:$0xff]   ;;  %v1334_v24 = vld [vmem:[%s1678_s5 + $0x8] sm:$0xff]  }
  0x1d   : > { %v1325_v15 = vld [vmem:[%s1678_s5 + $0xd8] sm:$0xff]   ;;  %v1329_v19 = vld [vmem:[%s1678_s5 + $0xd0] sm:$0xff]   ;;  %v1335_v25 = vld [vmem:[%s1678_s5 + $0x88] sm:$0xff]  }
  0x1e   : > { %586 = vmatpush1.bf16.msra.mxu0 %v1288_v28  ;;  %629 = vmatpush1.bf16.msra.mxu1 %v1289_v29  ;;  %v1326_v16 = vld [vmem:[%s1678_s5 + $0x18] sm:$0xff]   ;;  %v1330_v20 = vld [vmem:[%s1678_s5 + $0x10] sm:$0xff]   ;;  %v1336_v26 = vld [vmem:[%s1678_s5 + $0x40] sm:$0xff]  }
  0x1f   : > { %587 = vmatprep.subr.bf16.mxu0 %v1290_v30  ;;  %630 = vmatprep.subr.bf16.mxu1 %v1292_v31  ;;  %v1327_v17 = vld [vmem:[%s1678_s5 + $0x98] sm:$0xff]   ;;  %v1331_v21 = vld [vmem:[%s1678_s5 + $0x90] sm:$0xff]   ;;  %v1337_v27 = vld [vmem:[%s1678_s5 + $0xc0] sm:$0xff]   ;;  %v397_v30 = vlaneseq }
  0x20   : > { %v1338_v28 = vld [vmem:[%s1678_s5] sm:$0xff]  }
  0x21   : > { %v1339_v29 = vld [vmem:[%s1678_s5 + $0x80] sm:$0xff]   ;;  %v398_v31 = vshrl.u32 %v397_v30, 7 }
  0x22   : > { %588 = vmatpush1.bf16.msra.mxu0 %v1294_v32  ;;  %631 = vmatpush1.bf16.msra.mxu1 %v1295_v33  ;;  %v395_v36 = vld [vmem:[%s1677_s4] sm:$0xf] }
  0x23   : > { %589 = vmatprep.subr.bf16.mxu0 %v1296_v34  ;;  %632 = vmatprep.subr.bf16.mxu1 %v1298_v35  ;;  %v403_v32 = vsub.s32 1, %v398_v31  ;;  %v411_v33 = vsub.s32 3, %v398_v31  ;;  %v399_v34 = vsub.s32 0, %v398_v31  ;;  %v407_v35 = vsub.s32 2, %v398_v31 }
  0x26   : > { %590 = vmatpush1.bf16.msra.mxu0 %v1300_v37  ;;  %633 = vmatpush1.bf16.msra.mxu1 %v1301_v38 }
  0x27   : > { %591 = vmatprep.subr.bf16.mxu0 %v1302_v39  ;;  %634 = vmatprep.subr.bf16.mxu1 %v1304_v40  ;;  %v404_v39 = vrot.slane %v395_v36, %v403_v32  ;;  %v412_v40 = vrot.slane %v395_v36, %v411_v33 }
  0x2a   : > { %592 = vmatpush1.bf16.msra.mxu0 %v1306_v41  ;;  %635 = vmatpush1.bf16.msra.mxu1 %v1307_v42  ;;  %v400_v41 = vrot.slane %v395_v36, %v399_v34  ;;  %v408_v42 = vrot.slane %v395_v36, %v407_v35 }
  0x2b   : > { %1191 = vmatprep.subr.bf16.mxu0 %v1308_v43  ;;  %1213 = vmatprep.subr.bf16.mxu1 %v1309_v44 }
  0x99   : > { %v324_v6 = vpop.xlane.xlu0 %323 }
  0x9a   : > { %v328_v7 = vmul.f32 0.0078125, %v324_v6  ;;  %v1316_v6 = vld [vmem:[%s1678_s5 + $0x68] sm:$0xff]  }
  0x9c   : > { %v1454_v8 = vsub.f32 %v1435_v0, %v328_v7  ;;  %v1317_v7 = vld [vmem:[%s1678_s5 + $0xe8] sm:$0xff]  }
  0x9d   : > { %v326_v9 = vpop.xlane.xlu0 %325 }
  0x9e   : > { %v329_v10 = vmul.f32 0.0078125, %v326_v9  ;;  %v332_v11 = vmul.f32 %v1454_v8, %v1454_v8  ;;  %v1319_v9 = vld [vmem:[%s1678_s5 + $0xa8] sm:$0xff]  }
  0xa0   : > { %v1459_v12 = vsub.f32 %v1437_v1, %v329_v10  ;;  %334 = vadd.xlane.f32.xlu1 %v332_v11  ;;  %v1320_v10 = vld [vmem:[%s1678_s5 + $0x60] sm:$0xff]  }
  0xa1   : > { %v1321_v11 = vld [vmem:[%s1678_s5 + $0xe0] sm:$0xff]  }
  0xa2   : > { %v333_v13 = vmul.f32 %v1459_v12, %v1459_v12 }
  0xa4   : > { %336 = vadd.xlane.f32.xlu1 %v333_v13  ;;  %v1323_v13 = vld [vmem:[%s1678_s5 + $0xa0] sm:$0xff]  }
 0x129   : > { %v335_v45 = vpop.xlane.xlu1 %334 }
 0x12a   : > { %v338_v46 = vmul.f32 0.0078125, %v335_v45 }
 0x12c   : > { %v340_v47 = vadd.f32 1e-05, %v338_v46 }
 0x12d   : > { %v337_v48 = vpop.xlane.xlu1 %336 }
 0x12e   : > { %1340 = vrsqrt.f32 %v340_v47  ;;  %v339_v49 = vmul.f32 0.0078125, %v337_v48 }
 0x130   : > { %v341_v50 = vadd.f32 1e-05, %v339_v49 }
 0x132   : > { %1342 = vrsqrt.f32 %v341_v50 }
 0x13b   : > { %v1341_v51 = vpop.eup %1340 }
 0x13c   : > { %v344_v52 = vmul.f32 %v1341_v51, %v1454_v8  ;;  %v1318_v8 = vld [vmem:[%s1678_s5 + $0x28] sm:$0xff]  }
 0x13e   : > { %v352_v56 = vmul.f32 %v1120_v53, %v344_v52 }
 0x13f   : > { %v1343_v54 = vpop.eup %1342 }
 0x140   : > { %v345_v55 = vmul.f32 %v1343_v54, %v1459_v12  ;;  %v360_v59 = vadd.f32 %v1121_v57, %v352_v56  ;;  %v1322_v12 = vld [vmem:[%s1678_s5 + $0x20] sm:$0xff]  }
 0x142   : > { %v353_v58 = vmul.f32 %v1120_v53, %v345_v55 }
 0x144   : > { %v361_v60 = vadd.f32 %v1121_v57, %v353_v58 }
 0x146   : > { %v362_v63 = vpack.c.bf16 %v361_v60, %v360_v59 }
 0x148   : > { %610 = vmatmul.mubr.bf16.vlgmr.msra.gmra.mxu0 %v362_v63  ;;  %653 = vmatmul.mubr.bf16.vlgmr.msra.gmra.mxu1 %v362_v63 }
 0x149   : > { %1192 = vmatpush3.bf16.msra.mxu0 %v1310_v61  ;;  %1214 = vmatpush3.bf16.msra.mxu1 %v1311_v62 }
 0x14a   : > { %1193 = vmatprep.subr.bf16.mxu0 %v1312_v2  ;;  %1215 = vmatprep.subr.bf16.mxu1 %v1313_v3 }
 0x14d   : > { %1194 = vmatpush3.bf16.msra.mxu0 %v1314_v4  ;;  %1216 = vmatpush3.bf16.msra.mxu1 %v1315_v5 }
 0x14e   : > { %1195 = vmatprep.subr.bf16.mxu0 %v1316_v6  ;;  %1217 = vmatprep.subr.bf16.mxu1 %v1317_v7 }
 0x151   : > { %1196 = vmatpush3.bf16.msra.mxu0 %v1318_v8  ;;  %1218 = vmatpush3.bf16.msra.mxu1 %v1319_v9  ;;  %v1154_v9 = vld [vmem:[%s1679_s6] ss:$0 sm:$0xff] }
 0x152   : > { %1197 = vmatprep.subr.bf16.mxu0 %v1320_v10  ;;  %1219 = vmatprep.subr.bf16.mxu1 %v1321_v11 }
 0x155   : > { %1198 = vmatpush3.bf16.msra.mxu0 %v1322_v12  ;;  %1220 = vmatpush3.bf16.msra.mxu1 %v1323_v13 }
 0x156   : > { %1199 = vmatprep.subr.bf16.mxu0 %v1324_v14  ;;  %1221 = vmatprep.subr.bf16.mxu1 %v1325_v15 }
 0x159   : > { %1200 = vmatpush3.bf16.msra.mxu0 %v1326_v16  ;;  %1222 = vmatpush3.bf16.msra.mxu1 %v1327_v17 }
 0x15a   : > { %1201 = vmatprep.subr.bf16.mxu0 %v1328_v18  ;;  %1223 = vmatprep.subr.bf16.mxu1 %v1329_v19 }
 0x15d   : > { %1202 = vmatpush3.bf16.msra.mxu0 %v1330_v20  ;;  %1224 = vmatpush3.bf16.msra.mxu1 %v1331_v21 }
 0x15e   : > { %1203 = vmatprep.subr.bf16.mxu0 %v1332_v22  ;;  %1225 = vmatprep.subr.bf16.mxu1 %v1333_v23 }
 0x161   : > { %1204 = vmatpush3.bf16.msra.mxu0 %v1334_v24  ;;  %1226 = vmatpush3.bf16.msra.mxu1 %v1335_v25 }
 0x162   : > { %1205 = vmatprep.subr.bf16.mxu0 %v1336_v26  ;;  %1227 = vmatprep.subr.bf16.mxu1 %v1337_v27 }
 0x165   : > { %1206 = vmatpush3.bf16.msra.mxu0 %v1338_v28  ;;  %1228 = vmatpush3.bf16.msra.mxu1 %v1339_v29 }
 0x208   : > { %v611_v37 = vpop.f32.mrf.mxu0  ;;  %v654_v38 = vpop.f32.mrf.mxu1 }
 0x209   : > { %v612_v51 = vadd.f32 %v611_v37, %v400_v41  ;;  %v655_v52 = vadd.f32 %v654_v38, %v408_v42 }
 0x20a   : > { %v613_v43 = vpop.f32.mrf.mxu0  ;;  %v656_v44 = vpop.f32.mrf.mxu1 }
 0x20b   : > { %v614_v47 = vadd.f32 %v613_v43, %v404_v39  ;;  %v657_v48 = vadd.f32 %v656_v44, %v412_v40  ;;  %v663_v63 = vmax.f32 %v612_v51, 0.0  ;;  %v665_v2 = vmax.f32 %v655_v52, 0.0 }
 0x20c   : > { %v615_v45 = vpop.f32.mrf.mxu0  ;;  %v658_v46 = vpop.f32.mrf.mxu1 }
 0x20d   : > { %v616_v49 = vadd.f32 %v615_v45, %v400_v41  ;;  %v659_v50 = vadd.f32 %v658_v46, %v408_v42  ;;  %v664_v59 = vmax.f32 %v614_v47, 0.0  ;;  %v666_v60 = vmax.f32 %v657_v48, 0.0 }
 0x20e   : > { %v617_v53 = vpop.f32.mrf.mxu0  ;;  %v660_v54 = vpop.f32.mrf.mxu1 }
 0x20f   : > { %v618_v55 = vadd.f32 %v617_v53, %v404_v39  ;;  %v661_v56 = vadd.f32 %v660_v54, %v412_v40  ;;  %v667_v57 = vmax.f32 %v616_v49, 0.0  ;;  %v669_v58 = vmax.f32 %v659_v50, 0.0 }
 0x211   : > { %v668_v61 = vmax.f32 %v618_v55, 0.0  ;;  %v670_v62 = vmax.f32 %v661_v56, 0.0  ;;  %v671_v5 = vpack.c.bf16 %v667_v57, %v663_v63  ;;  %v673_v6 = vpack.c.bf16 %v669_v58, %v665_v2 }
 0x213   : > { %v672_v3 = vpack.c.bf16 %v668_v61, %v664_v59  ;;  %v674_v4 = vpack.c.bf16 %v670_v62, %v666_v60 }
 0x215   : > { %970 = vmatprep.mubr.bf16.mxu0 %v672_v3  ;;  %1011 = vmatprep.mubr.bf16.mxu1 %v674_v4 }
 0x216   : > { %971 = vmatmul.mubr.bf16.vlgmr.msra.gmra.mxu0 %v671_v5  ;;  %1012 = vmatmul.mubr.bf16.vlgmr.msra.gmra.mxu1 %v673_v6 }
 0x2d6   : > { %v1207_v7 = vpop.f32.mrf.mxu0  ;;  %v1229_v8 = vpop.f32.mrf.mxu1 }
 0x2d8   : > { %v1208_v10 = vpop.f32.mrf.mxu0  ;;  %v1230_v11 = vpop.f32.mrf.mxu1 }
 0x2d9   : > { %v1209_v12 = vadd.f32 %v1208_v10, %v1207_v7  ;;  %v1231_v16 = vadd.f32 %v1230_v11, %v1229_v8 }
 0x2da   : > { %v1210_v13 = vpop.f32.mrf.mxu0  ;;  %v1232_v14 = vpop.f32.mrf.mxu1 }
 0x2db   : > { %v973_v15 = vadd.f32 %v1209_v12, %v1154_v9 }
 0x2dc   : > { %v1211_v17 = vpop.f32.mrf.mxu0  ;;  %v1233_v18 = vpop.f32.mrf.mxu1 }
 0x2dd   : > { %v1014_v19 = vadd.f32 %v1231_v16, %v973_v15  ;;  %v1212_v20 = vadd.f32 %v1211_v17, %v1210_v13  ;;  %v1234_v23 = vadd.f32 %v1233_v18, %v1232_v14 }
 0x2df   : > { %v1020_v21 = vadd.f32 %v1014_v19, %v1435_v0  ;;  %v976_v22 = vadd.f32 %v1212_v20, %v1154_v9 }
 0x2e1   : > { %1022 = vst [vmem:[%s316_s21] sm:$0xff] %v1020_v21  ;;  %v1017_v24 = vadd.f32 %v1234_v23, %v976_v22 }
 0x2e3   : > { %v1021_v25 = vadd.f32 %v1017_v24, %v1437_v1 }
 0x2e5   : > { %1023 = vst [vmem:[%s316_s21 + $0x8] sm:$0xff] %v1021_v25 }
 0x2e6 PF: > { %s17_s26 = sadd.s32 1, %s1366_s26   ;;  %s1681_s24 = smov %s1362_s25 }
 0x2e7   : > { %p14_p5 = scmp.ge.s32.totalorder %s17_s26, 4   ;;  %s1682_s25 = smov %s1684_s27 }
 0x2e9   :  { %16 = sbr.rel (!%p14_p5) target bundleno = 2 (0x2), region = 78 }

// kernel: hourglass_forward.12
= control target key start
LH: loop header
LB: loop body
LE: loop exit
PB: predicated region body
PF: predicated region fallthrough
CT: control target
= control target key end

     0   :  { %s1093_s24 = smov 0   ;;  %s1095_s25 = smov 0   ;;  %s1247_s0 = inlined_call_operand.vmem [shape: f32[2,8,128], index: 0, kind: input, shape index: {}]   ;;  %s1248_s1 = inlined_call_operand.vmem [shape: f32[1,128], index: 1, kind: input, shape index: {}]   ;;  %s1249_s2 = inlined_call_operand.vmem [shape: f32[1,128], index: 2, kind: input, shape index: {}]   ;;  %s1250_s3 = inlined_call_operand.vmem [shape: bf16[128,384], index: 3, kind: input, shape index: {}]   ;;  %s1251_s4 = inlined_call_operand.vmem [shape: f32[1,384], index: 4, kind: input, shape index: {}]   ;;  %s1252_s5 = inlined_call_operand.vmem [shape: bf16[2,4,8,32], index: 5, kind: output, shape index: {0}]   ;;  %s1253_s6 = inlined_call_operand.vmem [shape: bf16[2,4,8,32], index: 6, kind: output, shape index: {1}]   ;;  %s1254_s7 = inlined_call_operand.vmem [shape: bf16[2,4,8,32], index: 7, kind: output, shape index: {2}]  }
   0x1   :  { %s1097_s26 = smov 0  }
   0x2 LB: > { %s30_s27 = sadd.s32 1, %s1041_s25  ;;  %p876_p0 = scmp.ge.s32.totalorder %s1045_s26, 1  ;;  %s1045_s26 = sphi %s1097_s26, %s18_s26   ;;  %s1041_s25 = sphi %s1095_s25, %s1256_s25   ;;  %s1037_s24 = sphi %s1093_s24, %s1255_s24  }
   0x3   : > { %p32_p1 = scmp.ge.s32.totalorder %s30_s27, 2  ;;  %p264_p2 = scmp.lt.s32.totalorder %s1045_s26, 3 }
   0x5   : > { %s1258_s27 = smov (%p32_p1, %s30_s27), 0  ;;  %p265_p3 = pnand %p876_p0, %p264_p2 }
   0x6   : > { %p317_p4 = scmp.lt.s32.totalorder (!%p265_p3), %s1037_s24, 1  ;;  %s1050_s15 = smov (!%p265_p3), 96  }
   0x7   : > { %268 = sbr.rel (%p265_p3) target bundleno = 665 (0x299), region = 40  ;;  %s1051_s16 = smov (!%p265_p3), 64  }
   0x8   : > { %s1052_s17 = smov (!%p265_p3), 32  }
   0xc   : > { %s1260_s24 = smov (!%p317_p4, %s1037_s24), 1  ;;  %v989_v1 = vld [vmem:[%s1250_s3 + $0xac] ss:$12 sps:$4 sm:$0xff]   ;;  %v991_v2 = vld [vmem:[%s1250_s3 + $0xa8] ss:$12 sps:$4 sm:$0xff]   ;;  %v1047_v3 = vmov 0.0   ;;  %v413_v41 = vlaneseq }
   0xd   : > { %s877_s28 = sshll.u32 %s1260_s24, 3  ;;  %939 = vmatprep.subr.bf16.mxu1 %v1047_v3  ;;  %v992_v4 = vld [vmem:[%s1250_s3 + $0xb0] ss:$12 sps:$4 sm:$0xff]   ;;  %v993_v5 = vld [vmem:[%s1250_s3 + $0x94] ss:$12 sps:$4 sm:$0xff]   ;;  %556 = vmatprep.subr.bf16.mxu0 %v989_v1  ;;  %v1048_v22 = vmov 0  }
   0xe   : > { %s323_s8 = scalar_lea.vmem %s1247_s0, %s877_s28  ;;  %557 = vmatpush1.bf16.msra.mxu0 %v991_v2  ;;  %940 = vmatpush3.bf16.msra.mxu1 %v992_v4  ;;  %v995_v6 = vld [vmem:[%s1250_s3 + $0x90] ss:$12 sps:$4 sm:$0xff]   ;;  %v996_v7 = vld [vmem:[%s1250_s3 + $0x98] ss:$12 sps:$4 sm:$0xff]   ;;  %v1000_v14 = vld [vmem:[%s1250_s3 + $0x80] ss:$12 sps:$4 sm:$0xff]  }
   0xf   : > { %v349_v0 = vld [vmem:[%s323_s8] sm:$0xff]  ;;  %558 = vmatprep.subr.bf16.mxu0 %v993_v5  ;;  %941 = vmatprep.subr.bf16.mxu1 %v1047_v3  ;;  %v997_v12 = vld [vmem:[%s1250_s3 + $0x7c] ss:$12 sps:$4 sm:$0xff]   ;;  %v1005_v18 = vld [vmem:[%s1250_s3 + $0x4c] ss:$12 sps:$4 sm:$0xff]   ;;  %vm1049_vm0 = vmmov 0  }
  0x10   : > { %352 = vadd.xlane.f32.xlu0 %v349_v0  ;;  %v999_v13 = vld [vmem:[%s1250_s3 + $0x78] ss:$12 sps:$4 sm:$0xff]   ;;  %v1003_v16 = vld [vmem:[%s1250_s3 + $0x60] ss:$12 sps:$4 sm:$0xff]   ;;  %v1004_v17 = vld [vmem:[%s1250_s3 + $0x68] ss:$12 sps:$4 sm:$0xff]   ;;  %588 = vmatprep.mubr.bf16.mxu0 %v1048_v22 }
  0x11   : > { %v1001_v15 = vld [vmem:[%s1250_s3 + $0x64] ss:$12 sps:$4 sm:$0xff]   ;;  %v1007_v19 = vld [vmem:[%s1250_s3 + $0x48] ss:$12 sps:$4 sm:$0xff]   ;;  %955 = vmatprep.mubr.msk.bf16.mxu1 %vm1049_vm0, %v1047_v3  ;;  %v1016_v27 = vld [vmem:[%s1250_s3 + $0x20] ss:$12 sps:$4 sm:$0xff]  }
  0x12   : > { %559 = vmatpush1.bf16.msra.mxu0 %v995_v6  ;;  %942 = vmatpush3.bf16.msra.mxu1 %v996_v7  ;;  %v1008_v20 = vld [vmem:[%s1250_s3 + $0x50] ss:$12 sps:$4 sm:$0xff]   ;;  %v1009_v21 = vld [vmem:[%s1250_s3 + $0x34] ss:$12 sps:$4 sm:$0xff]   ;;  %v1012_v24 = vld [vmem:[%s1250_s3 + $0x38] ss:$12 sps:$4 sm:$0xff]  }
  0x13   : > { %943 = vmatprep.subr.bf16.mxu1 %v1047_v3  ;;  %560 = vmatprep.subr.bf16.mxu0 %v997_v12  ;;  %v1011_v23 = vld [vmem:[%s1250_s3 + $0x30] ss:$12 sps:$4 sm:$0xff]   ;;  %v1015_v26 = vld [vmem:[%s1250_s3 + $0x18] ss:$12 sps:$4 sm:$0xff]   ;;  %v1019_v29 = vld [vmem:[%s1250_s3] ss:$12 sps:$4 sm:$0xff]  }
  0x14   : > { %v1013_v25 = vld [vmem:[%s1250_s3 + $0x1c] ss:$12 sps:$4 sm:$0xff]   ;;  %v1017_v28 = vld [vmem:[%s1250_s3 + $0x4] ss:$12 sps:$4 sm:$0xff]   ;;  %v884_v35 = vld [vmem:[%s1248_s1] ss:$0 sm:$0xff] }
  0x15   : > { %v1020_v30 = vld [vmem:[%s1250_s3 + $0x8] ss:$12 sps:$4 sm:$0xff]   ;;  %v885_v37 = vld [vmem:[%s1249_s2] ss:$0 sm:$0xff]  ;;  %v414_v42 = vshrl.u32 %v413_v41, 7  ;;  %s924_s29 = sshll.u32 %s1260_s24, 4 }
  0x16   : > { %561 = vmatpush1.bf16.msra.mxu0 %v999_v13  ;;  %944 = vmatpush3.bf16.msra.mxu1 %v1000_v14  ;;  %v411_v45 = vld [vmem:[%s1251_s4] sm:$0x7]  ;;  %s1202_s9 = scalar_lea.vmem %s1254_s7, %s924_s29  ;;  %vm638_vm1 = vcmask 257024   ;;  %s1207_s12 = scalar_lea.vmem %s1252_s5, %s924_s29 }
  0x17   : > { %945 = vmatprep.subr.bf16.mxu1 %v1047_v3  ;;  %562 = vmatprep.subr.bf16.mxu0 %v1001_v15  ;;  %v415_v43 = vsub.s32 0, %v414_v42  ;;  %v423_v44 = vsub.s32 2, %v414_v42  ;;  %v419_v46 = vsub.s32 1, %v414_v42  ;;  %s1212_s14 = scalar_lea.vmem %s1253_s6, %s924_s29 }
  0x19   : > { %v416_v47 = vrot.slane %v411_v45, %v415_v43  ;;  %v424_v48 = vrot.slane %v411_v45, %v423_v44  ;;  %v420_v49 = vrot.slane %v411_v45, %v419_v46 }
  0x1a   : > { %563 = vmatpush1.bf16.msra.mxu0 %v1003_v16  ;;  %946 = vmatpush3.bf16.msra.mxu1 %v1004_v17 }
  0x1b   : > { %564 = vmatprep.subr.bf16.mxu0 %v1005_v18  ;;  %947 = vmatprep.subr.bf16.mxu1 %v1047_v3 }
  0x1e   : > { %565 = vmatpush1.bf16.msra.mxu0 %v1007_v19  ;;  %948 = vmatpush3.bf16.msra.mxu1 %v1008_v20 }
  0x1f   : > { %566 = vmatprep.subr.bf16.mxu0 %v1009_v21  ;;  %949 = vmatprep.subr.bf16.mxu1 %v1047_v3 }
  0x22   : > { %567 = vmatpush1.bf16.msra.mxu0 %v1011_v23  ;;  %950 = vmatpush3.bf16.msra.mxu1 %v1012_v24 }
  0x23   : > { %568 = vmatprep.subr.bf16.mxu0 %v1013_v25  ;;  %951 = vmatprep.subr.bf16.mxu1 %v1047_v3 }
  0x26   : > { %569 = vmatpush1.bf16.msra.mxu0 %v1015_v26  ;;  %952 = vmatpush3.bf16.msra.mxu1 %v1016_v27 }
  0x27   : > { %570 = vmatprep.subr.bf16.mxu0 %v1017_v28  ;;  %953 = vmatprep.subr.bf16.mxu1 %v1047_v3 }
  0x2a   : > { %571 = vmatpush1.bf16.msra.mxu0 %v1019_v29  ;;  %954 = vmatpush3.bf16.msra.mxu1 %v1020_v30 }
  0x99   : > { %v353_v8 = vpop.xlane.xlu0 %352 }
  0x9a   : > { %v355_v9 = vmul.f32 0.0078125, %v353_v8 }
  0x9c   : > { %v356_v10 = vsub.f32 %v349_v0, %v355_v9 }
  0x9e   : > { %v357_v11 = vmul.f32 %v356_v10, %v356_v10 }
  0xa0   : > { %358 = vadd.xlane.f32.xlu0 %v357_v11 }
 0x129   : > { %v359_v31 = vpop.xlane.xlu0 %358 }
 0x12a   : > { %v360_v32 = vmul.f32 0.0078125, %v359_v31 }
 0x12c   : > { %v361_v33 = vadd.f32 1e-05, %v360_v32 }
 0x12e   : > { %1021 = vrsqrt.f32 %v361_v33 }
 0x13b   : > { %v1022_v34 = vpop.eup %1021 }
 0x13c   : > { %v363_v36 = vmul.f32 %v1022_v34, %v356_v10 }
 0x13e   : > { %v370_v38 = vmul.f32 %v884_v35, %v363_v36 }
 0x140   : > { %v377_v39 = vadd.f32 %v885_v37, %v370_v38 }
 0x142   : > { %v378_v40 = vpack.c.bf16 %v377_v39, %v377_v39 }
 0x144   : > { %589 = vmatmul.mubr.bf16.vlgmr.msra.gmra.mxu0 %v378_v40  ;;  %956 = vmatmul.mubr.bf16.vlgmr.msra.gmra.mxu1 %v378_v40 }
 0x204   : > { %v590_v50 = vpop.f32.mrf.mxu0  ;;  %v631_v51 = vpop.f32.mrf.mxu1 }
 0x205   : > { %v591_v52 = vadd.f32 %v590_v50, %v416_v47  ;;  %v632_v53 = vadd.f32 %v631_v51, %v424_v48 }
 0x206   : > { %v592_v54 = vpop.f32.mrf.mxu0  ;;  %v957_v55 = vpop.f32.mrf.mxu1 }
 0x207   : > { %v637_v56 = vpack.c.bf16 %v591_v52, %v591_v52  ;;  %v642_v57 = vpack.c.bf16 %v632_v53, %v632_v53  ;;  %v593_v58 = vadd.f32 %v592_v54, %v420_v49 }
 0x208   : > { %v594_v59 = vpop.f32.mrf.mxu0  ;;  %v634_v60 = vpop.f32.mrf.mxu1 }
 0x209   : > { %v640_v61 = vpack.c.bf16 %v593_v58, %v593_v58  ;;  %663 = vrot.lane.b32.xlu0 %v642_v57, %s1050_s15  ;;  %647 = vrot.lane.b32.xlu1 %v637_v56, %s1050_s15  ;;  %643 = vst.msk [vmem:[%s1202_s9] sm:$0xf] %vm638_vm1, %v642_v57  ;;  %639 = vst.msk [vmem:[%s1207_s12] sm:$0xf] %vm638_vm1, %v637_v56 }
 0x20a   : > { %v595_v62 = vpop.f32.mrf.mxu0  ;;  %v958_v63 = vpop.f32.mrf.mxu1 }
 0x20b   : > { %641 = vst.msk [vmem:[%s1212_s14] sm:$0xf] %vm638_vm1, %v640_v61 }
 0x20d   : > { %668 = vrot.lane.b32.xlu1 %v637_v56, %s1051_s16 }
 0x211   : > { %678 = vrot.lane.b32.xlu1 %v642_v57, %s1051_s16 }
 0x215   : > { %683 = vrot.lane.b32.xlu1 %v637_v56, %s1052_s17 }
 0x219   : > { %655 = vrot.lane.b32.xlu1 %v640_v61, %s1050_s15 }
 0x21d   : > { %673 = vrot.lane.b32.xlu1 %v640_v61, %s1051_s16 }
 0x221   : > { %688 = vrot.lane.b32.xlu1 %v640_v61, %s1052_s17 }
 0x225   : > { %693 = vrot.lane.b32.xlu1 %v642_v57, %s1052_s17 }
 0x27b   : > { %v664_v0 = vpop.permute.xlu0 %663  ;;  %v648_v1 = vpop.permute.xlu1 %647 }
 0x27c   : > { %915 = vst.msk [vmem:[%s1202_s9 + $0x4] sm:$0xf] %vm638_vm1, %v664_v0  ;;  %911 = vst.msk [vmem:[%s1207_s12 + $0x4] sm:$0xf] %vm638_vm1, %v648_v1 }
 0x27f   : > { %v669_v2 = vpop.permute.xlu1 %668 }
 0x280   : > { %916 = vst.msk [vmem:[%s1207_s12 + $0x8] sm:$0xf] %vm638_vm1, %v669_v2 }
 0x283   : > { %v679_v3 = vpop.permute.xlu1 %678 }
 0x284   : > { %918 = vst.msk [vmem:[%s1202_s9 + $0x8] sm:$0xf] %vm638_vm1, %v679_v3 }
 0x287   : > { %v684_v4 = vpop.permute.xlu1 %683 }
 0x288   : > { %919 = vst.msk [vmem:[%s1207_s12 + $0xc] sm:$0xf] %vm638_vm1, %v684_v4 }
 0x28b   : > { %v656_v5 = vpop.permute.xlu1 %655 }
 0x28c   : > { %913 = vst.msk [vmem:[%s1212_s14 + $0x4] sm:$0xf] %vm638_vm1, %v656_v5 }
 0x28f   : > { %v674_v6 = vpop.permute.xlu1 %673 }
 0x290   : > { %917 = vst.msk [vmem:[%s1212_s14 + $0x8] sm:$0xf] %vm638_vm1, %v674_v6 }
 0x293   : > { %v689_v7 = vpop.permute.xlu1 %688 }
 0x294   : > { %920 = vst.msk [vmem:[%s1212_s14 + $0xc] sm:$0xf] %vm638_vm1, %v689_v7 }
 0x297   : > { %v694_v8 = vpop.permute.xlu1 %693 }
 0x298   : > { %921 = vst.msk [vmem:[%s1202_s9 + $0xc] sm:$0xf] %vm638_vm1, %v694_v8 }
 0x299 PF: > { %s18_s26 = sadd.s32 1, %s1045_s26   ;;  %s1255_s24 = smov %s1041_s25 }
 0x29a   : > { %p15_p5 = scmp.ge.s32.totalorder %s18_s26, 4   ;;  %s1256_s25 = smov %s1258_s27 }
 0x29c   :  { %17 = sbr.rel (!%p15_p5) target bundleno = 2 (0x2), region = 103 }

// kernel: hourglass_forward.14
= control target key start
LH: loop header
LB: loop body
LE: loop exit
PB: predicated region body
PF: predicated region fallthrough
CT: control target
= control target key end

     0   :  { %s1351_s24 = smov 0   ;;  %s1353_s25 = smov 0   ;;  %s1605_s0 = inlined_call_operand.vmem [shape: f32[2,8,128], index: 0, kind: input, shape index: {}]   ;;  %s1606_s1 = inlined_call_operand.vmem [shape: f32[1,128], index: 1, kind: input, shape index: {}]   ;;  %s1607_s2 = inlined_call_operand.vmem [shape: f32[1,128], index: 2, kind: input, shape index: {}]   ;;  %s1608_s3 = inlined_call_operand.vmem [shape: bf16[128,512], index: 3, kind: input, shape index: {}]   ;;  %s1609_s4 = inlined_call_operand.vmem [shape: f32[1,512], index: 4, kind: input, shape index: {}]   ;;  %s1610_s5 = inlined_call_operand.vmem [shape: bf16[512,128], index: 5, kind: input, shape index: {}]   ;;  %s1611_s6 = inlined_call_operand.vmem [shape: f32[1,128], index: 6, kind: input, shape index: {}]   ;;  %s1612_s7 = inlined_call_operand.vmem [shape: f32[2,8,128], index: 7, kind: output, shape index: {}]  }
   0x1   :  { %s1355_s26 = smov 0  }
   0x2 LB: > { %s29_s27 = sadd.s32 1, %s1304_s25  ;;  %p1063_p0 = scmp.ge.s32.totalorder %s1308_s26, 1  ;;  %s1308_s26 = sphi %s1355_s26, %s17_s26   ;;  %s1304_s25 = sphi %s1353_s25, %s1614_s25   ;;  %s1300_s24 = sphi %s1351_s24, %s1613_s24  }
   0x3   : > { %p31_p1 = scmp.ge.s32.totalorder %s29_s27, 2  ;;  %p255_p2 = scmp.lt.s32.totalorder %s1308_s26, 3 }
   0x5   : > { %s1616_s27 = smov (%p31_p1, %s29_s27), 0  ;;  %p256_p3 = pnand %p1063_p0, %p255_p2 }
   0x6   : > { %p291_p4 = scmp.lt.s32.totalorder (!%p256_p3), %s1300_s24, 1 }
   0x7   : > { %259 = sbr.rel (%p256_p3) target bundleno = 730 (0x2da), region = 48 }
   0xc   : > { %s1618_s24 = smov (!%p291_p4, %s1300_s24), 1  ;;  %v1204_v1 = vld [vmem:[%s1608_s3 + $0xe4] ss:$16 sps:$4 sm:$0xff]   ;;  %v1206_v2 = vld [vmem:[%s1608_s3 + $0xec] ss:$16 sps:$4 sm:$0xff]   ;;  %v1310_v31 = vmov 0  }
   0xd   : > { %s1064_s28 = sshll.u32 %s1618_s24, 3  ;;  %v1208_v3 = vld [vmem:[%s1608_s3 + $0xe0] ss:$16 sps:$4 sm:$0xff]   ;;  %v1209_v4 = vld [vmem:[%s1608_s3 + $0xe8] ss:$16 sps:$4 sm:$0xff]   ;;  %550 = vmatprep.subr.bf16.mxu0 %v1204_v1  ;;  %591 = vmatprep.subr.bf16.mxu1 %v1206_v2 }
   0xe   : > { %s297_s8 = scalar_lea.vmem %s1605_s0, %s1064_s28  ;;  %v1210_v5 = vld [vmem:[%s1608_s3 + $0xc4] ss:$16 sps:$4 sm:$0xff]   ;;  %v1212_v6 = vld [vmem:[%s1608_s3 + $0xcc] ss:$16 sps:$4 sm:$0xff]   ;;  %v1214_v7 = vld [vmem:[%s1608_s3 + $0xc0] ss:$16 sps:$4 sm:$0xff]   ;;  %551 = vmatpush1.bf16.msra.mxu0 %v1208_v3  ;;  %592 = vmatpush1.bf16.msra.mxu1 %v1209_v4  ;;  %s304_s21 = scalar_lea.vmem %s1612_s7, %s1064_s28 }
   0xf   : > { %v1377_v0 = vld [vmem:[%s297_s8] sm:$0xff]  ;;  %v1215_v8 = vld [vmem:[%s1608_s3 + $0xc8] ss:$16 sps:$4 sm:$0xff]   ;;  %552 = vmatprep.subr.bf16.mxu0 %v1210_v5  ;;  %593 = vmatprep.subr.bf16.mxu1 %v1212_v6  ;;  %v1218_v14 = vld [vmem:[%s1608_s3 + $0xac] ss:$16 sps:$4 sm:$0xff]  }
  0x10   : > { %309 = vadd.xlane.f32.xlu0 %v1377_v0  ;;  %v1216_v13 = vld [vmem:[%s1608_s3 + $0xa4] ss:$16 sps:$4 sm:$0xff]   ;;  %v1220_v15 = vld [vmem:[%s1608_s3 + $0xa0] ss:$16 sps:$4 sm:$0xff]   ;;  %v1221_v16 = vld [vmem:[%s1608_s3 + $0xa8] ss:$16 sps:$4 sm:$0xff]   ;;  %582 = vmatprep.mubr.bf16.mxu0 %v1310_v31 }
  0x11   : > { %v1222_v17 = vld [vmem:[%s1608_s3 + $0x84] ss:$16 sps:$4 sm:$0xff]   ;;  %v1224_v18 = vld [vmem:[%s1608_s3 + $0x8c] ss:$16 sps:$4 sm:$0xff]   ;;  %v1226_v19 = vld [vmem:[%s1608_s3 + $0x80] ss:$16 sps:$4 sm:$0xff]   ;;  %623 = vmatprep.mubr.bf16.mxu1 %v1310_v31 }
  0x12   : > { %553 = vmatpush1.bf16.msra.mxu0 %v1214_v7  ;;  %594 = vmatpush1.bf16.msra.mxu1 %v1215_v8  ;;  %v1227_v20 = vld [vmem:[%s1608_s3 + $0x88] ss:$16 sps:$4 sm:$0xff]   ;;  %v1228_v21 = vld [vmem:[%s1608_s3 + $0x64] ss:$16 sps:$4 sm:$0xff]   ;;  %v1230_v22 = vld [vmem:[%s1608_s3 + $0x6c] ss:$16 sps:$4 sm:$0xff]  }
  0x13   : > { %554 = vmatprep.subr.bf16.mxu0 %v1216_v13  ;;  %595 = vmatprep.subr.bf16.mxu1 %v1218_v14  ;;  %v1232_v23 = vld [vmem:[%s1608_s3 + $0x60] ss:$16 sps:$4 sm:$0xff]   ;;  %v1233_v24 = vld [vmem:[%s1608_s3 + $0x68] ss:$16 sps:$4 sm:$0xff]   ;;  %v1234_v25 = vld [vmem:[%s1608_s3 + $0x44] ss:$16 sps:$4 sm:$0xff]  }
  0x14   : > { %v1236_v26 = vld [vmem:[%s1608_s3 + $0x4c] ss:$16 sps:$4 sm:$0xff]   ;;  %v1238_v27 = vld [vmem:[%s1608_s3 + $0x40] ss:$16 sps:$4 sm:$0xff]   ;;  %v1239_v28 = vld [vmem:[%s1608_s3 + $0x48] ss:$16 sps:$4 sm:$0xff]  }
  0x15   : > { %v1240_v29 = vld [vmem:[%s1608_s3 + $0x24] ss:$16 sps:$4 sm:$0xff]   ;;  %v1242_v30 = vld [vmem:[%s1608_s3 + $0x2c] ss:$16 sps:$4 sm:$0xff]   ;;  %v1244_v32 = vld [vmem:[%s1608_s3 + $0x20] ss:$16 sps:$4 sm:$0xff]  }
  0x16   : > { %555 = vmatpush1.bf16.msra.mxu0 %v1220_v15  ;;  %596 = vmatpush1.bf16.msra.mxu1 %v1221_v16  ;;  %v1245_v33 = vld [vmem:[%s1608_s3 + $0x28] ss:$16 sps:$4 sm:$0xff]   ;;  %v1246_v34 = vld [vmem:[%s1608_s3 + $0x4] ss:$16 sps:$4 sm:$0xff]   ;;  %v1248_v35 = vld [vmem:[%s1608_s3 + $0xc] ss:$16 sps:$4 sm:$0xff]  }
  0x17   : > { %556 = vmatprep.subr.bf16.mxu0 %v1222_v17  ;;  %597 = vmatprep.subr.bf16.mxu1 %v1224_v18  ;;  %v1250_v36 = vld [vmem:[%s1608_s3] ss:$16 sps:$4 sm:$0xff]   ;;  %v1251_v37 = vld [vmem:[%s1608_s3 + $0x8] ss:$16 sps:$4 sm:$0xff]   ;;  %v370_v17 = vlaneseq }
  0x18   : > { %v1252_v38 = vld [vmem:[%s1610_s5 + $0x78] sm:$0xff]   ;;  %v1066_v44 = vld [vmem:[%s1606_s1] ss:$0 sm:$0xff]  ;;  %v1256_v52 = vld [vmem:[%s1610_s5 + $0x70] sm:$0xff]  }
  0x19   : > { %v1253_v39 = vld [vmem:[%s1610_s5 + $0xf8] sm:$0xff]   ;;  %v1067_v46 = vld [vmem:[%s1607_s2] ss:$0 sm:$0xff]  ;;  %v1257_v53 = vld [vmem:[%s1610_s5 + $0xf0] sm:$0xff]   ;;  %v371_v18 = vshrl.u32 %v370_v17, 7 }
  0x1a   : > { %557 = vmatpush1.bf16.msra.mxu0 %v1226_v19  ;;  %598 = vmatpush1.bf16.msra.mxu1 %v1227_v20  ;;  %v1254_v49 = vld [vmem:[%s1610_s5 + $0x38] sm:$0xff]   ;;  %v1258_v54 = vld [vmem:[%s1610_s5 + $0x30] sm:$0xff]   ;;  %v1260_v56 = vld [vmem:[%s1610_s5 + $0x68] sm:$0xff]  }
  0x1b   : > { %558 = vmatprep.subr.bf16.mxu0 %v1228_v21  ;;  %599 = vmatprep.subr.bf16.mxu1 %v1230_v22  ;;  %v1255_v50 = vld [vmem:[%s1610_s5 + $0xb8] sm:$0xff]   ;;  %v1259_v55 = vld [vmem:[%s1610_s5 + $0xb0] sm:$0xff]   ;;  %v1261_v57 = vld [vmem:[%s1610_s5 + $0xe8] sm:$0xff]   ;;  %v372_v19 = vsub.s32 0, %v371_v18  ;;  %v380_v20 = vsub.s32 2, %v371_v18  ;;  %v376_v22 = vsub.s32 1, %v371_v18 }
  0x1c   : > { %v1262_v58 = vld [vmem:[%s1610_s5 + $0x28] sm:$0xff]   ;;  %v1264_v60 = vld [vmem:[%s1610_s5 + $0x60] sm:$0xff]   ;;  %v1268_v1 = vld [vmem:[%s1610_s5 + $0x58] sm:$0xff]  }
  0x1d   : > { %v1263_v59 = vld [vmem:[%s1610_s5 + $0xa8] sm:$0xff]   ;;  %v1265_v61 = vld [vmem:[%s1610_s5 + $0xe0] sm:$0xff]   ;;  %v1269_v2 = vld [vmem:[%s1610_s5 + $0xd8] sm:$0xff]  }
  0x1e   : > { %559 = vmatpush1.bf16.msra.mxu0 %v1232_v23  ;;  %600 = vmatpush1.bf16.msra.mxu1 %v1233_v24  ;;  %v1266_v62 = vld [vmem:[%s1610_s5 + $0x20] sm:$0xff]   ;;  %v1270_v3 = vld [vmem:[%s1610_s5 + $0x18] sm:$0xff]   ;;  %v1272_v5 = vld [vmem:[%s1610_s5 + $0x50] sm:$0xff]   ;;  %v384_v23 = vsub.s32 3, %v371_v18 }
  0x1f   : > { %560 = vmatprep.subr.bf16.mxu0 %v1234_v25  ;;  %601 = vmatprep.subr.bf16.mxu1 %v1236_v26  ;;  %v1267_v63 = vld [vmem:[%s1610_s5 + $0xa0] sm:$0xff]   ;;  %v1271_v4 = vld [vmem:[%s1610_s5 + $0x98] sm:$0xff]   ;;  %v1273_v6 = vld [vmem:[%s1610_s5 + $0xd0] sm:$0xff]  }
  0x20   : > { %v1274_v7 = vld [vmem:[%s1610_s5 + $0x10] sm:$0xff]   ;;  %v1280_v13 = vld [vmem:[%s1610_s5 + $0x40] sm:$0xff]  }
  0x21   : > { %v1275_v8 = vld [vmem:[%s1610_s5 + $0x90] sm:$0xff]   ;;  %v1281_v14 = vld [vmem:[%s1610_s5 + $0xc0] sm:$0xff]  }
  0x22   : > { %561 = vmatpush1.bf16.msra.mxu0 %v1238_v27  ;;  %602 = vmatpush1.bf16.msra.mxu1 %v1239_v28  ;;  %v1282_v15 = vld [vmem:[%s1610_s5] sm:$0xff]  }
  0x23   : > { %562 = vmatprep.subr.bf16.mxu0 %v1240_v29  ;;  %603 = vmatprep.subr.bf16.mxu1 %v1242_v30  ;;  %v1283_v16 = vld [vmem:[%s1610_s5 + $0x80] sm:$0xff]  }
  0x24   : > { %v368_v21 = vld [vmem:[%s1609_s4] sm:$0xf] }
  0x25   : > { %v373_v24 = vrot.slane %v368_v21, %v372_v19  ;;  %v381_v25 = vrot.slane %v368_v21, %v380_v20  ;;  %v377_v26 = vrot.slane %v368_v21, %v376_v22  ;;  %v385_v27 = vrot.slane %v368_v21, %v384_v23 }
  0x26   : > { %563 = vmatpush1.bf16.msra.mxu0 %v1244_v32  ;;  %604 = vmatpush1.bf16.msra.mxu1 %v1245_v33 }
  0x27   : > { %564 = vmatprep.subr.bf16.mxu0 %v1246_v34  ;;  %605 = vmatprep.subr.bf16.mxu1 %v1248_v35 }
  0x2a   : > { %565 = vmatpush1.bf16.msra.mxu0 %v1250_v36  ;;  %606 = vmatpush1.bf16.msra.mxu1 %v1251_v37 }
  0x2b   : > { %1135 = vmatprep.subr.bf16.mxu0 %v1252_v38  ;;  %1157 = vmatprep.subr.bf16.mxu1 %v1253_v39 }
  0x99   : > { %v310_v9 = vpop.xlane.xlu0 %309 }
  0x9a   : > { %v312_v10 = vmul.f32 0.0078125, %v310_v9  ;;  %v1276_v9 = vld [vmem:[%s1610_s5 + $0x48] sm:$0xff]  }
  0x9c   : > { %v1405_v11 = vsub.f32 %v1377_v0, %v312_v10  ;;  %v1277_v10 = vld [vmem:[%s1610_s5 + $0xc8] sm:$0xff]  }
  0x9e   : > { %v314_v12 = vmul.f32 %v1405_v11, %v1405_v11 }
  0xa0   : > { %315 = vadd.xlane.f32.xlu0 %v314_v12  ;;  %v1279_v12 = vld [vmem:[%s1610_s5 + $0x88] sm:$0xff]  }
 0x129   : > { %v316_v40 = vpop.xlane.xlu0 %315 }
 0x12a   : > { %v317_v41 = vmul.f32 0.0078125, %v316_v40 }
 0x12c   : > { %v318_v42 = vadd.f32 1e-05, %v317_v41 }
 0x12e   : > { %1284 = vrsqrt.f32 %v318_v42 }
 0x13b   : > { %v1285_v43 = vpop.eup %1284 }
 0x13c   : > { %v320_v45 = vmul.f32 %v1285_v43, %v1405_v11  ;;  %v1278_v11 = vld [vmem:[%s1610_s5 + $0x8] sm:$0xff]  }
 0x13e   : > { %v327_v47 = vmul.f32 %v1066_v44, %v320_v45 }
 0x140   : > { %v334_v48 = vadd.f32 %v1067_v46, %v327_v47 }
 0x142   : > { %v335_v51 = vpack.c.bf16 %v334_v48, %v334_v48 }
 0x144   : > { %583 = vmatmul.mubr.bf16.vlgmr.msra.gmra.mxu0 %v335_v51  ;;  %624 = vmatmul.mubr.bf16.vlgmr.msra.gmra.mxu1 %v335_v51 }
 0x145   : > { %1136 = vmatpush3.bf16.msra.mxu0 %v1254_v49  ;;  %1158 = vmatpush3.bf16.msra.mxu1 %v1255_v50  ;;  %v1100_v50 = vld [vmem:[%s1611_s6] ss:$0 sm:$0xff] }
 0x146   : > { %1137 = vmatprep.subr.bf16.mxu0 %v1256_v52  ;;  %1159 = vmatprep.subr.bf16.mxu1 %v1257_v53 }
 0x149   : > { %1138 = vmatpush3.bf16.msra.mxu0 %v1258_v54  ;;  %1160 = vmatpush3.bf16.msra.mxu1 %v1259_v55 }
 0x14a   : > { %1139 = vmatprep.subr.bf16.mxu0 %v1260_v56  ;;  %1161 = vmatprep.subr.bf16.mxu1 %v1261_v57 }
 0x14d   : > { %1140 = vmatpush3.bf16.msra.mxu0 %v1262_v58  ;;  %1162 = vmatpush3.bf16.msra.mxu1 %v1263_v59 }
 0x14e   : > { %1141 = vmatprep.subr.bf16.mxu0 %v1264_v60  ;;  %1163 = vmatprep.subr.bf16.mxu1 %v1265_v61 }
 0x151   : > { %1142 = vmatpush3.bf16.msra.mxu0 %v1266_v62  ;;  %1164 = vmatpush3.bf16.msra.mxu1 %v1267_v63 }
 0x152   : > { %1143 = vmatprep.subr.bf16.mxu0 %v1268_v1  ;;  %1165 = vmatprep.subr.bf16.mxu1 %v1269_v2 }
 0x155   : > { %1144 = vmatpush3.bf16.msra.mxu0 %v1270_v3  ;;  %1166 = vmatpush3.bf16.msra.mxu1 %v1271_v4 }
 0x156   : > { %1145 = vmatprep.subr.bf16.mxu0 %v1272_v5  ;;  %1167 = vmatprep.subr.bf16.mxu1 %v1273_v6 }
 0x159   : > { %1146 = vmatpush3.bf16.msra.mxu0 %v1274_v7  ;;  %1168 = vmatpush3.bf16.msra.mxu1 %v1275_v8 }
 0x15a   : > { %1147 = vmatprep.subr.bf16.mxu0 %v1276_v9  ;;  %1169 = vmatprep.subr.bf16.mxu1 %v1277_v10 }
 0x15d   : > { %1148 = vmatpush3.bf16.msra.mxu0 %v1278_v11  ;;  %1170 = vmatpush3.bf16.msra.mxu1 %v1279_v12 }
 0x15e   : > { %1149 = vmatprep.subr.bf16.mxu0 %v1280_v13  ;;  %1171 = vmatprep.subr.bf16.mxu1 %v1281_v14 }
 0x161   : > { %1150 = vmatpush3.bf16.msra.mxu0 %v1282_v15  ;;  %1172 = vmatpush3.bf16.msra.mxu1 %v1283_v16 }
 0x204   : > { %v584_v28 = vpop.f32.mrf.mxu0  ;;  %v625_v29 = vpop.f32.mrf.mxu1 }
 0x205   : > { %v585_v30 = vadd.f32 %v584_v28, %v373_v24  ;;  %v626_v31 = vadd.f32 %v625_v29, %v381_v25 }
 0x206   : > { %v586_v32 = vpop.f32.mrf.mxu0  ;;  %v627_v33 = vpop.f32.mrf.mxu1 }
 0x207   : > { %v587_v34 = vadd.f32 %v586_v32, %v377_v26  ;;  %v628_v35 = vadd.f32 %v627_v33, %v385_v27  ;;  %v632_v36 = vmax.f32 %v585_v30, 0.0  ;;  %v634_v37 = vmax.f32 %v626_v31, 0.0 }
 0x208   : > { %v588_v38 = vpop.f32.mrf.mxu0  ;;  %v629_v39 = vpop.f32.mrf.mxu1 }
 0x209   : > { %v633_v40 = vmax.f32 %v587_v34, 0.0  ;;  %v635_v41 = vmax.f32 %v628_v35, 0.0  ;;  %v636_v46 = vpack.c.bf16 %v632_v36, %v632_v36  ;;  %v638_v47 = vpack.c.bf16 %v634_v37, %v634_v37 }
 0x20a   : > { %v589_v42 = vpop.f32.mrf.mxu0  ;;  %v630_v43 = vpop.f32.mrf.mxu1 }
 0x20b   : > { %v637_v44 = vpack.c.bf16 %v633_v40, %v633_v40  ;;  %v639_v45 = vpack.c.bf16 %v635_v41, %v635_v41 }
 0x20d   : > { %935 = vmatprep.mubr.bf16.mxu0 %v637_v44  ;;  %975 = vmatprep.mubr.bf16.mxu1 %v639_v45 }
 0x20e   : > { %936 = vmatmul.mubr.bf16.vlgmr.msra.gmra.mxu0 %v636_v46  ;;  %976 = vmatmul.mubr.bf16.vlgmr.msra.gmra.mxu1 %v638_v47 }
 0x2ce   : > { %v1151_v48 = vpop.f32.mrf.mxu0  ;;  %v1173_v49 = vpop.f32.mrf.mxu1 }
 0x2d0   : > { %v1152_v51 = vpop.f32.mrf.mxu0  ;;  %v1174_v52 = vpop.f32.mrf.mxu1 }
 0x2d1   : > { %v1153_v53 = vadd.f32 %v1152_v51, %v1151_v48  ;;  %v1175_v57 = vadd.f32 %v1174_v52, %v1173_v49 }
 0x2d2   : > { %v1154_v54 = vpop.f32.mrf.mxu0  ;;  %v1176_v55 = vpop.f32.mrf.mxu1 }
 0x2d3   : > { %v938_v56 = vadd.f32 %v1153_v53, %v1100_v50 }
 0x2d4   : > { %v1155_v58 = vpop.f32.mrf.mxu0  ;;  %v1177_v59 = vpop.f32.mrf.mxu1 }
 0x2d5   : > { %v978_v60 = vadd.f32 %v1175_v57, %v938_v56 }
 0x2d7   : > { %v983_v61 = vadd.f32 %v978_v60, %v1377_v0 }
 0x2d9   : > { %984 = vst [vmem:[%s304_s21] sm:$0xff] %v983_v61 }
 0x2da PF: > { %s17_s26 = sadd.s32 1, %s1308_s26   ;;  %s1613_s24 = smov %s1304_s25 }
 0x2db   : > { %p14_p5 = scmp.ge.s32.totalorder %s17_s26, 4   ;;  %s1614_s25 = smov %s1616_s27 }
 0x2dd   :  { %16 = sbr.rel (!%p14_p5) target bundleno = 2 (0x2), region = 78 }

// kernel: hourglass_forward.13
= control target key start
LH: loop header
LB: loop body
LE: loop exit
PB: predicated region body
PF: predicated region fallthrough
CT: control target
= control target key end

     0   :  { %s1505_s21 = smov 0   ;;  %s1507_s22 = smov 0   ;;  %s1717_s0 = inlined_call_operand.vmem [shape: f32[2,8,128], index: 0, kind: input, shape index: {}]   ;;  %s1718_s1 = inlined_call_operand.vmem [shape: bf16[2,4,8,32], index: 1, kind: input, shape index: {}]   ;;  %s1719_s2 = inlined_call_operand.vmem [shape: bf16[2,4,8,32], index: 2, kind: input, shape index: {}]   ;;  %s1720_s3 = inlined_call_operand.vmem [shape: bf16[2,4,8,32], index: 3, kind: input, shape index: {}]   ;;  %s1721_s4 = inlined_call_operand.vmem [shape: bf16[128,128], index: 4, kind: input, shape index: {}]   ;;  %s1722_s5 = inlined_call_operand.vmem [shape: f32[1,128], index: 5, kind: input, shape index: {}]   ;;  %s1723_s6 = inlined_call_operand.vmem [shape: f32[2,8,128], index: 6, kind: output, shape index: {}]  }
   0x1   :  { %s1509_s23 = smov 0  }
   0x2 LB: > { %s35_s24 = sadd.s32 1, %s1457_s22  ;;  %p1250_p0 = scmp.ge.s32.totalorder %s1461_s23, 1  ;;  %s1461_s23 = sphi %s1509_s23, %s16_s23   ;;  %s1457_s22 = sphi %s1507_s22, %s1725_s22   ;;  %s1453_s21 = sphi %s1505_s21, %s1724_s21  }
   0x3   : > { %p37_p1 = scmp.ge.s32.totalorder %s35_s24, 2  ;;  %p282_p2 = scmp.lt.s32.totalorder %s1461_s23, 3 }
   0x5   : > { %s1727_s24 = smov (%p37_p1, %s35_s24), 0  ;;  %p283_p3 = pnand %p1250_p0, %p282_p2 }
   0x6   : > { %p340_p4 = scmp.lt.s32.totalorder (!%p283_p3), %s1453_s21, 1  ;;  %s1467_s29 = smov (!%p283_p3), 32  }
   0x7   : > { %286 = sbr.rel (%p283_p3) target bundleno = 1133 (0x46d), region = 44  ;;  %s1468_s8 = smov (!%p283_p3), 64  }
   0x8   : > { %s1469_s9 = smov (!%p283_p3), 96  }
   0xc   : > { %vm392_vm0 = vcmask 261120   ;;  %v1463_v0 = vmov 0.0   ;;  %vm1464_vm1 = vmmov 0   ;;  %s1729_s21 = smov (!%p340_p4, %s1453_s21), 1  ;;  %vm383_vm2 = vcmask 7168  }
   0xd   : > { %1306 = vmatprep.subr.bf16.mxu1 %v1463_v0  ;;  %393 = vst.msk [vmem:[#allocation4] sm:$0xff] %vm392_vm0, %v1463_v0  ;;  %394 = vst.msk [vmem:[#allocation4 + $0x8] sm:$0xff] %vm392_vm0, %v1463_v0  ;;  %1308 = vmatprep.mubr.msk.bf16.mxu1 %vm1464_vm1, %v1463_v0  ;;  %s1540_s25 = sshll.u32 %s1729_s21, 4  ;;  %v1465_v13 = vmov -inf   ;;  %v605_v14 = vlaneseq  ;;  %vm624_vm4 = vcmask 64512   ;;  %v1466_v32 = vmov 0  }
   0xe   : > { %395 = vst.msk [vmem:[#allocation4 + $0x10] sm:$0xff] %vm392_vm0, %v1463_v0  ;;  %396 = vst.msk [vmem:[#allocation4 + $0x18] sm:$0xff] %vm392_vm0, %v1463_v0  ;;  %1330 = vmatprep.subr.bf16.mxu0 %v1463_v0  ;;  %1332 = vmatprep.mubr.msk.bf16.mxu0 %vm1464_vm1, %v1463_v0  ;;  %s362_s28 = scalar_lea.vmem %s1719_s2, %s1540_s25  ;;  %s354_s7 = scalar_lea.vmem %s1718_s1, %s1540_s25  ;;  %vm749_vm5 = vcmask 1043456   ;;  %vm996_vm6 = vcmask 523264   ;;  %vm998_vm7 = vcmask 785408  }
   0xf   : > { %v408_v1 = vld [vmem:[%s362_s28] sm:$0xf]  ;;  %v409_v3 = vld [vmem:[%s362_s28 + $0x4] sm:$0xf]  ;;  %v410_v6 = vld [vmem:[%s362_s28 + $0x8] sm:$0xf]  ;;  %1405 = vset.pattern.permute.xlu0 %v1466_v32  ;;  %1406 = vset.pattern.permute.xlu1 %v1466_v32  ;;  %s370_s10 = scalar_lea.vmem %s1720_s3, %s1540_s25 }
  0x10   : > { %v421_v2 = vsel %vm392_vm0, %v408_v1, 0  ;;  %v404_v4 = vld [vmem:[%s354_s7] sm:$0xf]  ;;  %v467_v5 = vsel %vm392_vm0, %v409_v3, 0  ;;  %v405_v7 = vld [vmem:[%s354_s7 + $0x4] sm:$0xf] }
  0x11   : > { %1307 = vmatpush3.bf16.xpose.msra.mxu1 %v421_v2  ;;  %v513_v8 = vsel %vm392_vm0, %v410_v6, 0  ;;  %v411_v9 = vld [vmem:[%s362_s28 + $0xc] sm:$0xf]  ;;  %v406_v10 = vld [vmem:[%s354_s7 + $0x8] sm:$0xf]  ;;  %384 = vst.msk [vmem:[#allocation2] sm:$0xff] %vm383_vm2, %v1465_v13 }
  0x12   : > { %1312 = vmatprep.subr.bf16.mxu1 %v1463_v0  ;;  %v559_v11 = vsel %vm392_vm0, %v411_v9, 0  ;;  %v407_v12 = vld [vmem:[%s354_s7 + $0xc] sm:$0xf]  ;;  %385 = vst.msk [vmem:[#allocation2 + $0x8] sm:$0xff] %vm383_vm2, %v1465_v13  ;;  %386 = vst.msk [vmem:[#allocation2 + $0x10] sm:$0xff] %vm383_vm2, %v1465_v13  ;;  %v606_v15 = vshrl.u32 %v605_v14, 7 }
  0x13   : > { %387 = vst.msk [vmem:[#allocation2 + $0x18] sm:$0xff] %vm383_vm2, %v1465_v13  ;;  %388 = vst.msk [vmem:[#allocation3] sm:$0xff] %vm383_vm2, %v1463_v0  ;;  %v610_v16 = vand.u32 127, %v605_v14  ;;  %v412_v55 = vld [vmem:[%s370_s10] sm:$0xf] }
  0x14   : > { %389 = vst.msk [vmem:[#allocation3 + $0x8] sm:$0xff] %vm383_vm2, %v1463_v0  ;;  %390 = vst.msk [vmem:[#allocation3 + $0x10] sm:$0xff] %vm383_vm2, %v1463_v0  ;;  %v751_v56 = vsel %vm749_vm5, %v412_v55, 0  ;;  %v413_v61 = vld [vmem:[%s370_s10 + $0x4] sm:$0xf] }
  0x15   : > { %391 = vst.msk [vmem:[#allocation3 + $0x18] sm:$0xff] %vm383_vm2, %v1463_v0  ;;  %vm613_vm3 = vcmp.ge.s32.totalorder %v606_v15, %v610_v16  ;;  %1331 = vmatpush3.bf16.msra.mxu0 %v751_v56  ;;  %v797_v62 = vsel %vm749_vm5, %v413_v61, 0  ;;  %v414_v3 = vld [vmem:[%s370_s10 + $0x8] sm:$0xf] }
  0x16   : > { %1342 = vmatprep.subr.bf16.mxu0 %v1463_v0 }
  0x18   : > { %1309 = vmatmul.mubr.msk.bf16.vlgmr.msra.gmra.mxu1 %vm392_vm0, %v404_v4  ;;  %v1599_v46 = vld [vmem:[#allocation2] sm:$0xff]  ;;  %v843_v4 = vsel %vm749_vm5, %v414_v3, 0 }
  0x19   : > { %1313 = vmatpush3.bf16.xpose.msra.mxu1 %v467_v5  ;;  %1314 = vmatprep.mubr.msk.bf16.mxu1 %vm1464_vm1, %v1463_v0  ;;  %v1609_v50 = vld [vmem:[#allocation2 + $0x8] sm:$0xff]  ;;  %v622_v54 = vld [vmem:[#allocation2 + $0x10] sm:$0xff] }
  0x1a   : > { %1318 = vmatprep.subr.bf16.mxu1 %v1463_v0  ;;  %v623_v60 = vld [vmem:[#allocation2 + $0x18] sm:$0xff]  ;;  %v415_v5 = vld [vmem:[%s370_s10 + $0xc] sm:$0xf]  ;;  %s1251_s10 = sshll.u32 %s1729_s21, 3 }
  0x1b   : > { %v889_v6 = vsel %vm749_vm5, %v415_v5, 0  ;;  %v715_v5 = vld [vmem:[#allocation4 + $0x8] sm:$0xff]  ;;  %s346_s13 = scalar_lea.vmem %s1717_s0, %s1251_s10  ;;  %s377_s18 = scalar_lea.vmem %s1723_s6, %s1251_s10 }
  0x20   : > { %1315 = vmatmul.mubr.msk.bf16.vlgmr.msra.gmra.mxu1 %vm392_vm0, %v405_v7 }
  0x21   : > { %1319 = vmatpush3.bf16.xpose.msra.mxu1 %v513_v8  ;;  %1320 = vmatprep.mubr.msk.bf16.mxu1 %vm1464_vm1, %v1463_v0 }
  0x22   : > { %1324 = vmatprep.subr.bf16.mxu1 %v1463_v0 }
  0x28   : > { %1321 = vmatmul.mubr.msk.bf16.vlgmr.msra.gmra.mxu1 %vm392_vm0, %v406_v10 }
  0x29   : > { %1325 = vmatpush3.bf16.xpose.msra.mxu1 %v559_v11  ;;  %1326 = vmatprep.mubr.msk.bf16.mxu1 %vm1464_vm1, %v1463_v0 }
  0x2a   : > { %1336 = vmatprep.subr.bf16.mxu1 %v1463_v0 }
  0x30   : > { %1327 = vmatmul.mubr.msk.bf16.vlgmr.msra.gmra.mxu1 %vm392_vm0, %v407_v12 }
  0x31   : > { %1338 = vmatprep.mubr.msk.bf16.mxu1 %vm1464_vm1, %v1463_v0  ;;  %1337 = vmatpush3.bf16.msra.mxu1 %v797_v62 }
  0x32   : > { %1348 = vmatprep.subr.bf16.mxu1 %v1463_v0 }
  0xd8   : > { %v457_v17 = vpop.f32.mrf.mxu1 }
  0xd9   : > { %v601_v18 = vmul.f32 0.17677669, %v457_v17 }
  0xda   : > { %v1310_v19 = vpop.f32.mrf.mxu1 }
  0xdb   : > { %v1583_v20 = vsel %vm613_vm3, %v601_v18, -1e+30 }
  0xdc   : > { %v460_v21 = vpop.f32.mrf.mxu1  ;;  %v625_v22 = vsel %vm624_vm4, %v1583_v20, -inf }
  0xdd   : > { %626 = vmax.xlane.f32.xlu0 %v625_v22 }
  0xde   : > { %v1311_v23 = vpop.f32.mrf.mxu1 }
  0xe0   : > { %v503_v24 = vpop.f32.mrf.mxu1 }
  0xe1   : > { %v602_v25 = vmul.f32 0.17677669, %v503_v24 }
  0xe2   : > { %v1316_v26 = vpop.f32.mrf.mxu1 }
  0xe3   : > { %v1588_v27 = vsel %vm613_vm3, %v602_v25, -1e+30 }
  0xe4   : > { %v506_v28 = vpop.f32.mrf.mxu1  ;;  %v628_v29 = vsel %vm624_vm4, %v1588_v27, -inf }
  0xe5   : > { %629 = vmax.xlane.f32.xlu0 %v628_v29 }
  0xe6   : > { %v1317_v30 = vpop.f32.mrf.mxu1 }
  0xe8   : > { %v549_v31 = vpop.f32.mrf.mxu1 }
  0xe9   : > { %v603_v33 = vmul.f32 0.17677669, %v549_v31 }
  0xea   : > { %v1322_v34 = vpop.f32.mrf.mxu1 }
  0xeb   : > { %v618_v35 = vsel %vm613_vm3, %v603_v33, -1e+30 }
  0xec   : > { %v552_v36 = vpop.f32.mrf.mxu1  ;;  %v631_v37 = vsel %vm624_vm4, %v618_v35, -inf }
  0xed   : > { %632 = vmax.xlane.f32.xlu1 %v631_v37  ;;  %v686_v37 = vld [vmem:[#allocation3 + $0x8] sm:$0xff] }
  0xee   : > { %v1323_v38 = vpop.f32.mrf.mxu1 }
  0xf0   : > { %v595_v39 = vpop.f32.mrf.mxu1 }
  0xf1   : > { %v604_v40 = vmul.f32 0.17677669, %v595_v39 }
  0xf2   : > { %v1328_v41 = vpop.f32.mrf.mxu1 }
  0xf3   : > { %v1595_v42 = vsel %vm613_vm3, %v604_v40, -1e+30 }
  0xf4   : > { %v598_v43 = vpop.f32.mrf.mxu1  ;;  %v634_v44 = vsel %vm624_vm4, %v1595_v42, -inf }
  0xf5   : > { %635 = vmax.xlane.f32.xlu1 %v634_v44 }
  0xf6   : > { %v1329_v45 = vpop.f32.mrf.mxu1 }
 0x166   : > { %v627_v47 = vpop.xlane.xlu0 %626 }
 0x167   : > { %v1602_v48 = vmax.f32 %v1599_v46, %v627_v47 }
 0x169   : > { %v641_v49 = vsub.f32 %v1599_v46, %v1602_v48  ;;  %939 = vst.msk [vmem:[#allocation2] sm:$0xff] %vm383_vm2, %v1602_v48  ;;  %655 = vperm.xlu0 %1405, %v1602_v48   ;;  %v685_v46 = vld [vmem:[#allocation3] sm:$0xff] }
 0x16b   : > { %v645_v38 = vmul.f32 1.442695, %v641_v49 }
 0x16e   : > { %v630_v51 = vpop.xlane.xlu0 %629 }
 0x16f   : > { %v1612_v52 = vmax.f32 %v1609_v50, %v630_v51 }
 0x171   : > { %v642_v53 = vsub.f32 %v1609_v50, %v1612_v52  ;;  %940 = vst.msk [vmem:[#allocation2 + $0x8] sm:$0xff] %vm383_vm2, %v1612_v52  ;;  %660 = vperm.xlu1 %1406, %v1612_v52   ;;  %v688_v50 = vld [vmem:[#allocation3 + $0x18] sm:$0xff] }
 0x173   : > { %v647_v31 = vmul.f32 1.442695, %v642_v53 }
 0x176   : > { %v633_v57 = vpop.xlane.xlu1 %632 }
 0x177   : > { %v639_v58 = vmax.f32 %v622_v54, %v633_v57 }
 0x179   : > { %v643_v59 = vsub.f32 %v622_v54, %v639_v58  ;;  %941 = vst.msk [vmem:[#allocation2 + $0x10] sm:$0xff] %vm383_vm2, %v639_v58  ;;  %665 = vperm.xlu1 %1406, %v639_v58  }
 0x17e   : > { %v636_v63 = vpop.xlane.xlu1 %635 }
 0x17f   : > { %v640_v1 = vmax.f32 %v623_v60, %v636_v63  ;;  %v1407_v63 = vld [vmem:[%s1721_s4 + $0x38] sm:$0xff]  }
 0x181   : > { %v644_v2 = vsub.f32 %v623_v60, %v640_v1  ;;  %942 = vst.msk [vmem:[#allocation2 + $0x18] sm:$0xff] %vm383_vm2, %v640_v1  ;;  %670 = vperm.xlu1 %1406, %v640_v1   ;;  %v1408_v1 = vld [vmem:[%s1721_s4 + $0x30] sm:$0xff]  }
 0x183   : > { %v651_v33 = vmul.f32 1.442695, %v644_v2 }
 0x1e4   : > { %v656_v7 = vpop.permute.xlu0 %655 }
 0x1e5   : > { %v673_v8 = vsub.f32 %v1583_v20, %v656_v7 }
 0x1e7   : > { %v677_v9 = vmul.f32 1.442695, %v673_v8 }
 0x1e9   : > { %1415 = vpow2.f32 %v677_v9 }
 0x1ec   : > { %v661_v10 = vpop.permute.xlu1 %660 }
 0x1ed   : > { %v674_v11 = vsub.f32 %v1588_v27, %v661_v10  ;;  %v649_v27 = vmul.f32 1.442695, %v643_v59 }
 0x1ef   : > { %v679_v12 = vmul.f32 1.442695, %v674_v11 }
 0x1f1   : > { %1417 = vpow2.f32 %v679_v12 }
 0x1f4   : > { %v666_v13 = vpop.permute.xlu1 %665 }
 0x1f5   : > { %v675_v14 = vsub.f32 %v618_v35, %v666_v13  ;;  %v716_v13 = vld [vmem:[#allocation4 + $0x10] sm:$0xff] }
 0x1f6   : > { %v1416_v15 = vpop.eup %1415 }
 0x1f7   : > { %v681_v16 = vmul.f32 1.442695, %v675_v14  ;;  %v742_v17 = vpack.c.bf16 %v1416_v15, %v1416_v15  ;;  %v693_v32 = vsel %vm624_vm4, %v1416_v15, 0.0 }
 0x1f9   : > { %1419 = vpow2.f32 %v681_v16  ;;  %1333 = vmatmul.mubr.msk.bf16.vlgmr.msra.gmra.mxu0 %vm624_vm4, %v742_v17 }
 0x1fa   : > { %1343 = vmatpush3.bf16.msra.mxu0 %v843_v4  ;;  %1344 = vmatprep.mubr.msk.bf16.mxu0 %vm1464_vm1, %v1463_v0  ;;  %v1409_v4 = vld [vmem:[%s1721_s4 + $0x28] sm:$0xff]  }
 0x1fb   : > { %1354 = vmatprep.subr.bf16.mxu0 %v1463_v0 }
 0x1fc   : > { %v671_v18 = vpop.permute.xlu1 %670 }
 0x1fd   : > { %v676_v19 = vsub.f32 %v1595_v42, %v671_v18  ;;  %v687_v42 = vld [vmem:[#allocation3 + $0x10] sm:$0xff] }
 0x1fe   : > { %v1418_v20 = vpop.eup %1417 }
 0x1ff   : > { %v683_v21 = vmul.f32 1.442695, %v676_v19  ;;  %v696_v22 = vsel %vm624_vm4, %v1418_v20, 0.0  ;;  %v743_v23 = vpack.c.bf16 %v1418_v20, %v1418_v20 }
 0x200   : > { %697 = vadd.xlane.f32.xlu1 %v696_v22 }
 0x201   : > { %1421 = vpow2.f32 %v683_v21  ;;  %1339 = vmatmul.mubr.msk.bf16.vlgmr.msra.gmra.mxu1 %vm624_vm4, %v743_v23  ;;  %v717_v21 = vld [vmem:[#allocation4 + $0x18] sm:$0xff] }
 0x202   : > { %1349 = vmatpush3.bf16.msra.mxu1 %v889_v6  ;;  %1350 = vmatprep.mubr.msk.bf16.mxu1 %vm1464_vm1, %v1463_v0  ;;  %1423 = vpow2.f32 %v649_v27 }
 0x203   : > { %1425 = vpow2.f32 %v647_v31  ;;  %v1410_v31 = vld [vmem:[%s1721_s4 + $0x20] sm:$0xff]  }
 0x204   : > { %1427 = vpow2.f32 %v651_v33  ;;  %v1412_v33 = vld [vmem:[%s1721_s4 + $0x10] sm:$0xff]  }
 0x205   : > { %1429 = vpow2.f32 %v645_v38  ;;  %v1414_v38 = vld [vmem:[%s1721_s4] sm:$0xff]  }
 0x206   : > { %v1420_v24 = vpop.eup %1419 }
 0x207   : > { %v699_v25 = vsel %vm624_vm4, %v1420_v24, 0.0  ;;  %v744_v26 = vpack.c.bf16 %v1420_v24, %v1420_v24 }
 0x208   : > { %700 = vadd.xlane.f32.xlu0 %v699_v25 }
 0x209   : > { %1345 = vmatmul.mubr.msk.bf16.vlgmr.msra.gmra.mxu0 %vm624_vm4, %v744_v26 }
 0x20a   : > { %1370 = vmatprep.mubr.msk.bf16.mxu0 %vm1464_vm1, %v1463_v0  ;;  %1355 = vmatpush3.bf16.msra.mxu0 %v1407_v63 }
 0x20b   : > { %1356 = vmatprep.subr.bf16.mxu0 %v1463_v0 }
 0x20e   : > { %v1422_v28 = vpop.eup %1421  ;;  %1357 = vmatpush3.bf16.msra.mxu0 %v1408_v1 }
 0x20f   : > { %v702_v29 = vsel %vm624_vm4, %v1422_v28, 0.0  ;;  %v745_v30 = vpack.c.bf16 %v1422_v28, %v1422_v28  ;;  %v1424_v34 = vpop.eup %1423  ;;  %1358 = vmatprep.subr.bf16.mxu0 %v1463_v0 }
 0x210   : > { %703 = vadd.xlane.f32.xlu1 %v702_v29  ;;  %v1426_v35 = vpop.eup %1425  ;;  %v691_v43 = vmul.f32 %v1424_v34, %v687_v42  ;;  %v714_v42 = vld [vmem:[#allocation4] sm:$0xff] }
 0x211   : > { %1351 = vmatmul.mubr.msk.bf16.vlgmr.msra.gmra.mxu1 %vm624_vm4, %v745_v30  ;;  %v1428_v36 = vpop.eup %1427  ;;  %v690_v39 = vmul.f32 %v1426_v35, %v686_v37 }
 0x212   : > { %v692_v51 = vmul.f32 %v1428_v36, %v688_v50  ;;  %v1430_v52 = vpop.eup %1429  ;;  %1359 = vmatpush3.bf16.msra.mxu0 %v1409_v4 }
 0x213   : > { %v689_v54 = vmul.f32 %v1430_v52, %v685_v46  ;;  %1360 = vmatprep.subr.bf16.mxu0 %v1463_v0 }
 0x214   : > { %694 = vadd.xlane.f32.xlu1 %v693_v32  ;;  %v1411_v32 = vld [vmem:[%s1721_s4 + $0x18] sm:$0xff]  }
 0x216   : > { %1361 = vmatpush3.bf16.msra.mxu0 %v1410_v31 }
 0x217   : > { %1362 = vmatprep.subr.bf16.mxu0 %v1463_v0 }
 0x21a   : > { %1363 = vmatpush3.bf16.msra.mxu0 %v1411_v32 }
 0x21b   : > { %1364 = vmatprep.subr.bf16.mxu0 %v1463_v0 }
 0x21e   : > { %730 = vperm.xlu0 %1405, %v1424_v34   ;;  %1365 = vmatpush3.bf16.msra.mxu0 %v1412_v33  ;;  %v1413_v34 = vld [vmem:[%s1721_s4 + $0x8] sm:$0xff]  }
 0x21f   : > { %1366 = vmatprep.subr.bf16.mxu0 %v1463_v0 }
 0x222   : > { %1367 = vmatpush3.bf16.msra.mxu0 %v1413_v34 }
 0x223   : > { %1368 = vmatprep.subr.bf16.mxu0 %v1463_v0 }
 0x225   : > { %725 = vperm.xlu1 %1406, %v1426_v35  }
 0x226   : > { %1369 = vmatpush3.bf16.msra.mxu0 %v1414_v38 }
 0x229   : > { %735 = vperm.xlu1 %1406, %v1428_v36  }
 0x289   : > { %v698_v40 = vpop.xlane.xlu1 %697 }
 0x28a   : > { %v706_v41 = vadd.f32 %v698_v40, %v690_v39 }
 0x28c   : > { %711 = vst.msk [vmem:[#allocation3 + $0x8] sm:$0xff] %vm383_vm2, %v706_v41 }
 0x291   : > { %v701_v44 = vpop.xlane.xlu0 %700 }
 0x292   : > { %v707_v45 = vadd.f32 %v701_v44, %v691_v43 }
 0x293   : > { %v951_v47 = vld [vmem:[#allocation3 + $0x8] sm:$0xff] }
 0x294   : > { %712 = vst.msk [vmem:[#allocation3 + $0x10] sm:$0xff] %vm383_vm2, %v707_v45  ;;  %1431 = vrcp.f32 %v951_v47 }
 0x299   : > { %v704_v53 = vpop.xlane.xlu1 %703  ;;  %v731_v14 = vpop.permute.xlu0 %730 }
 0x29a   : > { %v708_v48 = vadd.f32 %v704_v53, %v692_v51  ;;  %v740_v17 = vmul.f32 %v731_v14, %v716_v13 }
 0x29b   : > { %v952_v49 = vld [vmem:[#allocation3 + $0x10] sm:$0xff] }
 0x29c   : > { %713 = vst.msk [vmem:[#allocation3 + $0x18] sm:$0xff] %vm383_vm2, %v708_v48  ;;  %1433 = vrcp.f32 %v952_v49 }
 0x29d   : > { %v695_v55 = vpop.xlane.xlu1 %694 }
 0x29e   : > { %v705_v56 = vadd.f32 %v695_v55, %v689_v54 }
 0x2a0   : > { %710 = vst.msk [vmem:[#allocation3] sm:$0xff] %vm383_vm2, %v705_v56 }
 0x2a1   : > { %v1432_v57 = vpop.eup %1431  ;;  %v726_v6 = vpop.permute.xlu1 %725 }
 0x2a2   : > { %965 = vperm.xlu1 %1406, %v1432_v57   ;;  %v739_v9 = vmul.f32 %v726_v6, %v715_v5 }
 0x2a3   : > { %v953_v58 = vld [vmem:[#allocation3 + $0x18] sm:$0xff] }
 0x2a4   : > { %1435 = vrcp.f32 %v953_v58  ;;  %v1267_v58 = vld [vmem:[%s1722_s5] ss:$0 sm:$0xff] }
 0x2a5   : > { %v736_v22 = vpop.permute.xlu1 %735 }
 0x2a6   : > { %v741_v25 = vmul.f32 %v736_v22, %v717_v21 }
 0x2a7   : > { %v950_v59 = vld [vmem:[#allocation3] sm:$0xff] }
 0x2a8   : > { %1437 = vrcp.f32 %v950_v59 }
 0x2a9   : > { %v1434_v60 = vpop.eup %1433 }
 0x2aa   : > { %970 = vperm.xlu1 %1406, %v1434_v60   ;;  %v1112_v60 = vld [vmem:[%s346_s13] sm:$0xff] }
 0x2ae   : > { %720 = vperm.xlu1 %1406, %v1430_v52  }
 0x2b1   : > { %v1436_v61 = vpop.eup %1435 }
 0x2b2   : > { %975 = vperm.xlu0 %1405, %v1436_v61  }
 0x2b5   : > { %v1438_v62 = vpop.eup %1437 }
 0x2b6   : > { %960 = vperm.xlu0 %1405, %v1438_v62  }
 0x2b9   : > { %v1665_v2 = vpop.f32.mrf.mxu0 }
 0x2bb   : > { %v1334_v3 = vpop.f32.mrf.mxu0 }
 0x2bd   : > { %v790_v7 = vpop.f32.mrf.mxu0 }
 0x2bf   : > { %v1335_v8 = vpop.f32.mrf.mxu0 }
 0x2c1   : > { %v833_v10 = vpop.f32.mrf.mxu1 }
 0x2c2   : > { %v932_v11 = vadd.f32 %v833_v10, %v739_v9 }
 0x2c3   : > { %v1340_v12 = vpop.f32.mrf.mxu1 }
 0x2c4   : > { %936 = vst.msk [vmem:[#allocation4 + $0x8] sm:$0xff] %vm392_vm0, %v932_v11 }
 0x2c5   : > { %v836_v15 = vpop.f32.mrf.mxu1 }
 0x2c7   : > { %v1341_v16 = vpop.f32.mrf.mxu1 }
 0x2c9   : > { %v879_v18 = vpop.f32.mrf.mxu0 }
 0x2ca   : > { %v933_v19 = vadd.f32 %v879_v18, %v740_v17 }
 0x2cb   : > { %v1346_v20 = vpop.f32.mrf.mxu0  ;;  %v947_v36 = vld [vmem:[#allocation4 + $0x8] sm:$0xff] }
 0x2cc   : > { %937 = vst.msk [vmem:[#allocation4 + $0x10] sm:$0xff] %vm392_vm0, %v933_v19 }
 0x2cd   : > { %v882_v23 = vpop.f32.mrf.mxu0 }
 0x2cf   : > { %v1347_v24 = vpop.f32.mrf.mxu0 }
 0x2d1   : > { %v925_v26 = vpop.f32.mrf.mxu1 }
 0x2d2   : > { %v934_v27 = vadd.f32 %v925_v26, %v741_v25 }
 0x2d3   : > { %v1352_v28 = vpop.f32.mrf.mxu1  ;;  %v948_v39 = vld [vmem:[#allocation4 + $0x10] sm:$0xff] }
 0x2d4   : > { %938 = vst.msk [vmem:[#allocation4 + $0x18] sm:$0xff] %vm392_vm0, %v934_v27 }
 0x2d5   : > { %v928_v29 = vpop.f32.mrf.mxu1 }
 0x2d7   : > { %v1353_v30 = vpop.f32.mrf.mxu1 }
 0x2db   : > { %v949_v50 = vld [vmem:[#allocation4 + $0x18] sm:$0xff] }
 0x31d   : > { %v966_v35 = vpop.permute.xlu1 %965 }
 0x31e   : > { %v979_v37 = vmul.f32 %v966_v35, %v947_v36 }
 0x320   : > { %983 = vrot.lane.b32.xlu1 %v979_v37, %s1467_s29 }
 0x325   : > { %v971_v40 = vpop.permute.xlu1 %970 }
 0x326   : > { %v980_v41 = vmul.f32 %v971_v40, %v948_v39 }
 0x328   : > { %987 = vrot.lane.b32.xlu0 %v980_v41, %s1468_s8 }
 0x329   : > { %v721_v43 = vpop.permute.xlu1 %720 }
 0x32a   : > { %v738_v44 = vmul.f32 %v721_v43, %v714_v42 }
 0x32c   : > { %v931_v45 = vadd.f32 %v1665_v2, %v738_v44 }
 0x32d   : > { %v976_v47 = vpop.permute.xlu0 %975 }
 0x32e   : > { %935 = vst.msk [vmem:[#allocation4] sm:$0xff] %vm392_vm0, %v931_v45  ;;  %v981_v0 = vmul.f32 %v976_v47, %v949_v50 }
 0x330   : > { %991 = vrot.lane.b32.xlu1 %v981_v0, %s1469_s9 }
 0x331   : > { %v961_v51 = vpop.permute.xlu0 %960 }
 0x335   : > { %v946_v52 = vld [vmem:[#allocation4] sm:$0xff] }
 0x336   : > { %v978_v46 = vmul.f32 %v961_v51, %v946_v52 }
 0x392   : > { %v984_v53 = vpop.permute.xlu1 %983 }
 0x393   : > { %v995_v49 = vsel %vm392_vm0, %v978_v46, %v984_v53 }
 0x39a   : > { %v988_v48 = vpop.permute.xlu0 %987 }
 0x39b   : > { %v997_v54 = vsel %vm996_vm6, %v995_v49, %v988_v48 }
 0x3a2   : > { %v992_v55 = vpop.permute.xlu1 %991 }
 0x3a3   : > { %v999_v56 = vsel %vm998_vm7, %v997_v54, %v992_v55 }
 0x3a4   : > { %v1000_v57 = vpack.c.bf16 %v999_v56, %v999_v56 }
 0x3a6   : > { %1371 = vmatmul.mubr.bf16.vlgmr.msra.gmra.mxu0 %v1000_v57 }
 0x466   : > { %v1106_v59 = vpop.f32.mrf.mxu0 }
 0x467   : > { %v1107_v61 = vadd.f32 %v1267_v58, %v1106_v59 }
 0x468   : > { %v1372_v62 = vpop.f32.mrf.mxu0 }
 0x469   : > { %v1113_v63 = vadd.f32 %v1112_v60, %v1107_v61 }
 0x46a   : > { %v1109_v1 = vpop.f32.mrf.mxu0 }
 0x46b   : > { %1114 = vst [vmem:[%s377_s18] sm:$0xff] %v1113_v63 }
 0x46c   : > { %v1373_v2 = vpop.f32.mrf.mxu0 }
 0x46d PF: > { %s16_s23 = sadd.s32 1, %s1461_s23   ;;  %s1724_s21 = smov %s1457_s22 }
 0x46e   : > { %p13_p5 = scmp.ge.s32.totalorder %s16_s23, 4   ;;  %s1725_s22 = smov %s1727_s24 }
 0x470   :  { %15 = sbr.rel (!%p13_p5) target bundleno = 2 (0x2), region = 95 }

// kernel: hourglass_forward.15
= control target key start
LH: loop header
LB: loop body
LE: loop exit
PB: predicated region body
PF: predicated region fallthrough
CT: control target
= control target key end

     0   :  { %s1210_s24 = smov 0   ;;  %s1212_s25 = smov 0   ;;  %s1407_s0 = inlined_call_operand.vmem [shape: f32[2,16,128], index: 0, kind: input, shape index: {}]   ;;  %s1408_s1 = inlined_call_operand.vmem [shape: f32[1,128], index: 1, kind: input, shape index: {}]   ;;  %s1409_s2 = inlined_call_operand.vmem [shape: f32[1,128], index: 2, kind: input, shape index: {}]   ;;  %s1410_s3 = inlined_call_operand.vmem [shape: bf16[128,384], index: 3, kind: input, shape index: {}]   ;;  %s1411_s4 = inlined_call_operand.vmem [shape: f32[1,384], index: 4, kind: input, shape index: {}]   ;;  %s1412_s5 = inlined_call_operand.vmem [shape: bf16[2,4,16,32], index: 5, kind: output, shape index: {0}]   ;;  %s1413_s6 = inlined_call_operand.vmem [shape: bf16[2,4,16,32], index: 6, kind: output, shape index: {1}]   ;;  %s1414_s7 = inlined_call_operand.vmem [shape: bf16[2,4,16,32], index: 7, kind: output, shape index: {2}]  }
   0x1   :  { %s1214_s26 = smov 0  }
   0x2 LB: > { %s30_s27 = sadd.s32 1, %s1158_s25  ;;  %p974_p0 = scmp.ge.s32.totalorder %s1162_s26, 1  ;;  %s1162_s26 = sphi %s1214_s26, %s18_s26   ;;  %s1158_s25 = sphi %s1212_s25, %s1416_s25   ;;  %s1154_s24 = sphi %s1210_s24, %s1415_s24  }
   0x3   : > { %p32_p1 = scmp.ge.s32.totalorder %s30_s27, 2  ;;  %p267_p2 = scmp.lt.s32.totalorder %s1162_s26, 3 }
   0x5   : > { %s1418_s27 = smov (%p32_p1, %s30_s27), 0  ;;  %p268_p3 = pnand %p974_p0, %p267_p2 }
   0x6   : > { %p326_p4 = scmp.lt.s32.totalorder (!%p268_p3), %s1154_s24, 1  ;;  %s1167_s15 = smov (!%p268_p3), 96  }
   0x7   : > { %271 = sbr.rel (%p268_p3) target bundleno = 679 (0x2a7), region = 40  ;;  %s1168_s16 = smov (!%p268_p3), 64  }
   0x8   : > { %s1169_s17 = smov (!%p268_p3), 32  }
   0xc   : > { %s1420_s24 = smov (!%p326_p4, %s1154_s24), 1  ;;  %v1104_v2 = vld [vmem:[%s1410_s3 + $0xac] ss:$12 sps:$4 sm:$0xff]   ;;  %v1106_v3 = vld [vmem:[%s1410_s3 + $0xa8] ss:$12 sps:$4 sm:$0xff]   ;;  %v1164_v4 = vmov 0.0   ;;  %v444_v53 = vlaneseq }
   0xd   : > { %s1035_s28 = sshll.u32 %s1420_s24, 4  ;;  %1054 = vmatprep.subr.bf16.mxu1 %v1164_v4  ;;  %v1107_v5 = vld [vmem:[%s1410_s3 + $0xb0] ss:$12 sps:$4 sm:$0xff]   ;;  %587 = vmatprep.subr.bf16.mxu0 %v1104_v2  ;;  %v1108_v14 = vld [vmem:[%s1410_s3 + $0x94] ss:$12 sps:$4 sm:$0xff]   ;;  %v1165_v27 = vmov 0  }
   0xe   : > { %s333_s8 = scalar_lea.vmem %s1407_s0, %s1035_s28  ;;  %588 = vmatpush1.bf16.msra.mxu0 %v1106_v3  ;;  %1055 = vmatpush3.bf16.msra.mxu1 %v1107_v5  ;;  %v1110_v15 = vld [vmem:[%s1410_s3 + $0x90] ss:$12 sps:$4 sm:$0xff]   ;;  %v1111_v16 = vld [vmem:[%s1410_s3 + $0x98] ss:$12 sps:$4 sm:$0xff]   ;;  %v1115_v19 = vld [vmem:[%s1410_s3 + $0x80] ss:$12 sps:$4 sm:$0xff]  }
   0xf   : > { %v366_v0 = vld [vmem:[%s333_s8] sm:$0xff]  ;;  %v367_v1 = vld [vmem:[%s333_s8 + $0x8] sm:$0xff]  ;;  %1056 = vmatprep.subr.bf16.mxu1 %v1164_v4  ;;  %589 = vmatprep.subr.bf16.mxu0 %v1108_v14  ;;  %v1123_v25 = vld [vmem:[%s1410_s3 + $0x50] ss:$12 sps:$4 sm:$0xff]   ;;  %vm1166_vm0 = vmmov 0   ;;  %v445_v54 = vshrl.u32 %v444_v53, 7 }
  0x10   : > { %370 = vadd.xlane.f32.xlu0 %v366_v0  ;;  %v1112_v17 = vld [vmem:[%s1410_s3 + $0x7c] ss:$12 sps:$4 sm:$0xff]   ;;  %v1114_v18 = vld [vmem:[%s1410_s3 + $0x78] ss:$12 sps:$4 sm:$0xff]   ;;  %v1118_v21 = vld [vmem:[%s1410_s3 + $0x60] ss:$12 sps:$4 sm:$0xff]   ;;  %619 = vmatprep.mubr.bf16.mxu0 %v1165_v27 }
  0x11   : > { %v1116_v20 = vld [vmem:[%s1410_s3 + $0x64] ss:$12 sps:$4 sm:$0xff]   ;;  %v1119_v22 = vld [vmem:[%s1410_s3 + $0x68] ss:$12 sps:$4 sm:$0xff]   ;;  %v1120_v23 = vld [vmem:[%s1410_s3 + $0x4c] ss:$12 sps:$4 sm:$0xff]   ;;  %1070 = vmatprep.mubr.msk.bf16.mxu1 %vm1166_vm0, %v1164_v4 }
  0x12   : > { %590 = vmatpush1.bf16.msra.mxu0 %v1110_v15  ;;  %1057 = vmatpush3.bf16.msra.mxu1 %v1111_v16  ;;  %v1122_v24 = vld [vmem:[%s1410_s3 + $0x48] ss:$12 sps:$4 sm:$0xff]   ;;  %v1126_v28 = vld [vmem:[%s1410_s3 + $0x30] ss:$12 sps:$4 sm:$0xff]   ;;  %v1127_v29 = vld [vmem:[%s1410_s3 + $0x38] ss:$12 sps:$4 sm:$0xff]  }
  0x13   : > { %1058 = vmatprep.subr.bf16.mxu1 %v1164_v4  ;;  %591 = vmatprep.subr.bf16.mxu0 %v1112_v17  ;;  %v1124_v26 = vld [vmem:[%s1410_s3 + $0x34] ss:$12 sps:$4 sm:$0xff]   ;;  %v1128_v30 = vld [vmem:[%s1410_s3 + $0x1c] ss:$12 sps:$4 sm:$0xff]   ;;  %v1130_v31 = vld [vmem:[%s1410_s3 + $0x18] ss:$12 sps:$4 sm:$0xff]  }
  0x14   : > { %372 = vadd.xlane.f32.xlu0 %v367_v1  ;;  %v1131_v32 = vld [vmem:[%s1410_s3 + $0x20] ss:$12 sps:$4 sm:$0xff]   ;;  %v1132_v33 = vld [vmem:[%s1410_s3 + $0x4] ss:$12 sps:$4 sm:$0xff]   ;;  %v1135_v35 = vld [vmem:[%s1410_s3 + $0x8] ss:$12 sps:$4 sm:$0xff]  }
  0x15   : > { %v1134_v34 = vld [vmem:[%s1410_s3] ss:$12 sps:$4 sm:$0xff]   ;;  %v446_v55 = vsub.s32 0, %v445_v54  ;;  %v454_v56 = vsub.s32 2, %v445_v54  ;;  %v450_v58 = vsub.s32 1, %v445_v54  ;;  %s1036_s29 = sshll.u32 %s1420_s24, 5 }
  0x16   : > { %592 = vmatpush1.bf16.msra.mxu0 %v1114_v18  ;;  %1059 = vmatpush3.bf16.msra.mxu1 %v1115_v19  ;;  %v983_v44 = vld [vmem:[%s1408_s1] ss:$0 sm:$0xff]  ;;  %s1338_s9 = scalar_lea.vmem %s1412_s5, %s1036_s29  ;;  %s1343_s12 = scalar_lea.vmem %s1414_s7, %s1036_s29  ;;  %vm679_vm1 = vcmask 257024  }
  0x17   : > { %1060 = vmatprep.subr.bf16.mxu1 %v1164_v4  ;;  %593 = vmatprep.subr.bf16.mxu0 %v1116_v20  ;;  %v984_v48 = vld [vmem:[%s1409_s2] ss:$0 sm:$0xff]  ;;  %s1348_s14 = scalar_lea.vmem %s1413_s6, %s1036_s29 }
  0x18   : > { %v442_v57 = vld [vmem:[%s1411_s4] sm:$0x7] }
  0x19   : > { %v447_v59 = vrot.slane %v442_v57, %v446_v55  ;;  %v455_v60 = vrot.slane %v442_v57, %v454_v56  ;;  %v451_v61 = vrot.slane %v442_v57, %v450_v58 }
  0x1a   : > { %594 = vmatpush1.bf16.msra.mxu0 %v1118_v21  ;;  %1061 = vmatpush3.bf16.msra.mxu1 %v1119_v22 }
  0x1b   : > { %595 = vmatprep.subr.bf16.mxu0 %v1120_v23  ;;  %1062 = vmatprep.subr.bf16.mxu1 %v1164_v4 }
  0x1e   : > { %596 = vmatpush1.bf16.msra.mxu0 %v1122_v24  ;;  %1063 = vmatpush3.bf16.msra.mxu1 %v1123_v25 }
  0x1f   : > { %597 = vmatprep.subr.bf16.mxu0 %v1124_v26  ;;  %1064 = vmatprep.subr.bf16.mxu1 %v1164_v4 }
  0x22   : > { %598 = vmatpush1.bf16.msra.mxu0 %v1126_v28  ;;  %1065 = vmatpush3.bf16.msra.mxu1 %v1127_v29 }
  0x23   : > { %599 = vmatprep.subr.bf16.mxu0 %v1128_v30  ;;  %1066 = vmatprep.subr.bf16.mxu1 %v1164_v4 }
  0x26   : > { %600 = vmatpush1.bf16.msra.mxu0 %v1130_v31  ;;  %1067 = vmatpush3.bf16.msra.mxu1 %v1131_v32 }
  0x27   : > { %601 = vmatprep.subr.bf16.mxu0 %v1132_v33  ;;  %1068 = vmatprep.subr.bf16.mxu1 %v1164_v4 }
  0x2a   : > { %602 = vmatpush1.bf16.msra.mxu0 %v1134_v34  ;;  %1069 = vmatpush3.bf16.msra.mxu1 %v1135_v35 }
  0x99   : > { %v371_v6 = vpop.xlane.xlu0 %370 }
  0x9a   : > { %v375_v7 = vmul.f32 0.0078125, %v371_v6 }
  0x9c   : > { %v1245_v8 = vsub.f32 %v366_v0, %v375_v7 }
  0x9d   : > { %v373_v9 = vpop.xlane.xlu0 %372 }
  0x9e   : > { %v376_v10 = vmul.f32 0.0078125, %v373_v9  ;;  %v379_v11 = vmul.f32 %v1245_v8, %v1245_v8 }
  0xa0   : > { %v1249_v12 = vsub.f32 %v367_v1, %v376_v10  ;;  %381 = vadd.xlane.f32.xlu1 %v379_v11 }
  0xa2   : > { %v380_v13 = vmul.f32 %v1249_v12, %v1249_v12 }
  0xa4   : > { %383 = vadd.xlane.f32.xlu1 %v380_v13 }
 0x129   : > { %v382_v36 = vpop.xlane.xlu1 %381 }
 0x12a   : > { %v385_v37 = vmul.f32 0.0078125, %v382_v36 }
 0x12c   : > { %v387_v38 = vadd.f32 1e-05, %v385_v37 }
 0x12d   : > { %v384_v39 = vpop.xlane.xlu1 %383 }
 0x12e   : > { %1136 = vrsqrt.f32 %v387_v38  ;;  %v386_v40 = vmul.f32 0.0078125, %v384_v39 }
 0x130   : > { %v388_v41 = vadd.f32 1e-05, %v386_v40 }
 0x132   : > { %1138 = vrsqrt.f32 %v388_v41 }
 0x13b   : > { %v1137_v42 = vpop.eup %1136 }
 0x13c   : > { %v391_v43 = vmul.f32 %v1137_v42, %v1245_v8 }
 0x13e   : > { %v399_v47 = vmul.f32 %v983_v44, %v391_v43 }
 0x13f   : > { %v1139_v45 = vpop.eup %1138 }
 0x140   : > { %v392_v46 = vmul.f32 %v1139_v45, %v1249_v12  ;;  %v407_v50 = vadd.f32 %v984_v48, %v399_v47 }
 0x142   : > { %v400_v49 = vmul.f32 %v983_v44, %v392_v46 }
 0x144   : > { %v408_v51 = vadd.f32 %v984_v48, %v400_v49 }
 0x146   : > { %v409_v52 = vpack.c.bf16 %v408_v51, %v407_v50 }
 0x148   : > { %620 = vmatmul.mubr.bf16.vlgmr.msra.gmra.mxu0 %v409_v52  ;;  %1071 = vmatmul.mubr.bf16.vlgmr.msra.gmra.mxu1 %v409_v52 }
 0x208   : > { %v621_v62 = vpop.f32.mrf.mxu0  ;;  %v664_v63 = vpop.f32.mrf.mxu1 }
 0x209   : > { %v622_v0 = vadd.f32 %v621_v62, %v447_v59  ;;  %v665_v1 = vadd.f32 %v664_v63, %v455_v60 }
 0x20a   : > { %v623_v2 = vpop.f32.mrf.mxu0  ;;  %v1072_v3 = vpop.f32.mrf.mxu1 }
 0x20b   : > { %v1039_v4 = vpack.c.bf16 %v622_v0, %v622_v0  ;;  %v1043_v5 = vpack.c.bf16 %v665_v1, %v665_v1  ;;  %v624_v6 = vadd.f32 %v623_v2, %v451_v61 }
 0x20c   : > { %v625_v7 = vpop.f32.mrf.mxu0  ;;  %v667_v8 = vpop.f32.mrf.mxu1 }
 0x20d   : > { %680 = vst.msk [vmem:[%s1338_s9] sm:$0xf] %vm679_vm1, %v1039_v4  ;;  %700 = vst.msk [vmem:[%s1343_s12] sm:$0xf] %vm679_vm1, %v1043_v5  ;;  %v1041_v9 = vpack.c.bf16 %v624_v6, %v624_v6  ;;  %v626_v10 = vadd.f32 %v625_v7, %v447_v59  ;;  %v668_v11 = vadd.f32 %v667_v8, %v455_v60  ;;  %702 = vrot.lane.b32.xlu0 %v1039_v4, %s1167_s15 }
 0x20e   : > { %v627_v12 = vpop.f32.mrf.mxu0  ;;  %v1073_v13 = vpop.f32.mrf.mxu1 }
 0x20f   : > { %690 = vst.msk [vmem:[%s1348_s14] sm:$0xf] %vm679_vm1, %v1041_v9  ;;  %v1040_v14 = vpack.c.bf16 %v626_v10, %v626_v10  ;;  %v1044_v15 = vpack.c.bf16 %v668_v11, %v668_v11  ;;  %v628_v16 = vadd.f32 %v627_v12, %v451_v61  ;;  %711 = vrot.lane.b32.xlu1 %v1041_v9, %s1167_s15 }
 0x211   : > { %681 = vst.msk [vmem:[%s1338_s9 + $0x4] sm:$0xf] %vm679_vm1, %v1040_v14  ;;  %701 = vst.msk [vmem:[%s1343_s12 + $0x4] sm:$0xf] %vm679_vm1, %v1044_v15  ;;  %v1042_v17 = vpack.c.bf16 %v628_v16, %v628_v16  ;;  %720 = vrot.lane.b32.xlu0 %v1043_v5, %s1167_s15 }
 0x213   : > { %691 = vst.msk [vmem:[%s1348_s14 + $0x4] sm:$0xf] %vm679_vm1, %v1042_v17  ;;  %704 = vrot.lane.b32.xlu1 %v1040_v14, %s1167_s15 }
 0x215   : > { %729 = vrot.lane.b32.xlu0 %v1039_v4, %s1168_s16 }
 0x217   : > { %722 = vrot.lane.b32.xlu1 %v1044_v15, %s1167_s15 }
 0x219   : > { %747 = vrot.lane.b32.xlu0 %v1043_v5, %s1168_s16 }
 0x21b   : > { %731 = vrot.lane.b32.xlu1 %v1040_v14, %s1168_s16 }
 0x21d   : > { %756 = vrot.lane.b32.xlu0 %v1039_v4, %s1169_s17 }
 0x21f   : > { %749 = vrot.lane.b32.xlu1 %v1044_v15, %s1168_s16 }
 0x221   : > { %738 = vrot.lane.b32.xlu0 %v1041_v9, %s1168_s16 }
 0x223   : > { %758 = vrot.lane.b32.xlu1 %v1040_v14, %s1169_s17 }
 0x225   : > { %765 = vrot.lane.b32.xlu0 %v1041_v9, %s1169_s17 }
 0x227   : > { %713 = vrot.lane.b32.xlu1 %v1042_v17, %s1167_s15 }
 0x229   : > { %774 = vrot.lane.b32.xlu0 %v1043_v5, %s1169_s17 }
 0x22b   : > { %740 = vrot.lane.b32.xlu1 %v1042_v17, %s1168_s16 }
 0x22f   : > { %767 = vrot.lane.b32.xlu1 %v1042_v17, %s1169_s17 }
 0x233   : > { %776 = vrot.lane.b32.xlu1 %v1044_v15, %s1169_s17 }
 0x27f   : > { %v703_v18 = vpop.permute.xlu0 %702 }
 0x280   : > { %1015 = vst.msk [vmem:[%s1338_s9 + $0x8] sm:$0xf] %vm679_vm1, %v703_v18 }
 0x281   : > { %v712_v19 = vpop.permute.xlu1 %711 }
 0x282   : > { %1017 = vst.msk [vmem:[%s1348_s14 + $0x8] sm:$0xf] %vm679_vm1, %v712_v19 }
 0x283   : > { %v721_v20 = vpop.permute.xlu0 %720 }
 0x284   : > { %1019 = vst.msk [vmem:[%s1343_s12 + $0x8] sm:$0xf] %vm679_vm1, %v721_v20 }
 0x285   : > { %v705_v21 = vpop.permute.xlu1 %704 }
 0x286   : > { %1016 = vst.msk [vmem:[%s1338_s9 + $0xc] sm:$0xf] %vm679_vm1, %v705_v21 }
 0x287   : > { %v730_v22 = vpop.permute.xlu0 %729 }
 0x288   : > { %1021 = vst.msk [vmem:[%s1338_s9 + $0x10] sm:$0xf] %vm679_vm1, %v730_v22 }
 0x289   : > { %v723_v23 = vpop.permute.xlu1 %722 }
 0x28a   : > { %1020 = vst.msk [vmem:[%s1343_s12 + $0xc] sm:$0xf] %vm679_vm1, %v723_v23 }
 0x28b   : > { %v748_v24 = vpop.permute.xlu0 %747 }
 0x28c   : > { %1025 = vst.msk [vmem:[%s1343_s12 + $0x10] sm:$0xf] %vm679_vm1, %v748_v24 }
 0x28d   : > { %v732_v25 = vpop.permute.xlu1 %731 }
 0x28e   : > { %1022 = vst.msk [vmem:[%s1338_s9 + $0x14] sm:$0xf] %vm679_vm1, %v732_v25 }
 0x28f   : > { %v757_v26 = vpop.permute.xlu0 %756 }
 0x290   : > { %1027 = vst.msk [vmem:[%s1338_s9 + $0x18] sm:$0xf] %vm679_vm1, %v757_v26 }
 0x291   : > { %v750_v27 = vpop.permute.xlu1 %749 }
 0x292   : > { %1026 = vst.msk [vmem:[%s1343_s12 + $0x14] sm:$0xf] %vm679_vm1, %v750_v27 }
 0x293   : > { %v739_v28 = vpop.permute.xlu0 %738 }
 0x294   : > { %1023 = vst.msk [vmem:[%s1348_s14 + $0x10] sm:$0xf] %vm679_vm1, %v739_v28 }
 0x295   : > { %v759_v29 = vpop.permute.xlu1 %758 }
 0x296   : > { %1028 = vst.msk [vmem:[%s1338_s9 + $0x1c] sm:$0xf] %vm679_vm1, %v759_v29 }
 0x297   : > { %v766_v30 = vpop.permute.xlu0 %765 }
 0x298   : > { %1029 = vst.msk [vmem:[%s1348_s14 + $0x18] sm:$0xf] %vm679_vm1, %v766_v30 }
 0x299   : > { %v714_v31 = vpop.permute.xlu1 %713 }
 0x29a   : > { %1018 = vst.msk [vmem:[%s1348_s14 + $0xc] sm:$0xf] %vm679_vm1, %v714_v31 }
 0x29b   : > { %v775_v32 = vpop.permute.xlu0 %774 }
 0x29c   : > { %1031 = vst.msk [vmem:[%s1343_s12 + $0x18] sm:$0xf] %vm679_vm1, %v775_v32 }
 0x29d   : > { %v741_v33 = vpop.permute.xlu1 %740 }
 0x29e   : > { %1024 = vst.msk [vmem:[%s1348_s14 + $0x14] sm:$0xf] %vm679_vm1, %v741_v33 }
 0x2a1   : > { %v768_v34 = vpop.permute.xlu1 %767 }
 0x2a2   : > { %1030 = vst.msk [vmem:[%s1348_s14 + $0x1c] sm:$0xf] %vm679_vm1, %v768_v34 }
 0x2a5   : > { %v777_v35 = vpop.permute.xlu1 %776 }
 0x2a6   : > { %1032 = vst.msk [vmem:[%s1343_s12 + $0x1c] sm:$0xf] %vm679_vm1, %v777_v35 }
 0x2a7 PF: > { %s18_s26 = sadd.s32 1, %s1162_s26   ;;  %s1415_s24 = smov %s1158_s25 }
 0x2a8   : > { %p15_p5 = scmp.ge.s32.totalorder %s18_s26, 4   ;;  %s1416_s25 = smov %s1418_s27 }
 0x2aa   :  { %17 = sbr.rel (!%p15_p5) target bundleno = 2 (0x2), region = 103 }

</bundles_post_ra>
